<compile_context>
chip_gen: v6e
topology: v6e:2x2x1
jax: 0.10.0
libtpu: 0.0.40
codegen_flags: <defaults>
</compile_context>

<pallas_src>
import jax
import jax.numpy as jnp
from jax.experimental import pallas as pl
from jax.experimental.pallas import tpu as pltpu

D_MODEL = 32
N_HEADS = 4
D_FF = 64
HEAD_DIM = D_MODEL // N_HEADS
NEG_INF = -1e9
LN_EPS = 1e-5
BF16 = jnp.bfloat16


# ----------------------------- kernel helpers ------------------------------ #
def _layer_norm(x, gamma, beta):
    mean = jnp.mean(x, axis=-1, keepdims=True)
    xc = x - mean
    var = jnp.mean(xc * xc, axis=-1, keepdims=True)
    return xc * jax.lax.rsqrt(var + LN_EPS) * gamma + beta


def _attend(q, k, v, bias, wo_bf):
    """Multi-head attention for one batch element; heads accumulated directly.

    q: (Sq, D) f32 (already scaled by 1/sqrt(head_dim) via packed Wq)
    k, v: (Sk, D) f32; bias: (Sq, Sk) additive f32 mask; wo_bf: (D, D) bf16.
    Returns the attention output (Sq, D) f32 *before* the output bias.
    """
    q_bf = q.astype(BF16)
    k_bf = k.astype(BF16)
    v_bf = v.astype(BF16)
    out = jnp.zeros((q.shape[0], wo_bf.shape[1]), jnp.float32)
    for h in range(N_HEADS):  # static unroll; no scratch, no masked stores
        sl = slice(h * HEAD_DIM, (h + 1) * HEAD_DIM)
        s = jnp.einsum("qd,kd->qk", q_bf[:, sl], k_bf[:, sl],
                       preferred_element_type=jnp.float32) + bias
        s = s - jnp.max(s, axis=-1, keepdims=True)
        p = jnp.exp(s)
        p = p * pl.reciprocal(jnp.sum(p, axis=-1, keepdims=True), approx=True)
        pv = jnp.dot(p.astype(BF16), v_bf[:, sl],
                     preferred_element_type=jnp.float32)            # (Sq, Hd)
        out = out + jnp.dot(pv.astype(BF16), wo_bf[sl, :],
                            preferred_element_type=jnp.float32)      # (Sq, D)
    return out


# --------------------------------- kernel ---------------------------------- #
def decoder_layer_kernel(
    x_ref,        # (B*S,  D)  f32
    enc_ref,      # (B*Se, D)  f32
    dmask_ref,    # (B, S, S)  int8 {0,1}
    edmask_ref,   # (B, S, Se) int8 {0,1}
    w_qkv1_ref,   # (D, 3D)    fused self-attn QKV weights (Wq pre-scaled)
    wo1_ref,      # (D, D)
    wq2_ref,      # (D, D)     cross-attn Q weights (pre-scaled)
    w_kv2_ref,    # (D, 2D)    fused cross-attn KV weights
    wo2_ref,      # (D, D)
    w_ff1_ref,    # (D, D_FF)
    w_ff2_ref,    # (D_FF, D)
    b_qkv1_ref,   # (1, 3D)
    vec64_ref,    # (2, 2D)    rows: [bk2|bv2, b_ff1]
    vec32_ref,    # (10, D)    rows: [bo1,g1,be1,bq2,bo2,g2,be2,b_ff2,g3,be3]
    out_ref,      # (B*S, D)   f32
):
    B, S, _ = dmask_ref.shape
    Se = edmask_ref.shape[2]
    D = x_ref.shape[-1]

    # packed small vectors (biases / LayerNorm params), each (1, width)
    v32 = vec32_ref[...]
    bo1, g1, be1 = v32[0:1], v32[1:2], v32[2:3]
    bq2, bo2 = v32[3:4], v32[4:5]
    g2, be2 = v32[5:6], v32[6:7]
    b_ff2, g3, be3 = v32[7:8], v32[8:9], v32[9:10]
    v64 = vec64_ref[...]
    b_kv2, b_ff1 = v64[0:1], v64[1:2]

    x = x_ref[...]        # (B*S, D)  f32
    enc = enc_ref[...]    # (B*Se, D) f32

    # int8 {0,1} masks -> additive f32 bias, computed once for all heads/batches
    dbias = jnp.where(dmask_ref[...].astype(jnp.float32) > 0.0,
                      jnp.float32(0.0), jnp.float32(NEG_INF))     # (B, S, S)
    ebias = jnp.where(edmask_ref[...].astype(jnp.float32) > 0.0,
                      jnp.float32(0.0), jnp.float32(NEG_INF))     # (B, S, Se)

    # ---- masked self-attention (fused QKV projection) + LayerNorm ----------
    qkv1 = jnp.dot(x.astype(BF16), w_qkv1_ref[...].astype(BF16),
                   preferred_element_type=jnp.float32) + b_qkv1_ref[...]
    wo1_bf = wo1_ref[...].astype(BF16)
    res1_parts = []
    for b in range(B):                      # B is tiny; static unroll
        rows = slice(b * S, (b + 1) * S)
        res1_parts.append(_attend(qkv1[rows, 0:D], qkv1[rows, D:2 * D],
                                  qkv1[rows, 2 * D:3 * D], dbias[b], wo1_bf))
    res1 = jnp.concatenate(res1_parts, axis=0) + bo1
    x1 = _layer_norm(x + res1, g1, be1)

    # ---- encoder-decoder attention (fused KV projection) + LayerNorm -------
    kv2 = jnp.dot(enc.astype(BF16), w_kv2_ref[...].astype(BF16),
                  preferred_element_type=jnp.float32) + b_kv2
    q2 = jnp.dot(x1.astype(BF16), wq2_ref[...].astype(BF16),
                 preferred_element_type=jnp.float32) + bq2
    wo2_bf = wo2_ref[...].astype(BF16)
    res2_parts = []
    for b in range(B):
        qrows = slice(b * S, (b + 1) * S)
        krows = slice(b * Se, (b + 1) * Se)
        res2_parts.append(_attend(q2[qrows], kv2[krows, 0:D],
                                  kv2[krows, D:2 * D], ebias[b], wo2_bf))
    res2 = jnp.concatenate(res2_parts, axis=0) + bo2
    x2 = _layer_norm(x1 + res2, g2, be2)

    # ---- feed forward: Linear -> ReLU -> Linear -----------------------------
    h = jnp.maximum(
        jnp.dot(x2.astype(BF16), w_ff1_ref[...].astype(BF16),
                preferred_element_type=jnp.float32) + b_ff1, 0.0)
    ff = jnp.dot(h.astype(BF16), w_ff2_ref[...].astype(BF16),
                 preferred_element_type=jnp.float32) + b_ff2

    # final residual reuses the cross-attn residual (reference quirk — keep it)
    out_ref[...] = _layer_norm(ff + res2, g3, be3)


# --------------------------- parameter packing ------------------------------ #
def pack_params(params):
    """Fuse QKV / KV weights, fold 1/sqrt(head_dim) into Wq, pack tiny vectors."""
    (wq1, bq1, wk1, bk1, wv1, bv1, wo1, bo1, g1, be1,
     wq2, bq2, wk2, bk2, wv2, bv2, wo2, bo2, g2, be2,
     w_ff1, b_ff1, w_ff2, b_ff2, g3, be3) = params
    scale = 1.0 / (HEAD_DIM ** 0.5)
    w_qkv1 = jnp.concatenate([wq1 * scale, wk1, wv1], axis=1)        # (D, 3D)
    b_qkv1 = jnp.concatenate([bq1 * scale, bk1, bv1], axis=1)        # (1, 3D)
    w_kv2 = jnp.concatenate([wk2, wv2], axis=1)                      # (D, 2D)
    vec32 = jnp.concatenate(
        [bo1, g1, be1, bq2 * scale, bo2, g2, be2, b_ff2, g3, be3], axis=0)  # (10, D)
    vec64 = jnp.concatenate(
        [jnp.concatenate([bk2, bv2], axis=1), b_ff1], axis=0)        # (2, 2D)
    return [w_qkv1, wo1, wq2 * scale, w_kv2, wo2, w_ff1, w_ff2,
            b_qkv1, vec64, vec32]


# -------------------------------- wrapper ----------------------------------- #
def decoder_layer(x, encoder_out, decoder_mask, enc_dec_mask, params):
    B, S, D = x.shape
    Se = encoder_out.shape[1]
    packed = pack_params(params)        # cheap; in a real model pack once at init

    x2d = x.reshape(B * S, D)           # contiguous reshape: free on the host side
    enc2d = encoder_out.reshape(B * Se, D)
    dmask_i8 = (decoder_mask > 0).astype(jnp.int8)
    edmask_i8 = (enc_dec_mask > 0).astype(jnp.int8)

    n_inputs = 4 + len(packed)
    vmem_specs = [pl.BlockSpec(memory_space=pltpu.MemorySpace.VMEM)
                  for _ in range(n_inputs)]

    out2d = pl.pallas_call(
        decoder_layer_kernel,
        out_shape=jax.ShapeDtypeStruct((B * S, D), jnp.float32),
        in_specs=vmem_specs,
        out_specs=pl.BlockSpec(memory_space=pltpu.MemorySpace.VMEM),
    )(x2d, enc2d, dmask_i8, edmask_i8, *packed)
    return out2d.reshape(B, S, D)


# --------------------------- parameter construction ------------------------- #
def init_params(key):
    ks = list(jax.random.split(key, 16))

    def lin(k, din, dout):
        kw, kb = jax.random.split(k)
        w = jax.random.normal(kw, (din, dout), jnp.float32) * 0.02
        b = jax.random.normal(kb, (1, dout), jnp.float32) * 0.02
        return w, b

    def ln():
        return jnp.ones((1, D_MODEL), jnp.float32), jnp.zeros((1, D_MODEL), jnp.float32)

    wq1, bq1 = lin(ks[0], D_MODEL, D_MODEL)
    wk1, bk1 = lin(ks[1], D_MODEL, D_MODEL)
    wv1, bv1 = lin(ks[2], D_MODEL, D_MODEL)
    wo1, bo1 = lin(ks[3], D_MODEL, D_MODEL)
    g1, be1 = ln()
    wq2, bq2 = lin(ks[4], D_MODEL, D_MODEL)
    wk2, bk2 = lin(ks[5], D_MODEL, D_MODEL)
    wv2, bv2 = lin(ks[6], D_MODEL, D_MODEL)
    wo2, bo2 = lin(ks[7], D_MODEL, D_MODEL)
    g2, be2 = ln()
    w_ff1, b_ff1 = lin(ks[8], D_MODEL, D_FF)
    w_ff2, b_ff2 = lin(ks[9], D_FF, D_MODEL)
    g3, be3 = ln()
    return [wq1, bq1, wk1, bk1, wv1, bv1, wo1, bo1, g1, be1,
            wq2, bq2, wk2, bk2, wv2, bv2, wo2, bo2, g2, be2,
            w_ff1, b_ff1, w_ff2, b_ff2, g3, be3]


# ----------------------------- pure-JAX reference --------------------------- #
def _ref_mha(q_in, k_in, v_in, mask, wq, bq, wk, bk, wv, bv, wo, bo):
    S_q, S_k = q_in.shape[1], k_in.shape[1]
    q = (q_in @ wq + bq).reshape(q_in.shape[0], S_q, N_HEADS, HEAD_DIM)
    k = (k_in @ wk + bk).reshape(k_in.shape[0], S_k, N_HEADS, HEAD_DIM)
    v = (v_in @ wv + bv).reshape(v_in.shape[0], S_k, N_HEADS, HEAD_DIM)
    s = jnp.einsum("bqhd,bkhd->bhqk", q, k) / jnp.sqrt(jnp.float32(HEAD_DIM))
    s = jnp.where(mask[:, None, :, :] > 0.0, s, NEG_INF)
    p = jax.nn.softmax(s, axis=-1)
    o = jnp.einsum("bhqk,bkhd->bqhd", p, v).reshape(q_in.shape[0], S_q, D_MODEL)
    return o @ wo + bo


def _ref_ln(x, g, b):
    m = jnp.mean(x, axis=-1, keepdims=True)
    v = jnp.mean((x - m) ** 2, axis=-1, keepdims=True)
    return (x - m) * jax.lax.rsqrt(v + LN_EPS) * g + b


def decoder_layer_ref(x, enc, dmask, edmask, p):
    (wq1, bq1, wk1, bk1, wv1, bv1, wo1, bo1, g1, be1,
     wq2, bq2, wk2, bk2, wv2, bv2, wo2, bo2, g2, be2,
     w_ff1, b_ff1, w_ff2, b_ff2, g3, be3) = p
    r1 = _ref_mha(x, x, x, dmask, wq1, bq1, wk1, bk1, wv1, bv1, wo1, bo1)
    x1 = _ref_ln(x + r1, g1, be1)
    r2 = _ref_mha(x1, enc, enc, edmask, wq2, bq2, wk2, bk2, wv2, bv2, wo2, bo2)
    x2 = _ref_ln(x1 + r2, g2, be2)
    ff = jnp.maximum(x2 @ w_ff1 + b_ff1, 0.0) @ w_ff2 + b_ff2
    return _ref_ln(ff + r2, g3, be3)


# ----------------------------------- main ------------------------------------ #
if __name__ == "__main__":
    key = jax.random.PRNGKey(0)
    k_x, k_e, k_p = jax.random.split(key, 3)

    B, S_DEC, S_ENC = 2, 8, 8
    x = jax.random.normal(k_x, (B, S_DEC, D_MODEL), jnp.float32)
    encoder_out = jax.random.normal(k_e, (B, S_ENC, D_MODEL), jnp.float32)

    causal = jnp.tril(jnp.ones((S_DEC, S_DEC), jnp.float32))
    decoder_mask = jnp.broadcast_to(causal, (B, S_DEC, S_DEC))
    enc_dec_mask = jnp.ones((B, S_DEC, S_ENC), jnp.float32)

    params = init_params(k_p)

    out = decoder_layer(x, encoder_out, decoder_mask, enc_dec_mask, params)
    out = jax.block_until_ready(out)

    ref = decoder_layer_ref(x, encoder_out, decoder_mask, enc_dec_mask, params)

    assert out.shape == (B, S_DEC, D_MODEL)
    assert bool(jnp.all(jnp.isfinite(out)))
    # bf16 MXU operands (f32 accumulation) -> allow slightly looser tolerance.
    assert bool(jnp.allclose(out, ref, atol=2e-2, rtol=2e-2)), "mismatch vs JAX reference"
    print("KERNEL_OK")
</pallas_src>

<mosaic_0001>
module attributes {stable_mosaic.version = 11 : i64} {
  func.func @decoder_layer_kernel(%arg0: memref<16x32xf32, #tpu.memory_space<vmem>>, %arg1: memref<16x32xf32, #tpu.memory_space<vmem>>, %arg2: memref<2x8x8xi8, #tpu.memory_space<vmem>>, %arg3: memref<2x8x8xi8, #tpu.memory_space<vmem>>, %arg4: memref<32x96xf32, #tpu.memory_space<vmem>>, %arg5: memref<32x32xf32, #tpu.memory_space<vmem>>, %arg6: memref<32x32xf32, #tpu.memory_space<vmem>>, %arg7: memref<32x64xf32, #tpu.memory_space<vmem>>, %arg8: memref<32x32xf32, #tpu.memory_space<vmem>>, %arg9: memref<32x64xf32, #tpu.memory_space<vmem>>, %arg10: memref<64x32xf32, #tpu.memory_space<vmem>>, %arg11: memref<1x96xf32, #tpu.memory_space<vmem>>, %arg12: memref<2x64xf32, #tpu.memory_space<vmem>>, %arg13: memref<10x32xf32, #tpu.memory_space<vmem>>, %arg14: memref<16x32xf32, #tpu.memory_space<vmem>>) attributes {dimension_semantics = [], scalar_prefetch = 0 : i64, scratch_operands = 0 : i64, tpu.core_type = #tpu.core_type<tc>} {
    %c0 = arith.constant 0 : index
    %c0_0 = arith.constant 0 : index
    %0 = vector.load %arg13[%c0, %c0_0] : memref<10x32xf32, #tpu.memory_space<vmem>>, vector<10x32xf32>
    %1 = vector.extract_strided_slice %0 {offsets = [0, 0], sizes = [1, 32], strides = [1, 1]} : vector<10x32xf32> to vector<1x32xf32>
    %2 = vector.extract_strided_slice %0 {offsets = [1, 0], sizes = [1, 32], strides = [1, 1]} : vector<10x32xf32> to vector<1x32xf32>
    %3 = vector.extract_strided_slice %0 {offsets = [2, 0], sizes = [1, 32], strides = [1, 1]} : vector<10x32xf32> to vector<1x32xf32>
    %4 = vector.extract_strided_slice %0 {offsets = [3, 0], sizes = [1, 32], strides = [1, 1]} : vector<10x32xf32> to vector<1x32xf32>
    %5 = vector.extract_strided_slice %0 {offsets = [4, 0], sizes = [1, 32], strides = [1, 1]} : vector<10x32xf32> to vector<1x32xf32>
    %6 = vector.extract_strided_slice %0 {offsets = [5, 0], sizes = [1, 32], strides = [1, 1]} : vector<10x32xf32> to vector<1x32xf32>
    %7 = vector.extract_strided_slice %0 {offsets = [6, 0], sizes = [1, 32], strides = [1, 1]} : vector<10x32xf32> to vector<1x32xf32>
    %8 = vector.extract_strided_slice %0 {offsets = [7, 0], sizes = [1, 32], strides = [1, 1]} : vector<10x32xf32> to vector<1x32xf32>
    %9 = vector.extract_strided_slice %0 {offsets = [8, 0], sizes = [1, 32], strides = [1, 1]} : vector<10x32xf32> to vector<1x32xf32>
    %10 = vector.extract_strided_slice %0 {offsets = [9, 0], sizes = [1, 32], strides = [1, 1]} : vector<10x32xf32> to vector<1x32xf32>
    %c0_1 = arith.constant 0 : index
    %c0_2 = arith.constant 0 : index
    %11 = vector.load %arg12[%c0_1, %c0_2] : memref<2x64xf32, #tpu.memory_space<vmem>>, vector<2x64xf32>
    %12 = vector.extract_strided_slice %11 {offsets = [0, 0], sizes = [1, 64], strides = [1, 1]} : vector<2x64xf32> to vector<1x64xf32>
    %13 = vector.extract_strided_slice %11 {offsets = [1, 0], sizes = [1, 64], strides = [1, 1]} : vector<2x64xf32> to vector<1x64xf32>
    %c0_3 = arith.constant 0 : index
    %c0_4 = arith.constant 0 : index
    %14 = vector.load %arg0[%c0_3, %c0_4] : memref<16x32xf32, #tpu.memory_space<vmem>>, vector<16x32xf32>
    %c0_5 = arith.constant 0 : index
    %c0_6 = arith.constant 0 : index
    %15 = vector.load %arg1[%c0_5, %c0_6] : memref<16x32xf32, #tpu.memory_space<vmem>>, vector<16x32xf32>
    %c0_7 = arith.constant 0 : index
    %c0_8 = arith.constant 0 : index
    %c0_9 = arith.constant 0 : index
    %16 = vector.load %arg2[%c0_7, %c0_8, %c0_9] : memref<2x8x8xi8, #tpu.memory_space<vmem>>, vector<2x8x8xi8>
    %17 = arith.sitofp %16 : vector<2x8x8xi8> to vector<2x8x8xf32>
    %cst = arith.constant 0.000000e+00 : f32
    %18 = vector.broadcast %cst : f32 to vector<2x8x8xf32>
    %19 = arith.cmpf ogt, %17, %18 : vector<2x8x8xf32>
    %cst_10 = arith.constant 0.000000e+00 : f32
    %cst_11 = arith.constant -1.000000e+09 : f32
    %20 = vector.broadcast %cst_10 : f32 to vector<2x8x8xf32>
    %21 = vector.broadcast %cst_11 : f32 to vector<2x8x8xf32>
    %22 = arith.select %19, %20, %21 : vector<2x8x8xi1>, vector<2x8x8xf32>
    %c0_12 = arith.constant 0 : index
    %c0_13 = arith.constant 0 : index
    %c0_14 = arith.constant 0 : index
    %23 = vector.load %arg3[%c0_12, %c0_13, %c0_14] : memref<2x8x8xi8, #tpu.memory_space<vmem>>, vector<2x8x8xi8>
    %24 = arith.sitofp %23 : vector<2x8x8xi8> to vector<2x8x8xf32>
    %cst_15 = arith.constant 0.000000e+00 : f32
    %25 = vector.broadcast %cst_15 : f32 to vector<2x8x8xf32>
    %26 = arith.cmpf ogt, %24, %25 : vector<2x8x8xf32>
    %cst_16 = arith.constant 0.000000e+00 : f32
    %cst_17 = arith.constant -1.000000e+09 : f32
    %27 = vector.broadcast %cst_16 : f32 to vector<2x8x8xf32>
    %28 = vector.broadcast %cst_17 : f32 to vector<2x8x8xf32>
    %29 = arith.select %26, %27, %28 : vector<2x8x8xi1>, vector<2x8x8xf32>
    %30 = arith.truncf %14 : vector<16x32xf32> to vector<16x32xbf16>
    %c0_18 = arith.constant 0 : index
    %c0_19 = arith.constant 0 : index
    %31 = vector.load %arg4[%c0_18, %c0_19] : memref<32x96xf32, #tpu.memory_space<vmem>>, vector<32x96xf32>
    %32 = arith.truncf %31 : vector<32x96xf32> to vector<32x96xbf16>
    %cst_20 = arith.constant dense<0.000000e+00> : vector<16x96xf32>
    %33 = tpu.matmul %30, %32, %cst_20 {dimension_numbers = #tpu.dot_dimension_numbers<[1], [0], [0], [1], [0, 0, 1, 1], [], []>} : vector<16x32xbf16>, vector<32x96xbf16>, vector<16x96xf32> -> vector<16x96xf32>
    %c0_21 = arith.constant 0 : index
    %c0_22 = arith.constant 0 : index
    %34 = vector.load %arg11[%c0_21, %c0_22] : memref<1x96xf32, #tpu.memory_space<vmem>>, vector<1x96xf32>
    %35 = vector.broadcast %34 : vector<1x96xf32> to vector<16x96xf32>
    %36 = arith.addf %33, %35 : vector<16x96xf32>
    %c0_23 = arith.constant 0 : index
    %c0_24 = arith.constant 0 : index
    %37 = vector.load %arg5[%c0_23, %c0_24] : memref<32x32xf32, #tpu.memory_space<vmem>>, vector<32x32xf32>
    %38 = arith.truncf %37 : vector<32x32xf32> to vector<32x32xbf16>
    %39 = vector.extract_strided_slice %36 {offsets = [0, 0], sizes = [8, 32], strides = [1, 1]} : vector<16x96xf32> to vector<8x32xf32>
    %40 = vector.extract_strided_slice %36 {offsets = [0, 32], sizes = [8, 32], strides = [1, 1]} : vector<16x96xf32> to vector<8x32xf32>
    %41 = vector.extract_strided_slice %36 {offsets = [0, 64], sizes = [8, 32], strides = [1, 1]} : vector<16x96xf32> to vector<8x32xf32>
    %42 = vector.extract_strided_slice %22 {offsets = [0, 0, 0], sizes = [1, 8, 8], strides = [1, 1, 1]} : vector<2x8x8xf32> to vector<1x8x8xf32>
    %43 = vector.shape_cast %42 : vector<1x8x8xf32> to vector<8x8xf32>
    %44 = arith.truncf %39 : vector<8x32xf32> to vector<8x32xbf16>
    %45 = arith.truncf %40 : vector<8x32xf32> to vector<8x32xbf16>
    %46 = arith.truncf %41 : vector<8x32xf32> to vector<8x32xbf16>
    %cst_25 = arith.constant 0.000000e+00 : f32
    %47 = vector.broadcast %cst_25 : f32 to vector<8x32xf32>
    %48 = vector.extract_strided_slice %44 {offsets = [0, 0], sizes = [8, 8], strides = [1, 1]} : vector<8x32xbf16> to vector<8x8xbf16>
    %49 = vector.extract_strided_slice %45 {offsets = [0, 0], sizes = [8, 8], strides = [1, 1]} : vector<8x32xbf16> to vector<8x8xbf16>
    "tpu.trace_start"() <{level = 10 : i32, message = "qd,kd->qk"}> : () -> ()
    %cst_26 = arith.constant dense<0.000000e+00> : vector<8x8xf32>
    %50 = tpu.matmul %48, %49, %cst_26 {dimension_numbers = #tpu.dot_dimension_numbers<[1], [1], [0], [0], [0, 0, 1, 0], [], []>} : vector<8x8xbf16>, vector<8x8xbf16>, vector<8x8xf32> -> vector<8x8xf32>
    "tpu.trace_stop"() : () -> ()
    %51 = arith.addf %50, %43 : vector<8x8xf32>
    %cst_27 = arith.constant dense<0xFF800000> : vector<8xf32>
    %52 = vector.multi_reduction <maximumf>, %51, %cst_27 [1] : vector<8x8xf32> to vector<8xf32>
    %53 = vector.shape_cast %52 : vector<8xf32> to vector<8x1xf32>
    %54 = vector.broadcast %53 : vector<8x1xf32> to vector<8x8xf32>
    %55 = arith.subf %51, %54 : vector<8x8xf32>
    %56 = math.exp %55 : vector<8x8xf32>
    %cst_28 = arith.constant dense<0.000000e+00> : vector<8xf32>
    %57 = vector.multi_reduction <add>, %56, %cst_28 [1] : vector<8x8xf32> to vector<8xf32>
    %58 = vector.shape_cast %57 : vector<8xf32> to vector<8x1xf32>
    %59 = tpu.reciprocal %58 {approx = true} : vector<8x1xf32> -> vector<8x1xf32>
    %60 = vector.broadcast %59 : vector<8x1xf32> to vector<8x8xf32>
    %61 = arith.mulf %56, %60 : vector<8x8xf32>
    %62 = arith.truncf %61 : vector<8x8xf32> to vector<8x8xbf16>
    %63 = vector.extract_strided_slice %46 {offsets = [0, 0], sizes = [8, 8], strides = [1, 1]} : vector<8x32xbf16> to vector<8x8xbf16>
    %cst_29 = arith.constant dense<0.000000e+00> : vector<8x8xf32>
    %64 = tpu.matmul %62, %63, %cst_29 {dimension_numbers = #tpu.dot_dimension_numbers<[1], [0], [0], [1], [0, 0, 1, 1], [], []>} : vector<8x8xbf16>, vector<8x8xbf16>, vector<8x8xf32> -> vector<8x8xf32>
    %65 = arith.truncf %64 : vector<8x8xf32> to vector<8x8xbf16>
    %66 = vector.extract_strided_slice %38 {offsets = [0, 0], sizes = [8, 32], strides = [1, 1]} : vector<32x32xbf16> to vector<8x32xbf16>
    %cst_30 = arith.constant dense<0.000000e+00> : vector<8x32xf32>
    %67 = tpu.matmul %65, %66, %cst_30 {dimension_numbers = #tpu.dot_dimension_numbers<[1], [0], [0], [1], [0, 0, 1, 1], [], []>} : vector<8x8xbf16>, vector<8x32xbf16>, vector<8x32xf32> -> vector<8x32xf32>
    %68 = arith.addf %47, %67 : vector<8x32xf32>
    %69 = vector.extract_strided_slice %44 {offsets = [0, 8], sizes = [8, 8], strides = [1, 1]} : vector<8x32xbf16> to vector<8x8xbf16>
    %70 = vector.extract_strided_slice %45 {offsets = [0, 8], sizes = [8, 8], strides = [1, 1]} : vector<8x32xbf16> to vector<8x8xbf16>
    "tpu.trace_start"() <{level = 10 : i32, message = "qd,kd->qk"}> : () -> ()
    %cst_31 = arith.constant dense<0.000000e+00> : vector<8x8xf32>
    %71 = tpu.matmul %69, %70, %cst_31 {dimension_numbers = #tpu.dot_dimension_numbers<[1], [1], [0], [0], [0, 0, 1, 0], [], []>} : vector<8x8xbf16>, vector<8x8xbf16>, vector<8x8xf32> -> vector<8x8xf32>
    "tpu.trace_stop"() : () -> ()
    %72 = arith.addf %71, %43 : vector<8x8xf32>
    %cst_32 = arith.constant dense<0xFF800000> : vector<8xf32>
    %73 = vector.multi_reduction <maximumf>, %72, %cst_32 [1] : vector<8x8xf32> to vector<8xf32>
    %74 = vector.shape_cast %73 : vector<8xf32> to vector<8x1xf32>
    %75 = vector.broadcast %74 : vector<8x1xf32> to vector<8x8xf32>
    %76 = arith.subf %72, %75 : vector<8x8xf32>
    %77 = math.exp %76 : vector<8x8xf32>
    %cst_33 = arith.constant dense<0.000000e+00> : vector<8xf32>
    %78 = vector.multi_reduction <add>, %77, %cst_33 [1] : vector<8x8xf32> to vector<8xf32>
    %79 = vector.shape_cast %78 : vector<8xf32> to vector<8x1xf32>
    %80 = tpu.reciprocal %79 {approx = true} : vector<8x1xf32> -> vector<8x1xf32>
    %81 = vector.broadcast %80 : vector<8x1xf32> to vector<8x8xf32>
    %82 = arith.mulf %77, %81 : vector<8x8xf32>
    %83 = arith.truncf %82 : vector<8x8xf32> to vector<8x8xbf16>
    %84 = vector.extract_strided_slice %46 {offsets = [0, 8], sizes = [8, 8], strides = [1, 1]} : vector<8x32xbf16> to vector<8x8xbf16>
    %cst_34 = arith.constant dense<0.000000e+00> : vector<8x8xf32>
    %85 = tpu.matmul %83, %84, %cst_34 {dimension_numbers = #tpu.dot_dimension_numbers<[1], [0], [0], [1], [0, 0, 1, 1], [], []>} : vector<8x8xbf16>, vector<8x8xbf16>, vector<8x8xf32> -> vector<8x8xf32>
    %86 = arith.truncf %85 : vector<8x8xf32> to vector<8x8xbf16>
    %87 = vector.extract_strided_slice %38 {offsets = [8, 0], sizes = [8, 32], strides = [1, 1]} : vector<32x32xbf16> to vector<8x32xbf16>
    %cst_35 = arith.constant dense<0.000000e+00> : vector<8x32xf32>
    %88 = tpu.matmul %86, %87, %cst_35 {dimension_numbers = #tpu.dot_dimension_numbers<[1], [0], [0], [1], [0, 0, 1, 1], [], []>} : vector<8x8xbf16>, vector<8x32xbf16>, vector<8x32xf32> -> vector<8x32xf32>
    %89 = arith.addf %68, %88 : vector<8x32xf32>
    %90 = vector.extract_strided_slice %44 {offsets = [0, 16], sizes = [8, 8], strides = [1, 1]} : vector<8x32xbf16> to vector<8x8xbf16>
    %91 = vector.extract_strided_slice %45 {offsets = [0, 16], sizes = [8, 8], strides = [1, 1]} : vector<8x32xbf16> to vector<8x8xbf16>
    "tpu.trace_start"() <{level = 10 : i32, message = "qd,kd->qk"}> : () -> ()
    %cst_36 = arith.constant dense<0.000000e+00> : vector<8x8xf32>
    %92 = tpu.matmul %90, %91, %cst_36 {dimension_numbers = #tpu.dot_dimension_numbers<[1], [1], [0], [0], [0, 0, 1, 0], [], []>} : vector<8x8xbf16>, vector<8x8xbf16>, vector<8x8xf32> -> vector<8x8xf32>
    "tpu.trace_stop"() : () -> ()
    %93 = arith.addf %92, %43 : vector<8x8xf32>
    %cst_37 = arith.constant dense<0xFF800000> : vector<8xf32>
    %94 = vector.multi_reduction <maximumf>, %93, %cst_37 [1] : vector<8x8xf32> to vector<8xf32>
    %95 = vector.shape_cast %94 : vector<8xf32> to vector<8x1xf32>
    %96 = vector.broadcast %95 : vector<8x1xf32> to vector<8x8xf32>
    %97 = arith.subf %93, %96 : vector<8x8xf32>
    %98 = math.exp %97 : vector<8x8xf32>
    %cst_38 = arith.constant dense<0.000000e+00> : vector<8xf32>
    %99 = vector.multi_reduction <add>, %98, %cst_38 [1] : vector<8x8xf32> to vector<8xf32>
    %100 = vector.shape_cast %99 : vector<8xf32> to vector<8x1xf32>
    %101 = tpu.reciprocal %100 {approx = true} : vector<8x1xf32> -> vector<8x1xf32>
    %102 = vector.broadcast %101 : vector<8x1xf32> to vector<8x8xf32>
    %103 = arith.mulf %98, %102 : vector<8x8xf32>
    %104 = arith.truncf %103 : vector<8x8xf32> to vector<8x8xbf16>
    %105 = vector.extract_strided_slice %46 {offsets = [0, 16], sizes = [8, 8], strides = [1, 1]} : vector<8x32xbf16> to vector<8x8xbf16>
    %cst_39 = arith.constant dense<0.000000e+00> : vector<8x8xf32>
    %106 = tpu.matmul %104, %105, %cst_39 {dimension_numbers = #tpu.dot_dimension_numbers<[1], [0], [0], [1], [0, 0, 1, 1], [], []>} : vector<8x8xbf16>, vector<8x8xbf16>, vector<8x8xf32> -> vector<8x8xf32>
    %107 = arith.truncf %106 : vector<8x8xf32> to vector<8x8xbf16>
    %108 = vector.extract_strided_slice %38 {offsets = [16, 0], sizes = [8, 32], strides = [1, 1]} : vector<32x32xbf16> to vector<8x32xbf16>
    %cst_40 = arith.constant dense<0.000000e+00> : vector<8x32xf32>
    %109 = tpu.matmul %107, %108, %cst_40 {dimension_numbers = #tpu.dot_dimension_numbers<[1], [0], [0], [1], [0, 0, 1, 1], [], []>} : vector<8x8xbf16>, vector<8x32xbf16>, vector<8x32xf32> -> vector<8x32xf32>
    %110 = arith.addf %89, %109 : vector<8x32xf32>
    %111 = vector.extract_strided_slice %44 {offsets = [0, 24], sizes = [8, 8], strides = [1, 1]} : vector<8x32xbf16> to vector<8x8xbf16>
    %112 = vector.extract_strided_slice %45 {offsets = [0, 24], sizes = [8, 8], strides = [1, 1]} : vector<8x32xbf16> to vector<8x8xbf16>
    "tpu.trace_start"() <{level = 10 : i32, message = "qd,kd->qk"}> : () -> ()
    %cst_41 = arith.constant dense<0.000000e+00> : vector<8x8xf32>
    %113 = tpu.matmul %111, %112, %cst_41 {dimension_numbers = #tpu.dot_dimension_numbers<[1], [1], [0], [0], [0, 0, 1, 0], [], []>} : vector<8x8xbf16>, vector<8x8xbf16>, vector<8x8xf32> -> vector<8x8xf32>
    "tpu.trace_stop"() : () -> ()
    %114 = arith.addf %113, %43 : vector<8x8xf32>
    %cst_42 = arith.constant dense<0xFF800000> : vector<8xf32>
    %115 = vector.multi_reduction <maximumf>, %114, %cst_42 [1] : vector<8x8xf32> to vector<8xf32>
    %116 = vector.shape_cast %115 : vector<8xf32> to vector<8x1xf32>
    %117 = vector.broadcast %116 : vector<8x1xf32> to vector<8x8xf32>
    %118 = arith.subf %114, %117 : vector<8x8xf32>
    %119 = math.exp %118 : vector<8x8xf32>
    %cst_43 = arith.constant dense<0.000000e+00> : vector<8xf32>
    %120 = vector.multi_reduction <add>, %119, %cst_43 [1] : vector<8x8xf32> to vector<8xf32>
    %121 = vector.shape_cast %120 : vector<8xf32> to vector<8x1xf32>
    %122 = tpu.reciprocal %121 {approx = true} : vector<8x1xf32> -> vector<8x1xf32>
    %123 = vector.broadcast %122 : vector<8x1xf32> to vector<8x8xf32>
    %124 = arith.mulf %119, %123 : vector<8x8xf32>
    %125 = arith.truncf %124 : vector<8x8xf32> to vector<8x8xbf16>
    %126 = vector.extract_strided_slice %46 {offsets = [0, 24], sizes = [8, 8], strides = [1, 1]} : vector<8x32xbf16> to vector<8x8xbf16>
    %cst_44 = arith.constant dense<0.000000e+00> : vector<8x8xf32>
    %127 = tpu.matmul %125, %126, %cst_44 {dimension_numbers = #tpu.dot_dimension_numbers<[1], [0], [0], [1], [0, 0, 1, 1], [], []>} : vector<8x8xbf16>, vector<8x8xbf16>, vector<8x8xf32> -> vector<8x8xf32>
    %128 = arith.truncf %127 : vector<8x8xf32> to vector<8x8xbf16>
    %129 = vector.extract_strided_slice %38 {offsets = [24, 0], sizes = [8, 32], strides = [1, 1]} : vector<32x32xbf16> to vector<8x32xbf16>
    %cst_45 = arith.constant dense<0.000000e+00> : vector<8x32xf32>
    %130 = tpu.matmul %128, %129, %cst_45 {dimension_numbers = #tpu.dot_dimension_numbers<[1], [0], [0], [1], [0, 0, 1, 1], [], []>} : vector<8x8xbf16>, vector<8x32xbf16>, vector<8x32xf32> -> vector<8x32xf32>
    %131 = arith.addf %110, %130 : vector<8x32xf32>
    %132 = vector.extract_strided_slice %36 {offsets = [8, 0], sizes = [8, 32], strides = [1, 1]} : vector<16x96xf32> to vector<8x32xf32>
    %133 = vector.extract_strided_slice %36 {offsets = [8, 32], sizes = [8, 32], strides = [1, 1]} : vector<16x96xf32> to vector<8x32xf32>
    %134 = vector.extract_strided_slice %36 {offsets = [8, 64], sizes = [8, 32], strides = [1, 1]} : vector<16x96xf32> to vector<8x32xf32>
    %135 = vector.extract_strided_slice %22 {offsets = [1, 0, 0], sizes = [1, 8, 8], strides = [1, 1, 1]} : vector<2x8x8xf32> to vector<1x8x8xf32>
    %136 = vector.shape_cast %135 : vector<1x8x8xf32> to vector<8x8xf32>
    %137 = arith.truncf %132 : vector<8x32xf32> to vector<8x32xbf16>
    %138 = arith.truncf %133 : vector<8x32xf32> to vector<8x32xbf16>
    %139 = arith.truncf %134 : vector<8x32xf32> to vector<8x32xbf16>
    %cst_46 = arith.constant 0.000000e+00 : f32
    %140 = vector.broadcast %cst_46 : f32 to vector<8x32xf32>
    %141 = vector.extract_strided_slice %137 {offsets = [0, 0], sizes = [8, 8], strides = [1, 1]} : vector<8x32xbf16> to vector<8x8xbf16>
    %142 = vector.extract_strided_slice %138 {offsets = [0, 0], sizes = [8, 8], strides = [1, 1]} : vector<8x32xbf16> to vector<8x8xbf16>
    "tpu.trace_start"() <{level = 10 : i32, message = "qd,kd->qk"}> : () -> ()
    %cst_47 = arith.constant dense<0.000000e+00> : vector<8x8xf32>
    %143 = tpu.matmul %141, %142, %cst_47 {dimension_numbers = #tpu.dot_dimension_numbers<[1], [1], [0], [0], [0, 0, 1, 0], [], []>} : vector<8x8xbf16>, vector<8x8xbf16>, vector<8x8xf32> -> vector<8x8xf32>
    "tpu.trace_stop"() : () -> ()
    %144 = arith.addf %143, %136 : vector<8x8xf32>
    %cst_48 = arith.constant dense<0xFF800000> : vector<8xf32>
    %145 = vector.multi_reduction <maximumf>, %144, %cst_48 [1] : vector<8x8xf32> to vector<8xf32>
    %146 = vector.shape_cast %145 : vector<8xf32> to vector<8x1xf32>
    %147 = vector.broadcast %146 : vector<8x1xf32> to vector<8x8xf32>
    %148 = arith.subf %144, %147 : vector<8x8xf32>
    %149 = math.exp %148 : vector<8x8xf32>
    %cst_49 = arith.constant dense<0.000000e+00> : vector<8xf32>
    %150 = vector.multi_reduction <add>, %149, %cst_49 [1] : vector<8x8xf32> to vector<8xf32>
    %151 = vector.shape_cast %150 : vector<8xf32> to vector<8x1xf32>
    %152 = tpu.reciprocal %151 {approx = true} : vector<8x1xf32> -> vector<8x1xf32>
    %153 = vector.broadcast %152 : vector<8x1xf32> to vector<8x8xf32>
    %154 = arith.mulf %149, %153 : vector<8x8xf32>
    %155 = arith.truncf %154 : vector<8x8xf32> to vector<8x8xbf16>
    %156 = vector.extract_strided_slice %139 {offsets = [0, 0], sizes = [8, 8], strides = [1, 1]} : vector<8x32xbf16> to vector<8x8xbf16>
    %cst_50 = arith.constant dense<0.000000e+00> : vector<8x8xf32>
    %157 = tpu.matmul %155, %156, %cst_50 {dimension_numbers = #tpu.dot_dimension_numbers<[1], [0], [0], [1], [0, 0, 1, 1], [], []>} : vector<8x8xbf16>, vector<8x8xbf16>, vector<8x8xf32> -> vector<8x8xf32>
    %158 = arith.truncf %157 : vector<8x8xf32> to vector<8x8xbf16>
    %159 = vector.extract_strided_slice %38 {offsets = [0, 0], sizes = [8, 32], strides = [1, 1]} : vector<32x32xbf16> to vector<8x32xbf16>
    %cst_51 = arith.constant dense<0.000000e+00> : vector<8x32xf32>
    %160 = tpu.matmul %158, %159, %cst_51 {dimension_numbers = #tpu.dot_dimension_numbers<[1], [0], [0], [1], [0, 0, 1, 1], [], []>} : vector<8x8xbf16>, vector<8x32xbf16>, vector<8x32xf32> -> vector<8x32xf32>
    %161 = arith.addf %140, %160 : vector<8x32xf32>
    %162 = vector.extract_strided_slice %137 {offsets = [0, 8], sizes = [8, 8], strides = [1, 1]} : vector<8x32xbf16> to vector<8x8xbf16>
    %163 = vector.extract_strided_slice %138 {offsets = [0, 8], sizes = [8, 8], strides = [1, 1]} : vector<8x32xbf16> to vector<8x8xbf16>
    "tpu.trace_start"() <{level = 10 : i32, message = "qd,kd->qk"}> : () -> ()
    %cst_52 = arith.constant dense<0.000000e+00> : vector<8x8xf32>
    %164 = tpu.matmul %162, %163, %cst_52 {dimension_numbers = #tpu.dot_dimension_numbers<[1], [1], [0], [0], [0, 0, 1, 0], [], []>} : vector<8x8xbf16>, vector<8x8xbf16>, vector<8x8xf32> -> vector<8x8xf32>
    "tpu.trace_stop"() : () -> ()
    %165 = arith.addf %164, %136 : vector<8x8xf32>
    %cst_53 = arith.constant dense<0xFF800000> : vector<8xf32>
    %166 = vector.multi_reduction <maximumf>, %165, %cst_53 [1] : vector<8x8xf32> to vector<8xf32>
    %167 = vector.shape_cast %166 : vector<8xf32> to vector<8x1xf32>
    %168 = vector.broadcast %167 : vector<8x1xf32> to vector<8x8xf32>
    %169 = arith.subf %165, %168 : vector<8x8xf32>
    %170 = math.exp %169 : vector<8x8xf32>
    %cst_54 = arith.constant dense<0.000000e+00> : vector<8xf32>
    %171 = vector.multi_reduction <add>, %170, %cst_54 [1] : vector<8x8xf32> to vector<8xf32>
    %172 = vector.shape_cast %171 : vector<8xf32> to vector<8x1xf32>
    %173 = tpu.reciprocal %172 {approx = true} : vector<8x1xf32> -> vector<8x1xf32>
    %174 = vector.broadcast %173 : vector<8x1xf32> to vector<8x8xf32>
    %175 = arith.mulf %170, %174 : vector<8x8xf32>
    %176 = arith.truncf %175 : vector<8x8xf32> to vector<8x8xbf16>
    %177 = vector.extract_strided_slice %139 {offsets = [0, 8], sizes = [8, 8], strides = [1, 1]} : vector<8x32xbf16> to vector<8x8xbf16>
    %cst_55 = arith.constant dense<0.000000e+00> : vector<8x8xf32>
    %178 = tpu.matmul %176, %177, %cst_55 {dimension_numbers = #tpu.dot_dimension_numbers<[1], [0], [0], [1], [0, 0, 1, 1], [], []>} : vector<8x8xbf16>, vector<8x8xbf16>, vector<8x8xf32> -> vector<8x8xf32>
    %179 = arith.truncf %178 : vector<8x8xf32> to vector<8x8xbf16>
    %180 = vector.extract_strided_slice %38 {offsets = [8, 0], sizes = [8, 32], strides = [1, 1]} : vector<32x32xbf16> to vector<8x32xbf16>
    %cst_56 = arith.constant dense<0.000000e+00> : vector<8x32xf32>
    %181 = tpu.matmul %179, %180, %cst_56 {dimension_numbers = #tpu.dot_dimension_numbers<[1], [0], [0], [1], [0, 0, 1, 1], [], []>} : vector<8x8xbf16>, vector<8x32xbf16>, vector<8x32xf32> -> vector<8x32xf32>
    %182 = arith.addf %161, %181 : vector<8x32xf32>
    %183 = vector.extract_strided_slice %137 {offsets = [0, 16], sizes = [8, 8], strides = [1, 1]} : vector<8x32xbf16> to vector<8x8xbf16>
    %184 = vector.extract_strided_slice %138 {offsets = [0, 16], sizes = [8, 8], strides = [1, 1]} : vector<8x32xbf16> to vector<8x8xbf16>
    "tpu.trace_start"() <{level = 10 : i32, message = "qd,kd->qk"}> : () -> ()
    %cst_57 = arith.constant dense<0.000000e+00> : vector<8x8xf32>
    %185 = tpu.matmul %183, %184, %cst_57 {dimension_numbers = #tpu.dot_dimension_numbers<[1], [1], [0], [0], [0, 0, 1, 0], [], []>} : vector<8x8xbf16>, vector<8x8xbf16>, vector<8x8xf32> -> vector<8x8xf32>
    "tpu.trace_stop"() : () -> ()
    %186 = arith.addf %185, %136 : vector<8x8xf32>
    %cst_58 = arith.constant dense<0xFF800000> : vector<8xf32>
    %187 = vector.multi_reduction <maximumf>, %186, %cst_58 [1] : vector<8x8xf32> to vector<8xf32>
    %188 = vector.shape_cast %187 : vector<8xf32> to vector<8x1xf32>
    %189 = vector.broadcast %188 : vector<8x1xf32> to vector<8x8xf32>
    %190 = arith.subf %186, %189 : vector<8x8xf32>
    %191 = math.exp %190 : vector<8x8xf32>
    %cst_59 = arith.constant dense<0.000000e+00> : vector<8xf32>
    %192 = vector.multi_reduction <add>, %191, %cst_59 [1] : vector<8x8xf32> to vector<8xf32>
    %193 = vector.shape_cast %192 : vector<8xf32> to vector<8x1xf32>
    %194 = tpu.reciprocal %193 {approx = true} : vector<8x1xf32> -> vector<8x1xf32>
    %195 = vector.broadcast %194 : vector<8x1xf32> to vector<8x8xf32>
    %196 = arith.mulf %191, %195 : vector<8x8xf32>
    %197 = arith.truncf %196 : vector<8x8xf32> to vector<8x8xbf16>
    %198 = vector.extract_strided_slice %139 {offsets = [0, 16], sizes = [8, 8], strides = [1, 1]} : vector<8x32xbf16> to vector<8x8xbf16>
    %cst_60 = arith.constant dense<0.000000e+00> : vector<8x8xf32>
    %199 = tpu.matmul %197, %198, %cst_60 {dimension_numbers = #tpu.dot_dimension_numbers<[1], [0], [0], [1], [0, 0, 1, 1], [], []>} : vector<8x8xbf16>, vector<8x8xbf16>, vector<8x8xf32> -> vector<8x8xf32>
    %200 = arith.truncf %199 : vector<8x8xf32> to vector<8x8xbf16>
    %201 = vector.extract_strided_slice %38 {offsets = [16, 0], sizes = [8, 32], strides = [1, 1]} : vector<32x32xbf16> to vector<8x32xbf16>
    %cst_61 = arith.constant dense<0.000000e+00> : vector<8x32xf32>
    %202 = tpu.matmul %200, %201, %cst_61 {dimension_numbers = #tpu.dot_dimension_numbers<[1], [0], [0], [1], [0, 0, 1, 1], [], []>} : vector<8x8xbf16>, vector<8x32xbf16>, vector<8x32xf32> -> vector<8x32xf32>
    %203 = arith.addf %182, %202 : vector<8x32xf32>
    %204 = vector.extract_strided_slice %137 {offsets = [0, 24], sizes = [8, 8], strides = [1, 1]} : vector<8x32xbf16> to vector<8x8xbf16>
    %205 = vector.extract_strided_slice %138 {offsets = [0, 24], sizes = [8, 8], strides = [1, 1]} : vector<8x32xbf16> to vector<8x8xbf16>
    "tpu.trace_start"() <{level = 10 : i32, message = "qd,kd->qk"}> : () -> ()
    %cst_62 = arith.constant dense<0.000000e+00> : vector<8x8xf32>
    %206 = tpu.matmul %204, %205, %cst_62 {dimension_numbers = #tpu.dot_dimension_numbers<[1], [1], [0], [0], [0, 0, 1, 0], [], []>} : vector<8x8xbf16>, vector<8x8xbf16>, vector<8x8xf32> -> vector<8x8xf32>
    "tpu.trace_stop"() : () -> ()
    %207 = arith.addf %206, %136 : vector<8x8xf32>
    %cst_63 = arith.constant dense<0xFF800000> : vector<8xf32>
    %208 = vector.multi_reduction <maximumf>, %207, %cst_63 [1] : vector<8x8xf32> to vector<8xf32>
    %209 = vector.shape_cast %208 : vector<8xf32> to vector<8x1xf32>
    %210 = vector.broadcast %209 : vector<8x1xf32> to vector<8x8xf32>
    %211 = arith.subf %207, %210 : vector<8x8xf32>
    %212 = math.exp %211 : vector<8x8xf32>
    %cst_64 = arith.constant dense<0.000000e+00> : vector<8xf32>
    %213 = vector.multi_reduction <add>, %212, %cst_64 [1] : vector<8x8xf32> to vector<8xf32>
    %214 = vector.shape_cast %213 : vector<8xf32> to vector<8x1xf32>
    %215 = tpu.reciprocal %214 {approx = true} : vector<8x1xf32> -> vector<8x1xf32>
    %216 = vector.broadcast %215 : vector<8x1xf32> to vector<8x8xf32>
    %217 = arith.mulf %212, %216 : vector<8x8xf32>
    %218 = arith.truncf %217 : vector<8x8xf32> to vector<8x8xbf16>
    %219 = vector.extract_strided_slice %139 {offsets = [0, 24], sizes = [8, 8], strides = [1, 1]} : vector<8x32xbf16> to vector<8x8xbf16>
    %cst_65 = arith.constant dense<0.000000e+00> : vector<8x8xf32>
    %220 = tpu.matmul %218, %219, %cst_65 {dimension_numbers = #tpu.dot_dimension_numbers<[1], [0], [0], [1], [0, 0, 1, 1], [], []>} : vector<8x8xbf16>, vector<8x8xbf16>, vector<8x8xf32> -> vector<8x8xf32>
    %221 = arith.truncf %220 : vector<8x8xf32> to vector<8x8xbf16>
    %222 = vector.extract_strided_slice %38 {offsets = [24, 0], sizes = [8, 32], strides = [1, 1]} : vector<32x32xbf16> to vector<8x32xbf16>
    %cst_66 = arith.constant dense<0.000000e+00> : vector<8x32xf32>
    %223 = tpu.matmul %221, %222, %cst_66 {dimension_numbers = #tpu.dot_dimension_numbers<[1], [0], [0], [1], [0, 0, 1, 1], [], []>} : vector<8x8xbf16>, vector<8x32xbf16>, vector<8x32xf32> -> vector<8x32xf32>
    %224 = arith.addf %203, %223 : vector<8x32xf32>
    %225 = tpu.concatenate %131, %224 in 0 : vector<8x32xf32>, vector<8x32xf32> -> vector<16x32xf32>
    %226 = vector.broadcast %1 : vector<1x32xf32> to vector<16x32xf32>
    %227 = arith.addf %225, %226 : vector<16x32xf32>
    %228 = arith.addf %14, %227 : vector<16x32xf32>
    %cst_67 = arith.constant dense<0.000000e+00> : vector<16xf32>
    %229 = vector.multi_reduction <add>, %228, %cst_67 [1] : vector<16x32xf32> to vector<16xf32>
    %230 = vector.shape_cast %229 : vector<16xf32> to vector<16x1xf32>
    %cst_68 = arith.constant 3.200000e+01 : f32
    %231 = vector.broadcast %cst_68 : f32 to vector<16x1xf32>
    %232 = arith.divf %230, %231 : vector<16x1xf32>
    %233 = vector.broadcast %232 : vector<16x1xf32> to vector<16x32xf32>
    %234 = arith.subf %228, %233 : vector<16x32xf32>
    %235 = arith.mulf %234, %234 : vector<16x32xf32>
    %cst_69 = arith.constant dense<0.000000e+00> : vector<16xf32>
    %236 = vector.multi_reduction <add>, %235, %cst_69 [1] : vector<16x32xf32> to vector<16xf32>
    %237 = vector.shape_cast %236 : vector<16xf32> to vector<16x1xf32>
    %cst_70 = arith.constant 3.200000e+01 : f32
    %238 = vector.broadcast %cst_70 : f32 to vector<16x1xf32>
    %239 = arith.divf %237, %238 : vector<16x1xf32>
    %cst_71 = arith.constant 9.99999974E-6 : f32
    %240 = vector.broadcast %cst_71 : f32 to vector<16x1xf32>
    %241 = arith.addf %239, %240 : vector<16x1xf32>
    %242 = math.rsqrt %241 : vector<16x1xf32>
    %243 = vector.broadcast %242 : vector<16x1xf32> to vector<16x32xf32>
    %244 = arith.mulf %234, %243 : vector<16x32xf32>
    %245 = vector.broadcast %2 : vector<1x32xf32> to vector<16x32xf32>
    %246 = arith.mulf %244, %245 : vector<16x32xf32>
    %247 = vector.broadcast %3 : vector<1x32xf32> to vector<16x32xf32>
    %248 = arith.addf %246, %247 : vector<16x32xf32>
    %249 = arith.truncf %15 : vector<16x32xf32> to vector<16x32xbf16>
    %c0_72 = arith.constant 0 : index
    %c0_73 = arith.constant 0 : index
    %250 = vector.load %arg7[%c0_72, %c0_73] : memref<32x64xf32, #tpu.memory_space<vmem>>, vector<32x64xf32>
    %251 = arith.truncf %250 : vector<32x64xf32> to vector<32x64xbf16>
    %cst_74 = arith.constant dense<0.000000e+00> : vector<16x64xf32>
    %252 = tpu.matmul %249, %251, %cst_74 {dimension_numbers = #tpu.dot_dimension_numbers<[1], [0], [0], [1], [0, 0, 1, 1], [], []>} : vector<16x32xbf16>, vector<32x64xbf16>, vector<16x64xf32> -> vector<16x64xf32>
    %253 = vector.broadcast %12 : vector<1x64xf32> to vector<16x64xf32>
    %254 = arith.addf %252, %253 : vector<16x64xf32>
    %255 = arith.truncf %248 : vector<16x32xf32> to vector<16x32xbf16>
    %c0_75 = arith.constant 0 : index
    %c0_76 = arith.constant 0 : index
    %256 = vector.load %arg6[%c0_75, %c0_76] : memref<32x32xf32, #tpu.memory_space<vmem>>, vector<32x32xf32>
    %257 = arith.truncf %256 : vector<32x32xf32> to vector<32x32xbf16>
    %cst_77 = arith.constant dense<0.000000e+00> : vector<16x32xf32>
    %258 = tpu.matmul %255, %257, %cst_77 {dimension_numbers = #tpu.dot_dimension_numbers<[1], [0], [0], [1], [0, 0, 1, 1], [], []>} : vector<16x32xbf16>, vector<32x32xbf16>, vector<16x32xf32> -> vector<16x32xf32>
    %259 = vector.broadcast %4 : vector<1x32xf32> to vector<16x32xf32>
    %260 = arith.addf %258, %259 : vector<16x32xf32>
    %c0_78 = arith.constant 0 : index
    %c0_79 = arith.constant 0 : index
    %261 = vector.load %arg8[%c0_78, %c0_79] : memref<32x32xf32, #tpu.memory_space<vmem>>, vector<32x32xf32>
    %262 = arith.truncf %261 : vector<32x32xf32> to vector<32x32xbf16>
    %263 = vector.extract_strided_slice %260 {offsets = [0, 0], sizes = [8, 32], strides = [1, 1]} : vector<16x32xf32> to vector<8x32xf32>
    %264 = vector.extract_strided_slice %254 {offsets = [0, 0], sizes = [8, 32], strides = [1, 1]} : vector<16x64xf32> to vector<8x32xf32>
    %265 = vector.extract_strided_slice %254 {offsets = [0, 32], sizes = [8, 32], strides = [1, 1]} : vector<16x64xf32> to vector<8x32xf32>
    %266 = vector.extract_strided_slice %29 {offsets = [0, 0, 0], sizes = [1, 8, 8], strides = [1, 1, 1]} : vector<2x8x8xf32> to vector<1x8x8xf32>
    %267 = vector.shape_cast %266 : vector<1x8x8xf32> to vector<8x8xf32>
    %268 = arith.truncf %263 : vector<8x32xf32> to vector<8x32xbf16>
    %269 = arith.truncf %264 : vector<8x32xf32> to vector<8x32xbf16>
    %270 = arith.truncf %265 : vector<8x32xf32> to vector<8x32xbf16>
    %cst_80 = arith.constant 0.000000e+00 : f32
    %271 = vector.broadcast %cst_80 : f32 to vector<8x32xf32>
    %272 = vector.extract_strided_slice %268 {offsets = [0, 0], sizes = [8, 8], strides = [1, 1]} : vector<8x32xbf16> to vector<8x8xbf16>
    %273 = vector.extract_strided_slice %269 {offsets = [0, 0], sizes = [8, 8], strides = [1, 1]} : vector<8x32xbf16> to vector<8x8xbf16>
    "tpu.trace_start"() <{level = 10 : i32, message = "qd,kd->qk"}> : () -> ()
    %cst_81 = arith.constant dense<0.000000e+00> : vector<8x8xf32>
    %274 = tpu.matmul %272, %273, %cst_81 {dimension_numbers = #tpu.dot_dimension_numbers<[1], [1], [0], [0], [0, 0, 1, 0], [], []>} : vector<8x8xbf16>, vector<8x8xbf16>, vector<8x8xf32> -> vector<8x8xf32>
    "tpu.trace_stop"() : () -> ()
    %275 = arith.addf %274, %267 : vector<8x8xf32>
    %cst_82 = arith.constant dense<0xFF800000> : vector<8xf32>
    %276 = vector.multi_reduction <maximumf>, %275, %cst_82 [1] : vector<8x8xf32> to vector<8xf32>
    %277 = vector.shape_cast %276 : vector<8xf32> to vector<8x1xf32>
    %278 = vector.broadcast %277 : vector<8x1xf32> to vector<8x8xf32>
    %279 = arith.subf %275, %278 : vector<8x8xf32>
    %280 = math.exp %279 : vector<8x8xf32>
    %cst_83 = arith.constant dense<0.000000e+00> : vector<8xf32>
    %281 = vector.multi_reduction <add>, %280, %cst_83 [1] : vector<8x8xf32> to vector<8xf32>
    %282 = vector.shape_cast %281 : vector<8xf32> to vector<8x1xf32>
    %283 = tpu.reciprocal %282 {approx = true} : vector<8x1xf32> -> vector<8x1xf32>
    %284 = vector.broadcast %283 : vector<8x1xf32> to vector<8x8xf32>
    %285 = arith.mulf %280, %284 : vector<8x8xf32>
    %286 = arith.truncf %285 : vector<8x8xf32> to vector<8x8xbf16>
    %287 = vector.extract_strided_slice %270 {offsets = [0, 0], sizes = [8, 8], strides = [1, 1]} : vector<8x32xbf16> to vector<8x8xbf16>
    %cst_84 = arith.constant dense<0.000000e+00> : vector<8x8xf32>
    %288 = tpu.matmul %286, %287, %cst_84 {dimension_numbers = #tpu.dot_dimension_numbers<[1], [0], [0], [1], [0, 0, 1, 1], [], []>} : vector<8x8xbf16>, vector<8x8xbf16>, vector<8x8xf32> -> vector<8x8xf32>
    %289 = arith.truncf %288 : vector<8x8xf32> to vector<8x8xbf16>
    %290 = vector.extract_strided_slice %262 {offsets = [0, 0], sizes = [8, 32], strides = [1, 1]} : vector<32x32xbf16> to vector<8x32xbf16>
    %cst_85 = arith.constant dense<0.000000e+00> : vector<8x32xf32>
    %291 = tpu.matmul %289, %290, %cst_85 {dimension_numbers = #tpu.dot_dimension_numbers<[1], [0], [0], [1], [0, 0, 1, 1], [], []>} : vector<8x8xbf16>, vector<8x32xbf16>, vector<8x32xf32> -> vector<8x32xf32>
    %292 = arith.addf %271, %291 : vector<8x32xf32>
    %293 = vector.extract_strided_slice %268 {offsets = [0, 8], sizes = [8, 8], strides = [1, 1]} : vector<8x32xbf16> to vector<8x8xbf16>
    %294 = vector.extract_strided_slice %269 {offsets = [0, 8], sizes = [8, 8], strides = [1, 1]} : vector<8x32xbf16> to vector<8x8xbf16>
    "tpu.trace_start"() <{level = 10 : i32, message = "qd,kd->qk"}> : () -> ()
    %cst_86 = arith.constant dense<0.000000e+00> : vector<8x8xf32>
    %295 = tpu.matmul %293, %294, %cst_86 {dimension_numbers = #tpu.dot_dimension_numbers<[1], [1], [0], [0], [0, 0, 1, 0], [], []>} : vector<8x8xbf16>, vector<8x8xbf16>, vector<8x8xf32> -> vector<8x8xf32>
    "tpu.trace_stop"() : () -> ()
    %296 = arith.addf %295, %267 : vector<8x8xf32>
    %cst_87 = arith.constant dense<0xFF800000> : vector<8xf32>
    %297 = vector.multi_reduction <maximumf>, %296, %cst_87 [1] : vector<8x8xf32> to vector<8xf32>
    %298 = vector.shape_cast %297 : vector<8xf32> to vector<8x1xf32>
    %299 = vector.broadcast %298 : vector<8x1xf32> to vector<8x8xf32>
    %300 = arith.subf %296, %299 : vector<8x8xf32>
    %301 = math.exp %300 : vector<8x8xf32>
    %cst_88 = arith.constant dense<0.000000e+00> : vector<8xf32>
    %302 = vector.multi_reduction <add>, %301, %cst_88 [1] : vector<8x8xf32> to vector<8xf32>
    %303 = vector.shape_cast %302 : vector<8xf32> to vector<8x1xf32>
    %304 = tpu.reciprocal %303 {approx = true} : vector<8x1xf32> -> vector<8x1xf32>
    %305 = vector.broadcast %304 : vector<8x1xf32> to vector<8x8xf32>
    %306 = arith.mulf %301, %305 : vector<8x8xf32>
    %307 = arith.truncf %306 : vector<8x8xf32> to vector<8x8xbf16>
    %308 = vector.extract_strided_slice %270 {offsets = [0, 8], sizes = [8, 8], strides = [1, 1]} : vector<8x32xbf16> to vector<8x8xbf16>
    %cst_89 = arith.constant dense<0.000000e+00> : vector<8x8xf32>
    %309 = tpu.matmul %307, %308, %cst_89 {dimension_numbers = #tpu.dot_dimension_numbers<[1], [0], [0], [1], [0, 0, 1, 1], [], []>} : vector<8x8xbf16>, vector<8x8xbf16>, vector<8x8xf32> -> vector<8x8xf32>
    %310 = arith.truncf %309 : vector<8x8xf32> to vector<8x8xbf16>
    %311 = vector.extract_strided_slice %262 {offsets = [8, 0], sizes = [8, 32], strides = [1, 1]} : vector<32x32xbf16> to vector<8x32xbf16>
    %cst_90 = arith.constant dense<0.000000e+00> : vector<8x32xf32>
    %312 = tpu.matmul %310, %311, %cst_90 {dimension_numbers = #tpu.dot_dimension_numbers<[1], [0], [0], [1], [0, 0, 1, 1], [], []>} : vector<8x8xbf16>, vector<8x32xbf16>, vector<8x32xf32> -> vector<8x32xf32>
    %313 = arith.addf %292, %312 : vector<8x32xf32>
    %314 = vector.extract_strided_slice %268 {offsets = [0, 16], sizes = [8, 8], strides = [1, 1]} : vector<8x32xbf16> to vector<8x8xbf16>
    %315 = vector.extract_strided_slice %269 {offsets = [0, 16], sizes = [8, 8], strides = [1, 1]} : vector<8x32xbf16> to vector<8x8xbf16>
    "tpu.trace_start"() <{level = 10 : i32, message = "qd,kd->qk"}> : () -> ()
    %cst_91 = arith.constant dense<0.000000e+00> : vector<8x8xf32>
    %316 = tpu.matmul %314, %315, %cst_91 {dimension_numbers = #tpu.dot_dimension_numbers<[1], [1], [0], [0], [0, 0, 1, 0], [], []>} : vector<8x8xbf16>, vector<8x8xbf16>, vector<8x8xf32> -> vector<8x8xf32>
    "tpu.trace_stop"() : () -> ()
    %317 = arith.addf %316, %267 : vector<8x8xf32>
    %cst_92 = arith.constant dense<0xFF800000> : vector<8xf32>
    %318 = vector.multi_reduction <maximumf>, %317, %cst_92 [1] : vector<8x8xf32> to vector<8xf32>
    %319 = vector.shape_cast %318 : vector<8xf32> to vector<8x1xf32>
    %320 = vector.broadcast %319 : vector<8x1xf32> to vector<8x8xf32>
    %321 = arith.subf %317, %320 : vector<8x8xf32>
    %322 = math.exp %321 : vector<8x8xf32>
    %cst_93 = arith.constant dense<0.000000e+00> : vector<8xf32>
    %323 = vector.multi_reduction <add>, %322, %cst_93 [1] : vector<8x8xf32> to vector<8xf32>
    %324 = vector.shape_cast %323 : vector<8xf32> to vector<8x1xf32>
    %325 = tpu.reciprocal %324 {approx = true} : vector<8x1xf32> -> vector<8x1xf32>
    %326 = vector.broadcast %325 : vector<8x1xf32> to vector<8x8xf32>
    %327 = arith.mulf %322, %326 : vector<8x8xf32>
    %328 = arith.truncf %327 : vector<8x8xf32> to vector<8x8xbf16>
    %329 = vector.extract_strided_slice %270 {offsets = [0, 16], sizes = [8, 8], strides = [1, 1]} : vector<8x32xbf16> to vector<8x8xbf16>
    %cst_94 = arith.constant dense<0.000000e+00> : vector<8x8xf32>
    %330 = tpu.matmul %328, %329, %cst_94 {dimension_numbers = #tpu.dot_dimension_numbers<[1], [0], [0], [1], [0, 0, 1, 1], [], []>} : vector<8x8xbf16>, vector<8x8xbf16>, vector<8x8xf32> -> vector<8x8xf32>
    %331 = arith.truncf %330 : vector<8x8xf32> to vector<8x8xbf16>
    %332 = vector.extract_strided_slice %262 {offsets = [16, 0], sizes = [8, 32], strides = [1, 1]} : vector<32x32xbf16> to vector<8x32xbf16>
    %cst_95 = arith.constant dense<0.000000e+00> : vector<8x32xf32>
    %333 = tpu.matmul %331, %332, %cst_95 {dimension_numbers = #tpu.dot_dimension_numbers<[1], [0], [0], [1], [0, 0, 1, 1], [], []>} : vector<8x8xbf16>, vector<8x32xbf16>, vector<8x32xf32> -> vector<8x32xf32>
    %334 = arith.addf %313, %333 : vector<8x32xf32>
    %335 = vector.extract_strided_slice %268 {offsets = [0, 24], sizes = [8, 8], strides = [1, 1]} : vector<8x32xbf16> to vector<8x8xbf16>
    %336 = vector.extract_strided_slice %269 {offsets = [0, 24], sizes = [8, 8], strides = [1, 1]} : vector<8x32xbf16> to vector<8x8xbf16>
    "tpu.trace_start"() <{level = 10 : i32, message = "qd,kd->qk"}> : () -> ()
    %cst_96 = arith.constant dense<0.000000e+00> : vector<8x8xf32>
    %337 = tpu.matmul %335, %336, %cst_96 {dimension_numbers = #tpu.dot_dimension_numbers<[1], [1], [0], [0], [0, 0, 1, 0], [], []>} : vector<8x8xbf16>, vector<8x8xbf16>, vector<8x8xf32> -> vector<8x8xf32>
    "tpu.trace_stop"() : () -> ()
    %338 = arith.addf %337, %267 : vector<8x8xf32>
    %cst_97 = arith.constant dense<0xFF800000> : vector<8xf32>
    %339 = vector.multi_reduction <maximumf>, %338, %cst_97 [1] : vector<8x8xf32> to vector<8xf32>
    %340 = vector.shape_cast %339 : vector<8xf32> to vector<8x1xf32>
    %341 = vector.broadcast %340 : vector<8x1xf32> to vector<8x8xf32>
    %342 = arith.subf %338, %341 : vector<8x8xf32>
    %343 = math.exp %342 : vector<8x8xf32>
    %cst_98 = arith.constant dense<0.000000e+00> : vector<8xf32>
    %344 = vector.multi_reduction <add>, %343, %cst_98 [1] : vector<8x8xf32> to vector<8xf32>
    %345 = vector.shape_cast %344 : vector<8xf32> to vector<8x1xf32>
    %346 = tpu.reciprocal %345 {approx = true} : vector<8x1xf32> -> vector<8x1xf32>
    %347 = vector.broadcast %346 : vector<8x1xf32> to vector<8x8xf32>
    %348 = arith.mulf %343, %347 : vector<8x8xf32>
    %349 = arith.truncf %348 : vector<8x8xf32> to vector<8x8xbf16>
    %350 = vector.extract_strided_slice %270 {offsets = [0, 24], sizes = [8, 8], strides = [1, 1]} : vector<8x32xbf16> to vector<8x8xbf16>
    %cst_99 = arith.constant dense<0.000000e+00> : vector<8x8xf32>
    %351 = tpu.matmul %349, %350, %cst_99 {dimension_numbers = #tpu.dot_dimension_numbers<[1], [0], [0], [1], [0, 0, 1, 1], [], []>} : vector<8x8xbf16>, vector<8x8xbf16>, vector<8x8xf32> -> vector<8x8xf32>
    %352 = arith.truncf %351 : vector<8x8xf32> to vector<8x8xbf16>
    %353 = vector.extract_strided_slice %262 {offsets = [24, 0], sizes = [8, 32], strides = [1, 1]} : vector<32x32xbf16> to vector<8x32xbf16>
    %cst_100 = arith.constant dense<0.000000e+00> : vector<8x32xf32>
    %354 = tpu.matmul %352, %353, %cst_100 {dimension_numbers = #tpu.dot_dimension_numbers<[1], [0], [0], [1], [0, 0, 1, 1], [], []>} : vector<8x8xbf16>, vector<8x32xbf16>, vector<8x32xf32> -> vector<8x32xf32>
    %355 = arith.addf %334, %354 : vector<8x32xf32>
    %356 = vector.extract_strided_slice %260 {offsets = [8, 0], sizes = [8, 32], strides = [1, 1]} : vector<16x32xf32> to vector<8x32xf32>
    %357 = vector.extract_strided_slice %254 {offsets = [8, 0], sizes = [8, 32], strides = [1, 1]} : vector<16x64xf32> to vector<8x32xf32>
    %358 = vector.extract_strided_slice %254 {offsets = [8, 32], sizes = [8, 32], strides = [1, 1]} : vector<16x64xf32> to vector<8x32xf32>
    %359 = vector.extract_strided_slice %29 {offsets = [1, 0, 0], sizes = [1, 8, 8], strides = [1, 1, 1]} : vector<2x8x8xf32> to vector<1x8x8xf32>
    %360 = vector.shape_cast %359 : vector<1x8x8xf32> to vector<8x8xf32>
    %361 = arith.truncf %356 : vector<8x32xf32> to vector<8x32xbf16>
    %362 = arith.truncf %357 : vector<8x32xf32> to vector<8x32xbf16>
    %363 = arith.truncf %358 : vector<8x32xf32> to vector<8x32xbf16>
    %cst_101 = arith.constant 0.000000e+00 : f32
    %364 = vector.broadcast %cst_101 : f32 to vector<8x32xf32>
    %365 = vector.extract_strided_slice %361 {offsets = [0, 0], sizes = [8, 8], strides = [1, 1]} : vector<8x32xbf16> to vector<8x8xbf16>
    %366 = vector.extract_strided_slice %362 {offsets = [0, 0], sizes = [8, 8], strides = [1, 1]} : vector<8x32xbf16> to vector<8x8xbf16>
    "tpu.trace_start"() <{level = 10 : i32, message = "qd,kd->qk"}> : () -> ()
    %cst_102 = arith.constant dense<0.000000e+00> : vector<8x8xf32>
    %367 = tpu.matmul %365, %366, %cst_102 {dimension_numbers = #tpu.dot_dimension_numbers<[1], [1], [0], [0], [0, 0, 1, 0], [], []>} : vector<8x8xbf16>, vector<8x8xbf16>, vector<8x8xf32> -> vector<8x8xf32>
    "tpu.trace_stop"() : () -> ()
    %368 = arith.addf %367, %360 : vector<8x8xf32>
    %cst_103 = arith.constant dense<0xFF800000> : vector<8xf32>
    %369 = vector.multi_reduction <maximumf>, %368, %cst_103 [1] : vector<8x8xf32> to vector<8xf32>
    %370 = vector.shape_cast %369 : vector<8xf32> to vector<8x1xf32>
    %371 = vector.broadcast %370 : vector<8x1xf32> to vector<8x8xf32>
    %372 = arith.subf %368, %371 : vector<8x8xf32>
    %373 = math.exp %372 : vector<8x8xf32>
    %cst_104 = arith.constant dense<0.000000e+00> : vector<8xf32>
    %374 = vector.multi_reduction <add>, %373, %cst_104 [1] : vector<8x8xf32> to vector<8xf32>
    %375 = vector.shape_cast %374 : vector<8xf32> to vector<8x1xf32>
    %376 = tpu.reciprocal %375 {approx = true} : vector<8x1xf32> -> vector<8x1xf32>
    %377 = vector.broadcast %376 : vector<8x1xf32> to vector<8x8xf32>
    %378 = arith.mulf %373, %377 : vector<8x8xf32>
    %379 = arith.truncf %378 : vector<8x8xf32> to vector<8x8xbf16>
    %380 = vector.extract_strided_slice %363 {offsets = [0, 0], sizes = [8, 8], strides = [1, 1]} : vector<8x32xbf16> to vector<8x8xbf16>
    %cst_105 = arith.constant dense<0.000000e+00> : vector<8x8xf32>
    %381 = tpu.matmul %379, %380, %cst_105 {dimension_numbers = #tpu.dot_dimension_numbers<[1], [0], [0], [1], [0, 0, 1, 1], [], []>} : vector<8x8xbf16>, vector<8x8xbf16>, vector<8x8xf32> -> vector<8x8xf32>
    %382 = arith.truncf %381 : vector<8x8xf32> to vector<8x8xbf16>
    %383 = vector.extract_strided_slice %262 {offsets = [0, 0], sizes = [8, 32], strides = [1, 1]} : vector<32x32xbf16> to vector<8x32xbf16>
    %cst_106 = arith.constant dense<0.000000e+00> : vector<8x32xf32>
    %384 = tpu.matmul %382, %383, %cst_106 {dimension_numbers = #tpu.dot_dimension_numbers<[1], [0], [0], [1], [0, 0, 1, 1], [], []>} : vector<8x8xbf16>, vector<8x32xbf16>, vector<8x32xf32> -> vector<8x32xf32>
    %385 = arith.addf %364, %384 : vector<8x32xf32>
    %386 = vector.extract_strided_slice %361 {offsets = [0, 8], sizes = [8, 8], strides = [1, 1]} : vector<8x32xbf16> to vector<8x8xbf16>
    %387 = vector.extract_strided_slice %362 {offsets = [0, 8], sizes = [8, 8], strides = [1, 1]} : vector<8x32xbf16> to vector<8x8xbf16>
    "tpu.trace_start"() <{level = 10 : i32, message = "qd,kd->qk"}> : () -> ()
    %cst_107 = arith.constant dense<0.000000e+00> : vector<8x8xf32>
    %388 = tpu.matmul %386, %387, %cst_107 {dimension_numbers = #tpu.dot_dimension_numbers<[1], [1], [0], [0], [0, 0, 1, 0], [], []>} : vector<8x8xbf16>, vector<8x8xbf16>, vector<8x8xf32> -> vector<8x8xf32>
    "tpu.trace_stop"() : () -> ()
    %389 = arith.addf %388, %360 : vector<8x8xf32>
    %cst_108 = arith.constant dense<0xFF800000> : vector<8xf32>
    %390 = vector.multi_reduction <maximumf>, %389, %cst_108 [1] : vector<8x8xf32> to vector<8xf32>
    %391 = vector.shape_cast %390 : vector<8xf32> to vector<8x1xf32>
    %392 = vector.broadcast %391 : vector<8x1xf32> to vector<8x8xf32>
    %393 = arith.subf %389, %392 : vector<8x8xf32>
    %394 = math.exp %393 : vector<8x8xf32>
    %cst_109 = arith.constant dense<0.000000e+00> : vector<8xf32>
    %395 = vector.multi_reduction <add>, %394, %cst_109 [1] : vector<8x8xf32> to vector<8xf32>
    %396 = vector.shape_cast %395 : vector<8xf32> to vector<8x1xf32>
    %397 = tpu.reciprocal %396 {approx = true} : vector<8x1xf32> -> vector<8x1xf32>
    %398 = vector.broadcast %397 : vector<8x1xf32> to vector<8x8xf32>
    %399 = arith.mulf %394, %398 : vector<8x8xf32>
    %400 = arith.truncf %399 : vector<8x8xf32> to vector<8x8xbf16>
    %401 = vector.extract_strided_slice %363 {offsets = [0, 8], sizes = [8, 8], strides = [1, 1]} : vector<8x32xbf16> to vector<8x8xbf16>
    %cst_110 = arith.constant dense<0.000000e+00> : vector<8x8xf32>
    %402 = tpu.matmul %400, %401, %cst_110 {dimension_numbers = #tpu.dot_dimension_numbers<[1], [0], [0], [1], [0, 0, 1, 1], [], []>} : vector<8x8xbf16>, vector<8x8xbf16>, vector<8x8xf32> -> vector<8x8xf32>
    %403 = arith.truncf %402 : vector<8x8xf32> to vector<8x8xbf16>
    %404 = vector.extract_strided_slice %262 {offsets = [8, 0], sizes = [8, 32], strides = [1, 1]} : vector<32x32xbf16> to vector<8x32xbf16>
    %cst_111 = arith.constant dense<0.000000e+00> : vector<8x32xf32>
    %405 = tpu.matmul %403, %404, %cst_111 {dimension_numbers = #tpu.dot_dimension_numbers<[1], [0], [0], [1], [0, 0, 1, 1], [], []>} : vector<8x8xbf16>, vector<8x32xbf16>, vector<8x32xf32> -> vector<8x32xf32>
    %406 = arith.addf %385, %405 : vector<8x32xf32>
    %407 = vector.extract_strided_slice %361 {offsets = [0, 16], sizes = [8, 8], strides = [1, 1]} : vector<8x32xbf16> to vector<8x8xbf16>
    %408 = vector.extract_strided_slice %362 {offsets = [0, 16], sizes = [8, 8], strides = [1, 1]} : vector<8x32xbf16> to vector<8x8xbf16>
    "tpu.trace_start"() <{level = 10 : i32, message = "qd,kd->qk"}> : () -> ()
    %cst_112 = arith.constant dense<0.000000e+00> : vector<8x8xf32>
    %409 = tpu.matmul %407, %408, %cst_112 {dimension_numbers = #tpu.dot_dimension_numbers<[1], [1], [0], [0], [0, 0, 1, 0], [], []>} : vector<8x8xbf16>, vector<8x8xbf16>, vector<8x8xf32> -> vector<8x8xf32>
    "tpu.trace_stop"() : () -> ()
    %410 = arith.addf %409, %360 : vector<8x8xf32>
    %cst_113 = arith.constant dense<0xFF800000> : vector<8xf32>
    %411 = vector.multi_reduction <maximumf>, %410, %cst_113 [1] : vector<8x8xf32> to vector<8xf32>
    %412 = vector.shape_cast %411 : vector<8xf32> to vector<8x1xf32>
    %413 = vector.broadcast %412 : vector<8x1xf32> to vector<8x8xf32>
    %414 = arith.subf %410, %413 : vector<8x8xf32>
    %415 = math.exp %414 : vector<8x8xf32>
    %cst_114 = arith.constant dense<0.000000e+00> : vector<8xf32>
    %416 = vector.multi_reduction <add>, %415, %cst_114 [1] : vector<8x8xf32> to vector<8xf32>
    %417 = vector.shape_cast %416 : vector<8xf32> to vector<8x1xf32>
    %418 = tpu.reciprocal %417 {approx = true} : vector<8x1xf32> -> vector<8x1xf32>
    %419 = vector.broadcast %418 : vector<8x1xf32> to vector<8x8xf32>
    %420 = arith.mulf %415, %419 : vector<8x8xf32>
    %421 = arith.truncf %420 : vector<8x8xf32> to vector<8x8xbf16>
    %422 = vector.extract_strided_slice %363 {offsets = [0, 16], sizes = [8, 8], strides = [1, 1]} : vector<8x32xbf16> to vector<8x8xbf16>
    %cst_115 = arith.constant dense<0.000000e+00> : vector<8x8xf32>
    %423 = tpu.matmul %421, %422, %cst_115 {dimension_numbers = #tpu.dot_dimension_numbers<[1], [0], [0], [1], [0, 0, 1, 1], [], []>} : vector<8x8xbf16>, vector<8x8xbf16>, vector<8x8xf32> -> vector<8x8xf32>
    %424 = arith.truncf %423 : vector<8x8xf32> to vector<8x8xbf16>
    %425 = vector.extract_strided_slice %262 {offsets = [16, 0], sizes = [8, 32], strides = [1, 1]} : vector<32x32xbf16> to vector<8x32xbf16>
    %cst_116 = arith.constant dense<0.000000e+00> : vector<8x32xf32>
    %426 = tpu.matmul %424, %425, %cst_116 {dimension_numbers = #tpu.dot_dimension_numbers<[1], [0], [0], [1], [0, 0, 1, 1], [], []>} : vector<8x8xbf16>, vector<8x32xbf16>, vector<8x32xf32> -> vector<8x32xf32>
    %427 = arith.addf %406, %426 : vector<8x32xf32>
    %428 = vector.extract_strided_slice %361 {offsets = [0, 24], sizes = [8, 8], strides = [1, 1]} : vector<8x32xbf16> to vector<8x8xbf16>
    %429 = vector.extract_strided_slice %362 {offsets = [0, 24], sizes = [8, 8], strides = [1, 1]} : vector<8x32xbf16> to vector<8x8xbf16>
    "tpu.trace_start"() <{level = 10 : i32, message = "qd,kd->qk"}> : () -> ()
    %cst_117 = arith.constant dense<0.000000e+00> : vector<8x8xf32>
    %430 = tpu.matmul %428, %429, %cst_117 {dimension_numbers = #tpu.dot_dimension_numbers<[1], [1], [0], [0], [0, 0, 1, 0], [], []>} : vector<8x8xbf16>, vector<8x8xbf16>, vector<8x8xf32> -> vector<8x8xf32>
    "tpu.trace_stop"() : () -> ()
    %431 = arith.addf %430, %360 : vector<8x8xf32>
    %cst_118 = arith.constant dense<0xFF800000> : vector<8xf32>
    %432 = vector.multi_reduction <maximumf>, %431, %cst_118 [1] : vector<8x8xf32> to vector<8xf32>
    %433 = vector.shape_cast %432 : vector<8xf32> to vector<8x1xf32>
    %434 = vector.broadcast %433 : vector<8x1xf32> to vector<8x8xf32>
    %435 = arith.subf %431, %434 : vector<8x8xf32>
    %436 = math.exp %435 : vector<8x8xf32>
    %cst_119 = arith.constant dense<0.000000e+00> : vector<8xf32>
    %437 = vector.multi_reduction <add>, %436, %cst_119 [1] : vector<8x8xf32> to vector<8xf32>
    %438 = vector.shape_cast %437 : vector<8xf32> to vector<8x1xf32>
    %439 = tpu.reciprocal %438 {approx = true} : vector<8x1xf32> -> vector<8x1xf32>
    %440 = vector.broadcast %439 : vector<8x1xf32> to vector<8x8xf32>
    %441 = arith.mulf %436, %440 : vector<8x8xf32>
    %442 = arith.truncf %441 : vector<8x8xf32> to vector<8x8xbf16>
    %443 = vector.extract_strided_slice %363 {offsets = [0, 24], sizes = [8, 8], strides = [1, 1]} : vector<8x32xbf16> to vector<8x8xbf16>
    %cst_120 = arith.constant dense<0.000000e+00> : vector<8x8xf32>
    %444 = tpu.matmul %442, %443, %cst_120 {dimension_numbers = #tpu.dot_dimension_numbers<[1], [0], [0], [1], [0, 0, 1, 1], [], []>} : vector<8x8xbf16>, vector<8x8xbf16>, vector<8x8xf32> -> vector<8x8xf32>
    %445 = arith.truncf %444 : vector<8x8xf32> to vector<8x8xbf16>
    %446 = vector.extract_strided_slice %262 {offsets = [24, 0], sizes = [8, 32], strides = [1, 1]} : vector<32x32xbf16> to vector<8x32xbf16>
    %cst_121 = arith.constant dense<0.000000e+00> : vector<8x32xf32>
    %447 = tpu.matmul %445, %446, %cst_121 {dimension_numbers = #tpu.dot_dimension_numbers<[1], [0], [0], [1], [0, 0, 1, 1], [], []>} : vector<8x8xbf16>, vector<8x32xbf16>, vector<8x32xf32> -> vector<8x32xf32>
    %448 = arith.addf %427, %447 : vector<8x32xf32>
    %449 = tpu.concatenate %355, %448 in 0 : vector<8x32xf32>, vector<8x32xf32> -> vector<16x32xf32>
    %450 = vector.broadcast %5 : vector<1x32xf32> to vector<16x32xf32>
    %451 = arith.addf %449, %450 : vector<16x32xf32>
    %452 = arith.addf %248, %451 : vector<16x32xf32>
    %cst_122 = arith.constant dense<0.000000e+00> : vector<16xf32>
    %453 = vector.multi_reduction <add>, %452, %cst_122 [1] : vector<16x32xf32> to vector<16xf32>
    %454 = vector.shape_cast %453 : vector<16xf32> to vector<16x1xf32>
    %cst_123 = arith.constant 3.200000e+01 : f32
    %455 = vector.broadcast %cst_123 : f32 to vector<16x1xf32>
    %456 = arith.divf %454, %455 : vector<16x1xf32>
    %457 = vector.broadcast %456 : vector<16x1xf32> to vector<16x32xf32>
    %458 = arith.subf %452, %457 : vector<16x32xf32>
    %459 = arith.mulf %458, %458 : vector<16x32xf32>
    %cst_124 = arith.constant dense<0.000000e+00> : vector<16xf32>
    %460 = vector.multi_reduction <add>, %459, %cst_124 [1] : vector<16x32xf32> to vector<16xf32>
    %461 = vector.shape_cast %460 : vector<16xf32> to vector<16x1xf32>
    %cst_125 = arith.constant 3.200000e+01 : f32
    %462 = vector.broadcast %cst_125 : f32 to vector<16x1xf32>
    %463 = arith.divf %461, %462 : vector<16x1xf32>
    %cst_126 = arith.constant 9.99999974E-6 : f32
    %464 = vector.broadcast %cst_126 : f32 to vector<16x1xf32>
    %465 = arith.addf %463, %464 : vector<16x1xf32>
    %466 = math.rsqrt %465 : vector<16x1xf32>
    %467 = vector.broadcast %466 : vector<16x1xf32> to vector<16x32xf32>
    %468 = arith.mulf %458, %467 : vector<16x32xf32>
    %469 = vector.broadcast %6 : vector<1x32xf32> to vector<16x32xf32>
    %470 = arith.mulf %468, %469 : vector<16x32xf32>
    %471 = vector.broadcast %7 : vector<1x32xf32> to vector<16x32xf32>
    %472 = arith.addf %470, %471 : vector<16x32xf32>
    %473 = arith.truncf %472 : vector<16x32xf32> to vector<16x32xbf16>
    %c0_127 = arith.constant 0 : index
    %c0_128 = arith.constant 0 : index
    %474 = vector.load %arg9[%c0_127, %c0_128] : memref<32x64xf32, #tpu.memory_space<vmem>>, vector<32x64xf32>
    %475 = arith.truncf %474 : vector<32x64xf32> to vector<32x64xbf16>
    %cst_129 = arith.constant dense<0.000000e+00> : vector<16x64xf32>
    %476 = tpu.matmul %473, %475, %cst_129 {dimension_numbers = #tpu.dot_dimension_numbers<[1], [0], [0], [1], [0, 0, 1, 1], [], []>} : vector<16x32xbf16>, vector<32x64xbf16>, vector<16x64xf32> -> vector<16x64xf32>
    %477 = vector.broadcast %13 : vector<1x64xf32> to vector<16x64xf32>
    %478 = arith.addf %476, %477 : vector<16x64xf32>
    %cst_130 = arith.constant 0.000000e+00 : f32
    %479 = vector.broadcast %cst_130 : f32 to vector<16x64xf32>
    %480 = arith.maximumf %478, %479 : vector<16x64xf32>
    %481 = arith.truncf %480 : vector<16x64xf32> to vector<16x64xbf16>
    %c0_131 = arith.constant 0 : index
    %c0_132 = arith.constant 0 : index
    %482 = vector.load %arg10[%c0_131, %c0_132] : memref<64x32xf32, #tpu.memory_space<vmem>>, vector<64x32xf32>
    %483 = arith.truncf %482 : vector<64x32xf32> to vector<64x32xbf16>
    %cst_133 = arith.constant dense<0.000000e+00> : vector<16x32xf32>
    %484 = tpu.matmul %481, %483, %cst_133 {dimension_numbers = #tpu.dot_dimension_numbers<[1], [0], [0], [1], [0, 0, 1, 1], [], []>} : vector<16x64xbf16>, vector<64x32xbf16>, vector<16x32xf32> -> vector<16x32xf32>
    %485 = vector.broadcast %8 : vector<1x32xf32> to vector<16x32xf32>
    %486 = arith.addf %484, %485 : vector<16x32xf32>
    %487 = arith.addf %486, %451 : vector<16x32xf32>
    %cst_134 = arith.constant dense<0.000000e+00> : vector<16xf32>
    %488 = vector.multi_reduction <add>, %487, %cst_134 [1] : vector<16x32xf32> to vector<16xf32>
    %489 = vector.shape_cast %488 : vector<16xf32> to vector<16x1xf32>
    %cst_135 = arith.constant 3.200000e+01 : f32
    %490 = vector.broadcast %cst_135 : f32 to vector<16x1xf32>
    %491 = arith.divf %489, %490 : vector<16x1xf32>
    %492 = vector.broadcast %491 : vector<16x1xf32> to vector<16x32xf32>
    %493 = arith.subf %487, %492 : vector<16x32xf32>
    %494 = arith.mulf %493, %493 : vector<16x32xf32>
    %cst_136 = arith.constant dense<0.000000e+00> : vector<16xf32>
    %495 = vector.multi_reduction <add>, %494, %cst_136 [1] : vector<16x32xf32> to vector<16xf32>
    %496 = vector.shape_cast %495 : vector<16xf32> to vector<16x1xf32>
    %cst_137 = arith.constant 3.200000e+01 : f32
    %497 = vector.broadcast %cst_137 : f32 to vector<16x1xf32>
    %498 = arith.divf %496, %497 : vector<16x1xf32>
    %cst_138 = arith.constant 9.99999974E-6 : f32
    %499 = vector.broadcast %cst_138 : f32 to vector<16x1xf32>
    %500 = arith.addf %498, %499 : vector<16x1xf32>
    %501 = math.rsqrt %500 : vector<16x1xf32>
    %502 = vector.broadcast %501 : vector<16x1xf32> to vector<16x32xf32>
    %503 = arith.mulf %493, %502 : vector<16x32xf32>
    %504 = vector.broadcast %9 : vector<1x32xf32> to vector<16x32xf32>
    %505 = arith.mulf %503, %504 : vector<16x32xf32>
    %506 = vector.broadcast %10 : vector<1x32xf32> to vector<16x32xf32>
    %507 = arith.addf %505, %506 : vector<16x32xf32>
    %c0_139 = arith.constant 0 : index
    %c0_140 = arith.constant 0 : index
    %508 = vector.load %arg14[%c0_139, %c0_140] : memref<16x32xf32, #tpu.memory_space<vmem>>, vector<16x32xf32>
    tpu.vector_store %arg14[%c0_139, %c0_140], %507 {strides = array<i32>} : memref<16x32xf32, #tpu.memory_space<vmem>>, vector<16x32xf32>,
    return
  }
}

</mosaic_0001>

<bundles_post_ra>
// kernel: tpu_custom_call.1
= control target key start
LH: loop header
LB: loop body
LE: loop exit
PB: predicated region body
PF: predicated region fallthrough
CT: control target
= control target key end

     0   :  { %19 = vsyncpa [#allocation3], 0  ;;  %s4705_s0 = inlined_call_operand.hbm [shape: f32[16,32], index: 0, kind: input, shape index: {}]   ;;  %s4706_s1 = inlined_call_operand.hbm [shape: f32[16,32], index: 1, kind: input, shape index: {}]   ;;  %s4707_s2 = inlined_call_operand.hbm [shape: s8[2,8,8], index: 2, kind: input, shape index: {}]   ;;  %s4708_s3 = inlined_call_operand.hbm [shape: s8[2,8,8], index: 3, kind: input, shape index: {}]   ;;  %s4709_s4 = inlined_call_operand.vmem [shape: f32[32,96], index: 4, kind: input, shape index: {}]   ;;  %s4710_s5 = inlined_call_operand.vmem [shape: f32[32,32], index: 5, kind: input, shape index: {}]   ;;  %s4711_s6 = inlined_call_operand.vmem [shape: f32[32,32], index: 6, kind: input, shape index: {}]   ;;  %s4712_s7 = inlined_call_operand.hbm [shape: f32[32,64], index: 7, kind: input, shape index: {}]   ;;  %s4713_s8 = inlined_call_operand.hbm [shape: f32[32,32], index: 8, kind: input, shape index: {}]   ;;  %s4714_s9 = inlined_call_operand.hbm [shape: f32[32,64], index: 9, kind: input, shape index: {}]   ;;  %s4715_s10 = inlined_call_operand.vmem [shape: f32[64,32], index: 10, kind: input, shape index: {}]   ;;  %s4716_s11 = inlined_call_operand.vmem [shape: f32[1,96], index: 11, kind: input, shape index: {}]   ;;  %s4717_s12 = inlined_call_operand.vmem [shape: f32[2,64], index: 12, kind: input, shape index: {}]   ;;  %s4718_s13 = inlined_call_operand.vmem [shape: f32[10,32], index: 13, kind: input, shape index: {}]   ;;  %s4719_s14 = inlined_call_operand.hbm [shape: f32[16,32], index: 14, kind: output, shape index: {}]  }
   0x1   :  { %20 = vsyncpa [#allocation6], 0 }
   0x2   :  { %21 = vsyncpa [#allocation9], 0 }
   0x3   :  { %22 = vsyncpa [#allocation12], 0 }
   0x4   :  { %23 = vsyncpa [#allocation4], 0  ;;  %s3912_s29 = smov [#allocation5]  }
   0x5   :  { %s41_s30 = sshll.u32 %s3912_s29, 4  ;;  %s42_s30 = int_to_ptr.vmem [resolvable:$true] %s41_s30 }
   0x6   :  { %s3750_s15 = scalar_lea.vmem %s42_s30, 256  ;;  %p3755_p1 = scmp.lt.s32.totalorder %s42_s30, %s42_s30 }
   0x7   :  { %p3751_p0 = scmp.ne.s32.totalorder %s42_s30, %s3750_s15  ;;  %p3756_p2 = scmp.lt.s32.totalorder %s3750_s15, %s3750_s15 }
   0x9   :  { %p3757_p3 = por %p3756_p2, %p3755_p1 }
   0xb   :  { %p3758_p4 = pnand %p3757_p3, %p3751_p0 }
   0xd   :  { %3761 = shalt.err (!%p3758_p4)
}
   0xe   :  { %s3913_s16 = smov 128   ;;  %s3914_s17 = smov 8  }
   0xf   :  { %47 = dma.hbm_to_vmem [thread:$0]  %s4706_s1, 256, %s42_s30, [#allocation6], %s3913_s16, %s3913_s16, %s3914_s17  }
  0x10   :  { %s3915_s20 = smov [#allocation8]   ;;  %s3916_s22 = smov [#allocation11]  }
  0x11   :  { %s65_s21 = sshll.u32 %s3915_s20, 4  ;;  %s95_s23 = sshll.u32 %s3916_s22, 4  ;;  %s66_s21 = int_to_ptr.vmem [resolvable:$true] %s65_s21  ;;  %s96_s23 = int_to_ptr.vmem [resolvable:$true] %s95_s23 }
  0x12   :  { %s3770_s24 = scalar_lea.vmem %s66_s21, 64  ;;  %p3775_p6 = scmp.lt.s32.totalorder %s66_s21, %s66_s21 }
  0x13   :  { %p3771_p5 = scmp.ne.s32.totalorder %s66_s21, %s3770_s24  ;;  %p3776_p7 = scmp.lt.s32.totalorder %s3770_s24, %s3770_s24 }
  0x15   :  { %p3777_p8 = por %p3776_p7, %p3775_p6 }
  0x17   :  { %p3778_p9 = pnand %p3777_p8, %p3771_p5 }
  0x19   :  { %3781 = shalt.err (!%p3778_p9)
}
  0x1a   :  { %s3917_s25 = smov 32   ;;  %s3918_s26 = smov 2  }
  0x1b   :  { %71 = dma.hbm_to_vmem [thread:$0]  %s4708_s3, 64, %s66_s21, [#allocation9], %s3917_s25, %s3917_s25, %s3918_s26  }
  0x1c   :  { %s3790_s1 = scalar_lea.vmem %s96_s23, 512  ;;  %p3795_p11 = scmp.lt.s32.totalorder %s96_s23, %s96_s23 }
  0x1d   :  { %p3791_p10 = scmp.ne.s32.totalorder %s96_s23, %s3790_s1  ;;  %p3796_p12 = scmp.lt.s32.totalorder %s3790_s1, %s3790_s1 }
  0x1f   :  { %p3797_p13 = por %p3796_p12, %p3795_p11 }
  0x21   :  { %p3798_p0 = pnand %p3797_p13, %p3791_p10 }
  0x23   :  { %3801 = shalt.err (!%p3798_p0)
}
  0x24   :  { %101 = dma.hbm_to_vmem [thread:$0]  %s4713_s8, 512, %s96_s23, [#allocation12], %s3913_s16, %s3913_s16, %s3914_s17  }
  0x25   :  { %s3919_s15 = smov [#allocation2]   ;;  %s3920_s19 = smov [#allocation7]  }
  0x26   :  { %s29_s18 = sshll.u32 %s3919_s15, 4  ;;  %s53_s3 = sshll.u32 %s3920_s19, 4  ;;  %s30_s18 = int_to_ptr.vmem [resolvable:$true] %s29_s18  ;;  %s54_s3 = int_to_ptr.vmem [resolvable:$true] %s53_s3 }
  0x27   :  { %s3810_s20 = scalar_lea.vmem %s30_s18, 256  ;;  %p3815_p2 = scmp.lt.s32.totalorder %s30_s18, %s30_s18 }
  0x28   :  { %p3811_p1 = scmp.ne.s32.totalorder %s30_s18, %s3810_s20  ;;  %p3816_p3 = scmp.lt.s32.totalorder %s3810_s20, %s3810_s20 }
  0x2a   :  { %p3817_p4 = por %p3816_p3, %p3815_p2 }
  0x2c   :  { %p3818_p5 = pnand %p3817_p4, %p3811_p1 }
  0x2e   :  { %3821 = shalt.err (!%p3818_p5)
}
  0x2f   :  { %35 = dma.hbm_to_vmem [thread:$0]  %s4705_s0, 256, %s30_s18, [#allocation3], %s3913_s16, %s3913_s16, %s3914_s17  }
  0x30   :  { %s3830_s8 = scalar_lea.vmem %s54_s3, 64  ;;  %p3835_p7 = scmp.lt.s32.totalorder %s54_s3, %s54_s3 }
  0x31   :  { %p3831_p6 = scmp.ne.s32.totalorder %s54_s3, %s3830_s8  ;;  %p3836_p8 = scmp.lt.s32.totalorder %s3830_s8, %s3830_s8 }
  0x33   :  { %p3837_p9 = por %p3836_p8, %p3835_p7 }
  0x35   :  { %p3838_p10 = pnand %p3837_p9, %p3831_p6 }
  0x37   :  { %3841 = shalt.err (!%p3838_p10)
}
  0x38   :  { %59 = dma.hbm_to_vmem [thread:$0]  %s4707_s2, 64, %s54_s3, [#allocation6], %s3917_s25, %s3917_s25, %s3918_s26  }
  0x39   :  { %s3921_s27 = smov [#allocation10]   ;;  %s3922_s1 = smov [#allocation13]  }
  0x3a   :  { %s83_s28 = sshll.u32 %s3921_s27, 4  ;;  %s107_s0 = sshll.u32 %s3922_s1, 4  ;;  %s84_s28 = int_to_ptr.vmem [resolvable:$true] %s83_s28  ;;  %s108_s0 = int_to_ptr.vmem [resolvable:$true] %s107_s0 }
  0x3b   :  { %s3850_s29 = scalar_lea.vmem %s84_s28, 512  ;;  %p3855_p12 = scmp.lt.s32.totalorder %s84_s28, %s84_s28 }
  0x3c   :  { %p3851_p11 = scmp.ne.s32.totalorder %s84_s28, %s3850_s29  ;;  %p3856_p13 = scmp.lt.s32.totalorder %s3850_s29, %s3850_s29 }
  0x3e   :  { %p3857_p0 = por %p3856_p13, %p3855_p12 }
  0x40   :  { %p3858_p1 = pnand %p3857_p0, %p3851_p11 }
  0x42   :  { %3861 = shalt.err (!%p3858_p1)
}
  0x43   :  { %89 = dma.hbm_to_vmem [thread:$0]  %s4712_s7, 512, %s84_s28, [#allocation9], %s3913_s16, %s3913_s16, %s3914_s17  }
  0x44   :  { %s3870_s2 = scalar_lea.vmem %s108_s0, 512  ;;  %p3875_p3 = scmp.lt.s32.totalorder %s108_s0, %s108_s0 }
  0x45   :  { %p3871_p2 = scmp.ne.s32.totalorder %s108_s0, %s3870_s2  ;;  %p3876_p4 = scmp.lt.s32.totalorder %s3870_s2, %s3870_s2 }
  0x47   :  { %p3877_p5 = por %p3876_p4, %p3875_p3 }
  0x49   :  { %p3878_p6 = pnand %p3877_p5, %p3871_p2 }
  0x4b   :  { %3881 = shalt.err (!%p3878_p6)
}
  0x4c   :  { %113 = dma.hbm_to_vmem [thread:$0]  %s4714_s9, 512, %s108_s0, [#allocation12], %s3913_s16, %s3913_s16, %s3914_s17  }
  0x4d   :  { %3902 = dma.done.wait [#allocation3], 256  }
  0x4e   :  { %3903 = vsyncadd [#allocation3], 4294967040 }
  0x4f   :  { %3904 = dma.done.wait [#allocation6], 320  }
  0x50   :  { %3905 = vsyncadd [#allocation6], 4294966976 }
  0x51   :  { %3906 = dma.done.wait [#allocation9], 576  }
  0x52   :  { %3907 = vsyncadd [#allocation9], 4294966720 }
  0x53   :  { %3908 = dma.done.wait [#allocation12], 1024  }
  0x54   :  { %3909 = vsyncadd [#allocation12], 4294966272  ;;  %v3923_v0 = vmov 0.0   ;;  %vm3924_vm0 = vmmov 0   ;;  %v174_v1 = vld [vmem:[%s4709_s4 + $0x10] sm:$0xff]  ;;  %v175_v2 = vld [vmem:[%s4709_s4 + $0x18] sm:$0xff] }
  0x55   :  { %3307 = vmatprep.subr.bf16.mxu1 %v3923_v0  ;;  %3311 = vmatprep.mubr.msk.bf16.mxu1 %vm3924_vm0, %v3923_v0  ;;  %v172_v3 = vld [vmem:[%s4709_s4] sm:$0xff]  ;;  %v177_v4 = vpack.c.bf16 %v175_v2, %v174_v1  ;;  %v173_v5 = vld [vmem:[%s4709_s4 + $0x8] sm:$0xff]  ;;  %vm185_vm1 = vcmask 261120   ;;  %s3925_s23 = smov 120   ;;  %s3926_s24 = smov 96   ;;  %vm240_vm2 = vcmask 64512  }
  0x56   :  { %3321 = vmatprep.subr.bf16.mxu0 %v3923_v0  ;;  %3323 = vmatprep.mubr.msk.bf16.mxu0 %vm3924_vm0, %v3923_v0  ;;  %v176_v6 = vpack.c.bf16 %v173_v5, %v172_v3  ;;  %v4073_v7 = vld [vmem:[#allocation2] sm:$0xff]  ;;  %v4075_v8 = vld [vmem:[#allocation2 + $0x8] sm:$0xff]  ;;  %s3927_s27 = smov 88   ;;  %v3928_v26 = vmov -1e+09   ;;  %s3930_s28 = smov 56  }
  0x57   :  { %3308 = vmatpush3.bf16.msra.mxu1 %v177_v4  ;;  %v171_v9 = vpack.c.bf16 %v4075_v8, %v4073_v7  ;;  %v3132_v10 = vld [vmem:[%s4716_s11] ss:$0 sm:$0xff]  ;;  %s3929_s11 = smov 64   ;;  %s3931_s1 = smov 112   ;;  %vm304_vm4 = vcmask 1043456   ;;  %v231_v63 = vld [vmem:[%s4710_s5 + $0x8] sm:$0xff] }
  0x58   :  { %3309 = vmatprep.subr.bf16.mxu1 %v3923_v0  ;;  %v4108_v23 = vld [vmem:[#allocation7] sm:$0xf]   ;;  %s3932_s0 = smov 80   ;;  %s3933_s25 = smov 72   ;;  %vm3025_vm8 = vcmask 523264  }
  0x59   :  { %v3188_v24 = vunpack.c.0.s8 %v4108_v23  ;;  %v230_v62 = vld [vmem:[%s4710_s5] sm:$0xff]  ;;  %s3934_s26 = smov 104   ;;  %s3935_s7 = smov 48  }
  0x5a   :  { %v234_v1 = vpack.c.bf16 %v231_v63, %v230_v62 }
  0x5b   :  { %3310 = vmatpush3.bf16.msra.mxu1 %v176_v6  ;;  %v155_v25 = vcvt.s32.f32 %v3188_v24 }
  0x5c   :  { %3315 = vmatprep.subr.bf16.mxu1 %v3923_v0  ;;  %v4145_v2 = vsel %vm304_vm4, %v234_v1, 0  ;;  %v461_v3 = vrot.slane %v234_v1, 4 }
  0x5d   :  { %vm157_vm3 = vcmp.gt.f32.partialorder %v155_v25, 0.0 }
  0x5e   :  { %3312 = vmatmul.mubr.msk.bf16.vlgmr.msra.gmra.mxu1 %vm185_vm1, %v171_v9  ;;  %v4112_v27 = vsel %vm157_vm3, 0.0, %v3928_v26  ;;  %v4150_v4 = vsel %vm304_vm4, %v461_v3, 0 }
  0x5f   :  { %3317 = vmatprep.mubr.msk.bf16.mxu1 %vm3924_vm0, %v3923_v0 }
 0x11e   :  { %v223_v11 = vpop.f32.mrf.mxu1 }
 0x11f   :  { %v224_v12 = vadd.f32 %v3132_v10, %v223_v11 }
 0x120   :  { %v3313_v13 = vpop.f32.mrf.mxu1 }
 0x121   :  { %v4087_v14 = vpack.c.bf16 %v224_v12, %v224_v12 }
 0x122   :  { %v226_v15 = vpop.f32.mrf.mxu1 }
 0x123   :  { %v4089_v16 = vadd.f32 %v3132_v10, %v226_v15  ;;  %349 = vrot.lane.b32.xlu1 %v4087_v14, %s3925_s23  ;;  %238 = vrot.lane.b32.xlu0 %v4087_v14, %s3926_s24 }
 0x124   :  { %v3314_v17 = vpop.f32.mrf.mxu1 }
 0x127   :  { %351 = vrot.lane.b32.xlu0 %v4087_v14, %s3927_s27 }
 0x195   :  { %v239_v18 = vpop.permute.xlu0 %238  ;;  %v350_v22 = vpop.permute.xlu1 %349 }
 0x196   :  { %v245_v19 = vsel %vm240_vm2, %v239_v18, 0 }
 0x197   :  { %3316 = vmatpush3.bf16.xpose.msra.mxu1 %v245_v19 }
 0x198   :  { %3327 = vmatprep.subr.bf16.mxu1 %v3923_v0 }
 0x199   :  { %v352_v20 = vpop.permute.xlu0 %351 }
 0x19a   :  { %v357_v21 = vsel %vm240_vm2, %v352_v20, 0 }
 0x19e   :  { %3318 = vmatmul.mubr.msk.bf16.vlgmr.msra.gmra.mxu1 %vm240_vm2, %v4087_v14 }
 0x19f   :  { %3328 = vmatpush3.bf16.xpose.msra.mxu1 %v357_v21  ;;  %3329 = vmatprep.mubr.msk.bf16.mxu1 %vm3924_vm0, %v3923_v0 }
 0x1a0   :  { %3339 = vmatprep.subr.bf16.mxu1 %v3923_v0 }
 0x1a6   :  { %3330 = vmatmul.mubr.msk.bf16.vlgmr.msra.gmra.mxu1 %vm240_vm2, %v350_v22 }
 0x1a7   :  { %3341 = vmatprep.mubr.msk.bf16.mxu1 %vm3924_vm0, %v3923_v0  ;;  %3340 = vmatpush3.bf16.msra.mxu1 %v4150_v4 }
 0x1a8   :  { %3351 = vmatprep.subr.bf16.mxu1 %v3923_v0 }
 0x25e   :  { %v281_v28 = vpop.f32.mrf.mxu1 }
 0x25f   :  { %v282_v29 = vadd.f32 %v281_v28, %v4112_v27 }
 0x260   :  { %v3319_v30 = vpop.f32.mrf.mxu1 }
 0x261   :  { %v287_v31 = vsel %vm240_vm2, %v282_v29, -inf }
 0x262   :  { %288 = vmax.xlane.f32.xlu1 %v287_v31  ;;  %v284_v32 = vpop.f32.mrf.mxu1 }
 0x264   :  { %v3320_v33 = vpop.f32.mrf.mxu1 }
 0x266   :  { %v393_v34 = vpop.f32.mrf.mxu1 }
 0x267   :  { %v394_v35 = vadd.f32 %v393_v34, %v4112_v27 }
 0x268   :  { %v3331_v36 = vpop.f32.mrf.mxu1 }
 0x269   :  { %v399_v37 = vsel %vm240_vm2, %v394_v35, -inf }
 0x26a   :  { %400 = vmax.xlane.f32.xlu0 %v399_v37  ;;  %v396_v38 = vpop.f32.mrf.mxu1 }
 0x26c   :  { %v3332_v39 = vpop.f32.mrf.mxu1 }
 0x2eb   :  { %v289_v40 = vpop.xlane.xlu1 %288 }
 0x2ec   :  { %v290_v41 = vsub.f32 %v282_v29, %v289_v40 }
 0x2ee   :  { %v291_v42 = vmul.f32 1.442695, %v290_v41 }
 0x2f0   :  { %3665 = vpow2.f32 %v291_v42 }
 0x2f3   :  { %v401_v43 = vpop.xlane.xlu0 %400 }
 0x2f4   :  { %v402_v44 = vsub.f32 %v394_v35, %v401_v43 }
 0x2f6   :  { %v403_v45 = vmul.f32 1.442695, %v402_v44 }
 0x2f8   :  { %3667 = vpow2.f32 %v403_v45 }
 0x2fd   :  { %v3666_v46 = vpop.eup %3665 }
 0x2fe   :  { %v293_v47 = vsel %vm240_vm2, %v3666_v46, 0.0 }
 0x2ff   :  { %294 = vadd.xlane.f32.xlu0 %v293_v47 }
 0x305   :  { %v3668_v48 = vpop.eup %3667 }
 0x306   :  { %v405_v49 = vsel %vm240_vm2, %v3668_v48, 0.0 }
 0x307   :  { %406 = vadd.xlane.f32.xlu1 %v405_v49 }
 0x315   :  { %299 = vrot.lane.b32.xlu0 %v4087_v14, %s3929_s11 }
 0x318   :  { %411 = vrot.lane.b32.xlu1 %v4087_v14, %s3930_s28 }
 0x319   :  { %554 = vrot.lane.b32.xlu0 %v4087_v14, %s3931_s1 }
 0x31c   :  { %556 = vrot.lane.b32.xlu1 %v4087_v14, %s3932_s0 }
 0x388   :  { %v295_v50 = vpop.xlane.xlu0 %294 }
 0x389   :  { %3669 = vrcp.f32 %v295_v50 }
 0x38c   :  { %v300_v51 = vpop.permute.xlu0 %299 }
 0x38d   :  { %v306_v52 = vsel %vm304_vm4, %v300_v51, 0 }
 0x38e   :  { %3322 = vmatpush3.bf16.msra.mxu0 %v306_v52 }
 0x38f   :  { %3333 = vmatprep.subr.bf16.mxu0 %v3923_v0 }
 0x390   :  { %v407_v53 = vpop.xlane.xlu1 %406  ;;  %v555_v21 = vpop.permute.xlu0 %554 }
 0x391   :  { %3671 = vrcp.f32 %v407_v53 }
 0x394   :  { %v412_v56 = vpop.permute.xlu1 %411 }
 0x395   :  { %v417_v58 = vsel %vm304_vm4, %v412_v56, 0 }
 0x396   :  { %v3670_v54 = vpop.eup %3669 }
 0x397   :  { %v297_v55 = vmul.f32 %v3670_v54, %v3666_v46  ;;  %v232_v54 = vld [vmem:[%s4710_s5 + $0x10] sm:$0xff] }
 0x398   :  { %v557_v12 = vpop.permute.xlu1 %556 }
 0x399   :  { %v298_v57 = vpack.c.bf16 %v297_v55, %v297_v55  ;;  %v562_v18 = vsel %vm240_vm2, %v557_v12, 0  ;;  %v233_v55 = vld [vmem:[%s4710_s5 + $0x18] sm:$0xff]  ;;  %s3936_s5 = smov 40  }
 0x39a   :  { %v4192_v56 = vpack.c.bf16 %v233_v55, %v232_v54 }
 0x39b   :  { %3324 = vmatmul.mubr.msk.bf16.vlgmr.msra.gmra.mxu0 %vm240_vm2, %v298_v57 }
 0x39c   :  { %3334 = vmatpush3.bf16.msra.mxu0 %v417_v58  ;;  %3335 = vmatprep.mubr.msk.bf16.mxu0 %vm3924_vm0, %v3923_v0  ;;  %v4196_v57 = vsel %vm304_vm4, %v4192_v56, 0 }
 0x39d   :  { %3345 = vmatprep.subr.bf16.mxu0 %v3923_v0 }
 0x39e   :  { %v3672_v59 = vpop.eup %3671 }
 0x39f   :  { %v409_v60 = vmul.f32 %v3672_v59, %v3668_v48 }
 0x3a1   :  { %v410_v61 = vpack.c.bf16 %v409_v60, %v409_v60 }
 0x3a3   :  { %3336 = vmatmul.mubr.msk.bf16.vlgmr.msra.gmra.mxu0 %vm240_vm2, %v410_v61 }
 0x3a4   :  { %3347 = vmatprep.mubr.msk.bf16.mxu0 %vm3924_vm0, %v3923_v0  ;;  %3346 = vmatpush3.bf16.msra.mxu0 %v4145_v2 }
 0x3a5   :  { %3357 = vmatprep.subr.bf16.mxu0 %v3923_v0 }
 0x45b   :  { %v342_v5 = vpop.f32.mrf.mxu0 }
 0x45c   :  { %v348_v6 = vpack.c.bf16 %v342_v5, %v342_v5 }
 0x45d   :  { %v3325_v9 = vpop.f32.mrf.mxu0 }
 0x45e   :  { %3348 = vmatmul.mubr.msk.bf16.vlgmr.msra.gmra.mxu0 %vm240_vm2, %v348_v6 }
 0x45f   :  { %v345_v10 = vpop.f32.mrf.mxu0  ;;  %3359 = vmatprep.mubr.msk.bf16.mxu0 %vm3924_vm0, %v3923_v0 }
 0x460   :  { %v4209_v10 = vpack.c.bf16 %v4089_v16, %v4089_v16 }
 0x461   :  { %v3326_v11 = vpop.f32.mrf.mxu0 }
 0x463   :  { %v453_v13 = vpop.f32.mrf.mxu0 }
 0x464   :  { %v459_v15 = vpack.c.bf16 %v453_v13, %v453_v13 }
 0x465   :  { %v3337_v17 = vpop.f32.mrf.mxu0 }
 0x466   :  { %3342 = vmatmul.mubr.msk.bf16.vlgmr.msra.gmra.mxu1 %vm240_vm2, %v459_v15 }
 0x467   :  { %3352 = vmatpush3.bf16.xpose.msra.mxu1 %v562_v18  ;;  %v456_v19 = vpop.f32.mrf.mxu0  ;;  %3353 = vmatprep.mubr.msk.bf16.mxu1 %vm3924_vm0, %v3923_v0 }
 0x468   :  { %3363 = vmatprep.subr.bf16.mxu1 %v3923_v0 }
 0x469   :  { %v3338_v20 = vpop.f32.mrf.mxu0 }
 0x46e   :  { %3354 = vmatmul.mubr.msk.bf16.vlgmr.msra.gmra.mxu1 %vm240_vm2, %v555_v21 }
 0x46f   :  { %3365 = vmatprep.mubr.msk.bf16.mxu1 %vm3924_vm0, %v3923_v0  ;;  %3364 = vmatpush3.bf16.msra.mxu1 %v4196_v57 }
 0x470   :  { %3375 = vmatprep.subr.bf16.mxu1 %v3923_v0 }
 0x51e   :  { %v548_v22 = vpop.f32.mrf.mxu0 }
 0x520   :  { %v3349_v24 = vpop.f32.mrf.mxu0 }
 0x522   :  { %v551_v25 = vpop.f32.mrf.mxu0 }
 0x524   :  { %v3350_v28 = vpop.f32.mrf.mxu0 }
 0x526   :  { %v502_v29 = vpop.f32.mrf.mxu1 }
 0x527   :  { %v4165_v30 = vadd.f32 %v548_v22, %v502_v29 }
 0x528   :  { %v3343_v31 = vpop.f32.mrf.mxu1 }
 0x52a   :  { %v505_v32 = vpop.f32.mrf.mxu1 }
 0x52c   :  { %v3344_v33 = vpop.f32.mrf.mxu1 }
 0x52e   :  { %v598_v34 = vpop.f32.mrf.mxu1 }
 0x52f   :  { %v599_v35 = vadd.f32 %v598_v34, %v4112_v27  ;;  %v824_v34 = vrot.slane %v4192_v56, 4 }
 0x530   :  { %v3355_v36 = vpop.f32.mrf.mxu1 }
 0x531   :  { %v604_v37 = vsel %vm240_vm2, %v599_v35, -inf  ;;  %v3189_v36 = vunpack.c.1.s8 %v4108_v23 }
 0x532   :  { %605 = vmax.xlane.f32.xlu1 %v604_v37  ;;  %v601_v38 = vpop.f32.mrf.mxu1 }
 0x533   :  { %v156_v37 = vcvt.s32.f32 %v3189_v36 }
 0x534   :  { %v3356_v39 = vpop.f32.mrf.mxu1 }
 0x535   :  { %vm158_vm5 = vcmp.gt.f32.partialorder %v156_v37, 0.0 }
 0x543   :  { %714 = vrot.lane.b32.xlu1 %v4087_v14, %s3933_s25 }
 0x547   :  { %712 = vrot.lane.b32.xlu1 %v4087_v14, %s3934_s26 }
 0x5bb   :  { %v606_v40 = vpop.xlane.xlu1 %605 }
 0x5bc   :  { %v607_v41 = vsub.f32 %v599_v35, %v606_v40  ;;  %v4241_v35 = vsel %vm304_vm4, %v824_v34, 0 }
 0x5be   :  { %v608_v42 = vmul.f32 1.442695, %v607_v41 }
 0x5bf   :  { %v715_v50 = vpop.permute.xlu1 %714 }
 0x5c0   :  { %3673 = vpow2.f32 %v608_v42  ;;  %v720_v52 = vsel %vm240_vm2, %v715_v50, 0  ;;  %v4250_v42 = vsel %vm158_vm5, 0.0, %v3928_v26 }
 0x5c3   :  { %v713_v53 = vpop.permute.xlu1 %712 }
 0x5cd   :  { %v3674_v43 = vpop.eup %3673 }
 0x5ce   :  { %v610_v44 = vsel %vm240_vm2, %v3674_v43, 0.0 }
 0x5cf   :  { %611 = vadd.xlane.f32.xlu0 %v610_v44 }
 0x5e5   :  { %616 = vrot.lane.b32.xlu0 %v4087_v14, %s3935_s7 }
 0x658   :  { %v612_v45 = vpop.xlane.xlu0 %611 }
 0x659   :  { %3675 = vrcp.f32 %v612_v45 }
 0x65c   :  { %v617_v46 = vpop.permute.xlu0 %616 }
 0x65d   :  { %v622_v47 = vsel %vm304_vm4, %v617_v46, 0 }
 0x65e   :  { %3358 = vmatpush3.bf16.msra.mxu0 %v622_v47 }
 0x65f   :  { %3369 = vmatprep.subr.bf16.mxu0 %v3923_v0 }
 0x666   :  { %v3676_v48 = vpop.eup %3675 }
 0x667   :  { %v614_v49 = vmul.f32 %v3676_v48, %v3674_v43 }
 0x669   :  { %v615_v51 = vpack.c.bf16 %v614_v49, %v614_v49 }
 0x66b   :  { %3360 = vmatmul.mubr.msk.bf16.vlgmr.msra.gmra.mxu0 %vm240_vm2, %v615_v51 }
 0x66c   :  { %3370 = vmatpush3.bf16.xpose.msra.mxu0 %v720_v52  ;;  %3371 = vmatprep.mubr.msk.bf16.mxu0 %vm3924_vm0, %v3923_v0 }
 0x66d   :  { %3381 = vmatprep.subr.bf16.mxu0 %v3923_v0 }
 0x673   :  { %3372 = vmatmul.mubr.msk.bf16.vlgmr.msra.gmra.mxu0 %vm240_vm2, %v713_v53 }
 0x674   :  { %3383 = vmatprep.mubr.msk.bf16.mxu0 %vm3924_vm0, %v3923_v0  ;;  %3382 = vmatpush3.bf16.msra.mxu0 %v4241_v35 }
 0x675   :  { %3393 = vmatprep.subr.bf16.mxu0 %v3923_v0 }
 0x72b   :  { %v658_v58 = vpop.f32.mrf.mxu0 }
 0x72c   :  { %v664_v59 = vpack.c.bf16 %v658_v58, %v658_v58 }
 0x72d   :  { %v3361_v60 = vpop.f32.mrf.mxu0 }
 0x72e   :  { %3366 = vmatmul.mubr.msk.bf16.vlgmr.msra.gmra.mxu1 %vm240_vm2, %v664_v59 }
 0x72f   :  { %v661_v61 = vpop.f32.mrf.mxu0  ;;  %3377 = vmatprep.mubr.msk.bf16.mxu1 %vm3924_vm0, %v3923_v0 }
 0x731   :  { %v3362_v62 = vpop.f32.mrf.mxu0 }
 0x733   :  { %v756_v63 = vpop.f32.mrf.mxu0 }
 0x734   :  { %v757_v1 = vadd.f32 %v756_v63, %v4112_v27 }
 0x735   :  { %v3373_v3 = vpop.f32.mrf.mxu0 }
 0x736   :  { %v762_v5 = vsel %vm240_vm2, %v757_v1, -inf }
 0x737   :  { %763 = vmax.xlane.f32.xlu0 %v762_v5  ;;  %v759_v6 = vpop.f32.mrf.mxu0 }
 0x739   :  { %v3374_v9 = vpop.f32.mrf.mxu0 }
 0x74d   :  { %774 = vrot.lane.b32.xlu0 %v4087_v14, %s3936_s5 }
 0x751   :  { %985 = vrot.lane.b32.xlu0 %v4209_v10, %s3927_s27 }
 0x7c0   :  { %v764_v11 = vpop.xlane.xlu0 %763 }
 0x7c1   :  { %v765_v12 = vsub.f32 %v757_v1, %v764_v11 }
 0x7c3   :  { %v766_v27 = vmul.f32 1.442695, %v765_v12 }
 0x7c4   :  { %v775_v13 = vpop.permute.xlu0 %774 }
 0x7c5   :  { %3677 = vpow2.f32 %v766_v27  ;;  %v780_v15 = vsel %vm304_vm4, %v775_v13, 0 }
 0x7c6   :  { %3376 = vmatpush3.bf16.msra.mxu1 %v780_v15 }
 0x7c7   :  { %3387 = vmatprep.subr.bf16.mxu1 %v3923_v0 }
 0x7d2   :  { %v3678_v17 = vpop.eup %3677 }
 0x7d3   :  { %v768_v14 = vsel %vm240_vm2, %v3678_v17, 0.0 }
 0x7d4   :  { %769 = vadd.xlane.f32.xlu1 %v768_v14 }
 0x7e5   :  { %874 = vrot.lane.b32.xlu1 %v4209_v10, %s3926_s24 }
 0x7e9   :  { %983 = vrot.lane.b32.xlu1 %v4209_v10, %s3925_s23 }
 0x7ee   :  { %v705_v16 = vpop.f32.mrf.mxu1 }
 0x7ef   :  { %v4221_v18 = vadd.f32 %v705_v16, %v4165_v30  ;;  %v986_v30 = vpop.permute.xlu0 %985 }
 0x7f0   :  { %v3367_v19 = vpop.f32.mrf.mxu1  ;;  %v991_v32 = vsel %vm240_vm2, %v986_v30, 0 }
 0x7f2   :  { %v708_v20 = vpop.f32.mrf.mxu1 }
 0x7f4   :  { %v3368_v21 = vpop.f32.mrf.mxu1 }
 0x85d   :  { %v770_v22 = vpop.xlane.xlu1 %769 }
 0x85e   :  { %3679 = vrcp.f32 %v770_v22 }
 0x861   :  { %v875_v28 = vpop.permute.xlu1 %874 }
 0x862   :  { %v880_v31 = vsel %vm240_vm2, %v875_v28, 0 }
 0x865   :  { %v984_v33 = vpop.permute.xlu1 %983 }
 0x86b   :  { %v3680_v24 = vpop.eup %3679 }
 0x86c   :  { %v772_v25 = vmul.f32 %v3680_v24, %v3678_v17 }
 0x86e   :  { %v773_v29 = vpack.c.bf16 %v772_v25, %v772_v25 }
 0x870   :  { %3378 = vmatmul.mubr.msk.bf16.vlgmr.msra.gmra.mxu1 %vm240_vm2, %v773_v29 }
 0x871   :  { %3388 = vmatpush3.bf16.xpose.msra.mxu1 %v880_v31  ;;  %3389 = vmatprep.mubr.msk.bf16.mxu1 %vm3924_vm0, %v3923_v0 }
 0x872   :  { %3399 = vmatprep.subr.bf16.mxu1 %v3923_v0 }
 0x878   :  { %3390 = vmatmul.mubr.msk.bf16.vlgmr.msra.gmra.mxu1 %vm240_vm2, %v4209_v10 }
 0x879   :  { %3400 = vmatpush3.bf16.xpose.msra.mxu1 %v991_v32  ;;  %3401 = vmatprep.mubr.msk.bf16.mxu1 %vm3924_vm0, %v3923_v0 }
 0x87a   :  { %3411 = vmatprep.subr.bf16.mxu1 %v3923_v0 }
 0x880   :  { %3402 = vmatmul.mubr.msk.bf16.vlgmr.msra.gmra.mxu1 %vm240_vm2, %v984_v33 }
 0x881   :  { %3412 = vmatpush3.bf16.msra.mxu1 %v4150_v4  ;;  %3413 = vmatprep.mubr.msk.bf16.mxu1 %vm3924_vm0, %v3923_v0 }
 0x882   :  { %3423 = vmatprep.subr.bf16.mxu1 %v3923_v0 }
 0x930   :  { %v816_v38 = vpop.f32.mrf.mxu1 }
 0x931   :  { %v822_v39 = vpack.c.bf16 %v816_v38, %v816_v38 }
 0x932   :  { %v3379_v4 = vpop.f32.mrf.mxu1 }
 0x933   :  { %3384 = vmatmul.mubr.msk.bf16.vlgmr.msra.gmra.mxu0 %vm240_vm2, %v822_v39 }
 0x934   :  { %v819_v40 = vpop.f32.mrf.mxu1  ;;  %3395 = vmatprep.mubr.msk.bf16.mxu0 %vm3924_vm0, %v3923_v0 }
 0x936   :  { %v3380_v41 = vpop.f32.mrf.mxu1 }
 0x938   :  { %v916_v43 = vpop.f32.mrf.mxu1 }
 0x939   :  { %v917_v44 = vadd.f32 %v916_v43, %v4250_v42 }
 0x93a   :  { %v3391_v45 = vpop.f32.mrf.mxu1 }
 0x93b   :  { %v922_v23 = vsel %vm240_vm2, %v917_v44, -inf }
 0x93c   :  { %923 = vmax.xlane.f32.xlu0 %v922_v23  ;;  %v919_v46 = vpop.f32.mrf.mxu1 }
 0x93e   :  { %v3392_v47 = vpop.f32.mrf.mxu1 }
 0x940   :  { %v1027_v48 = vpop.f32.mrf.mxu1 }
 0x941   :  { %v1028_v49 = vadd.f32 %v1027_v48, %v4250_v42 }
 0x942   :  { %v3403_v50 = vpop.f32.mrf.mxu1 }
 0x943   :  { %v1033_v51 = vsel %vm240_vm2, %v1028_v49, -inf }
 0x944   :  { %1034 = vmax.xlane.f32.xlu1 %v1033_v51  ;;  %v1030_v52 = vpop.f32.mrf.mxu1 }
 0x946   :  { %v3404_v53 = vpop.f32.mrf.mxu1 }
 0x955   :  { %934 = vrot.lane.b32.xlu1 %v4209_v10, %s3929_s11  ;;  %s3937_s11 = smov [#allocation14]  }
 0x959   :  { %1182 = vrot.lane.b32.xlu1 %v4209_v10, %s3932_s0 }
 0x95d   :  { %1180 = vrot.lane.b32.xlu1 %v4209_v10, %s3931_s1 }
 0x9c5   :  { %v924_v54 = vpop.xlane.xlu0 %923 }
 0x9c6   :  { %v925_v55 = vsub.f32 %v917_v44, %v924_v54 }
 0x9c8   :  { %v926_v56 = vmul.f32 1.442695, %v925_v55 }
 0x9ca   :  { %3681 = vpow2.f32 %v926_v56 }
 0x9cd   :  { %v1035_v58 = vpop.xlane.xlu1 %1034 }
 0x9ce   :  { %v1036_v59 = vsub.f32 %v1028_v49, %v1035_v58 }
 0x9d0   :  { %v1037_v60 = vmul.f32 1.442695, %v1036_v59 }
 0x9d1   :  { %v935_v61 = vpop.permute.xlu1 %934 }
 0x9d2   :  { %3683 = vpow2.f32 %v1037_v60  ;;  %v940_v62 = vsel %vm304_vm4, %v935_v61, 0 }
 0x9d3   :  { %3394 = vmatpush3.bf16.msra.mxu0 %v940_v62 }
 0x9d4   :  { %3405 = vmatprep.subr.bf16.mxu0 %v3923_v0 }
 0x9d5   :  { %v1183_v30 = vpop.permute.xlu1 %1182 }
 0x9d7   :  { %v3682_v63 = vpop.eup %3681 }
 0x9d8   :  { %v928_v1 = vsel %vm240_vm2, %v3682_v63, 0.0 }
 0x9d9   :  { %929 = vadd.xlane.f32.xlu0 %v928_v1  ;;  %v1181_v38 = vpop.permute.xlu1 %1180 }
 0x9df   :  { %v3684_v3 = vpop.eup %3683 }
 0x9e0   :  { %v1039_v5 = vsel %vm240_vm2, %v3684_v3, 0.0 }
 0x9e1   :  { %1040 = vadd.xlane.f32.xlu0 %v1039_v5 }
 0x9f3   :  { %v865_v6 = vpop.f32.mrf.mxu0 }
 0x9f4   :  { %v4267_v9 = vadd.f32 %v865_v6, %v4221_v18  ;;  %v1490_v6 = vlaneseq }
 0x9f5   :  { %v3385_v11 = vpop.f32.mrf.mxu0 }
 0x9f6   :  { %v4317_v11 = vshrl.u32 %v1490_v6, 7  ;;  %v1539_v6 = vld [vmem:[#allocation10 + $0x8] sm:$0xff] }
 0x9f7   :  { %v868_v12 = vpop.f32.mrf.mxu0  ;;  %1045 = vrot.lane.b32.xlu0 %v4209_v10, %s3930_s28  ;;  %s3117_s28 = sshll.u32 %s3937_s11, 4  ;;  %s3118_s28 = int_to_ptr.vmem [resolvable:$true] %s3117_s28 }
 0x9f8   :  { %v4320_v12 = vsub.s32 0, %v4317_v11  ;;  %p3887_p8 = scmp.lt.s32.totalorder %s3118_s28, %s3118_s28 }
 0x9f9   :  { %v3386_v27 = vpop.f32.mrf.mxu0 }
 0x9fa   :  { %v4325_v27 = vld [vmem:[%s4718_s13] sm:$0xff] }
 0xa62   :  { %v930_v13 = vpop.xlane.xlu0 %929 }
 0xa63   :  { %3685 = vrcp.f32 %v930_v13 }
 0xa6a   :  { %v1041_v15 = vpop.xlane.xlu0 %1040 }
 0xa6b   :  { %3687 = vrcp.f32 %v1041_v15 }
 0xa6e   :  { %v1046_v16 = vpop.permute.xlu0 %1045 }
 0xa6f   :  { %v1051_v20 = vsel %vm304_vm4, %v1046_v16, 0 }
 0xa70   :  { %v3686_v17 = vpop.eup %3685 }
 0xa71   :  { %v932_v14 = vmul.f32 %v3686_v17, %v3682_v63 }
 0xa73   :  { %v933_v19 = vpack.c.bf16 %v932_v14, %v932_v14 }
 0xa75   :  { %3396 = vmatmul.mubr.msk.bf16.vlgmr.msra.gmra.mxu0 %vm240_vm2, %v933_v19 }
 0xa76   :  { %3406 = vmatpush3.bf16.msra.mxu0 %v1051_v20  ;;  %3407 = vmatprep.mubr.msk.bf16.mxu0 %vm3924_vm0, %v3923_v0 }
 0xa77   :  { %3417 = vmatprep.subr.bf16.mxu0 %v3923_v0 }
 0xa78   :  { %v3688_v18 = vpop.eup %3687 }
 0xa79   :  { %v1043_v21 = vmul.f32 %v3688_v18, %v3684_v3 }
 0xa7b   :  { %v1044_v22 = vpack.c.bf16 %v1043_v21, %v1043_v21 }
 0xa7d   :  { %3408 = vmatmul.mubr.msk.bf16.vlgmr.msra.gmra.mxu0 %vm240_vm2, %v1044_v22 }
 0xa7e   :  { %3418 = vmatpush3.bf16.msra.mxu0 %v4145_v2  ;;  %3419 = vmatprep.mubr.msk.bf16.mxu0 %vm3924_vm0, %v3923_v0  ;;  %v1188_v2 = vsel %vm240_vm2, %v1183_v30, 0 }
 0xa7f   :  { %3429 = vmatprep.subr.bf16.mxu0 %v3923_v0 }
 0xb35   :  { %v976_v24 = vpop.f32.mrf.mxu0 }
 0xb36   :  { %v982_v25 = vpack.c.bf16 %v976_v24, %v976_v24 }
 0xb37   :  { %v3397_v28 = vpop.f32.mrf.mxu0 }
 0xb38   :  { %3420 = vmatmul.mubr.msk.bf16.vlgmr.msra.gmra.mxu0 %vm240_vm2, %v982_v25 }
 0xb39   :  { %v979_v29 = vpop.f32.mrf.mxu0  ;;  %3431 = vmatprep.mubr.msk.bf16.mxu0 %vm3924_vm0, %v3923_v0 }
 0xb3b   :  { %v3398_v31 = vpop.f32.mrf.mxu0 }
 0xb3d   :  { %v1087_v32 = vpop.f32.mrf.mxu0 }
 0xb3e   :  { %v1093_v33 = vpack.c.bf16 %v1087_v32, %v1087_v32 }
 0xb3f   :  { %v3409_v34 = vpop.f32.mrf.mxu0 }
 0xb40   :  { %3414 = vmatmul.mubr.msk.bf16.vlgmr.msra.gmra.mxu1 %vm240_vm2, %v1093_v33 }
 0xb41   :  { %3424 = vmatpush3.bf16.xpose.msra.mxu1 %v1188_v2  ;;  %v1090_v36 = vpop.f32.mrf.mxu0  ;;  %3425 = vmatprep.mubr.msk.bf16.mxu1 %vm3924_vm0, %v3923_v0 }
 0xb42   :  { %3435 = vmatprep.subr.bf16.mxu1 %v3923_v0 }
 0xb43   :  { %v3410_v37 = vpop.f32.mrf.mxu0 }
 0xb48   :  { %3426 = vmatmul.mubr.msk.bf16.vlgmr.msra.gmra.mxu1 %vm240_vm2, %v1181_v38 }
 0xb49   :  { %3436 = vmatpush3.bf16.msra.mxu1 %v4196_v57  ;;  %3437 = vmatprep.mubr.msk.bf16.mxu1 %vm3924_vm0, %v3923_v0 }
 0xb4a   :  { %3447 = vmatprep.subr.bf16.mxu1 %v3923_v0 }
 0xbf8   :  { %v1174_v39 = vpop.f32.mrf.mxu0 }
 0xbfa   :  { %v3421_v4 = vpop.f32.mrf.mxu0 }
 0xbfc   :  { %v1177_v40 = vpop.f32.mrf.mxu0 }
 0xbfe   :  { %v3422_v41 = vpop.f32.mrf.mxu0 }
 0xc00   :  { %v1131_v43 = vpop.f32.mrf.mxu1 }
 0xc01   :  { %v4294_v44 = vadd.f32 %v1174_v39, %v1131_v43 }
 0xc02   :  { %v3415_v45 = vpop.f32.mrf.mxu1 }
 0xc04   :  { %v1134_v23 = vpop.f32.mrf.mxu1 }
 0xc06   :  { %v3416_v46 = vpop.f32.mrf.mxu1 }
 0xc08   :  { %v1224_v47 = vpop.f32.mrf.mxu1 }
 0xc09   :  { %v1225_v48 = vadd.f32 %v1224_v47, %v4250_v42 }
 0xc0a   :  { %v3427_v49 = vpop.f32.mrf.mxu1 }
 0xc0b   :  { %v1230_v57 = vsel %vm240_vm2, %v1225_v48, -inf }
 0xc0c   :  { %1231 = vmax.xlane.f32.xlu0 %v1230_v57  ;;  %v1227_v50 = vpop.f32.mrf.mxu1 }
 0xc0e   :  { %v3428_v51 = vpop.f32.mrf.mxu1 }
 0xc22   :  { %1242 = vrot.lane.b32.xlu0 %v4209_v10, %s3935_s7 }
 0xc26   :  { %1335 = vrot.lane.b32.xlu0 %v4209_v10, %s3934_s26 }
 0xc95   :  { %v1232_v52 = vpop.xlane.xlu0 %1231 }
 0xc96   :  { %v1233_v53 = vsub.f32 %v1225_v48, %v1232_v52 }
 0xc98   :  { %v1234_v54 = vmul.f32 1.442695, %v1233_v53 }
 0xc99   :  { %v1243_v55 = vpop.permute.xlu0 %1242 }
 0xc9a   :  { %3689 = vpow2.f32 %v1234_v54  ;;  %v1248_v56 = vsel %vm304_vm4, %v1243_v55, 0 }
 0xc9b   :  { %3430 = vmatpush3.bf16.msra.mxu0 %v1248_v56 }
 0xc9c   :  { %3441 = vmatprep.subr.bf16.mxu0 %v3923_v0 }
 0xc9d   :  { %v1336_v5 = vpop.permute.xlu0 %1335 }
 0xca7   :  { %v3690_v58 = vpop.eup %3689 }
 0xca8   :  { %v1236_v59 = vsel %vm240_vm2, %v3690_v58, 0.0 }
 0xca9   :  { %1237 = vadd.xlane.f32.xlu1 %v1236_v59 }
 0xcba   :  { %1337 = vrot.lane.b32.xlu1 %v4209_v10, %s3933_s25 }
 0xd32   :  { %v1238_v60 = vpop.xlane.xlu1 %1237 }
 0xd33   :  { %3691 = vrcp.f32 %v1238_v60 }
 0xd36   :  { %v1338_v63 = vpop.permute.xlu1 %1337 }
 0xd37   :  { %v1343_v3 = vsel %vm240_vm2, %v1338_v63, 0 }
 0xd40   :  { %v3692_v61 = vpop.eup %3691 }
 0xd41   :  { %v1240_v62 = vmul.f32 %v3692_v61, %v3690_v58 }
 0xd43   :  { %v1241_v1 = vpack.c.bf16 %v1240_v62, %v1240_v62 }
 0xd45   :  { %3432 = vmatmul.mubr.msk.bf16.vlgmr.msra.gmra.mxu0 %vm240_vm2, %v1241_v1  ;;  %v1540_v1 = vld [vmem:[#allocation10 + $0x10] sm:$0xff] }
 0xd46   :  { %3442 = vmatpush3.bf16.xpose.msra.mxu0 %v1343_v3  ;;  %3443 = vmatprep.mubr.msk.bf16.mxu0 %vm3924_vm0, %v3923_v0  ;;  %v1541_v3 = vld [vmem:[#allocation10 + $0x18] sm:$0xff] }
 0xd47   :  { %3453 = vmatprep.subr.bf16.mxu0 %v3923_v0 }
 0xd4d   :  { %3444 = vmatmul.mubr.msk.bf16.vlgmr.msra.gmra.mxu0 %vm240_vm2, %v1336_v5  ;;  %v1543_v5 = vpack.c.bf16 %v1541_v3, %v1540_v1 }
 0xd4e   :  { %3454 = vmatpush3.bf16.msra.mxu0 %v4241_v35  ;;  %3455 = vmatprep.mubr.msk.bf16.mxu0 %vm3924_vm0, %v3923_v0  ;;  %v1493_v35 = vrot.slane %v4325_v27, %v4320_v12 }
 0xd4f   :  { %3467 = vmatprep.subr.bf16.mxu0 %v3923_v0 }
 0xd50   :  { %v1494_v19 = vadd.f32 %v1493_v35, %v4267_v9 }
 0xd52   :  { %v1496_v24 = vadd.f32 %v1494_v19, %v4073_v7 }
 0xd54   :  { %v1498_v29 = vsel %vm185_vm1, %v1496_v24, 0.0 }
 0xe05   :  { %v1284_v13 = vpop.f32.mrf.mxu0 }
 0xe06   :  { %v1290_v15 = vpack.c.bf16 %v1284_v13, %v1284_v13 }
 0xe07   :  { %v3433_v17 = vpop.f32.mrf.mxu0 }
 0xe08   :  { %3438 = vmatmul.mubr.msk.bf16.vlgmr.msra.gmra.mxu1 %vm240_vm2, %v1290_v15  ;;  %v149_v15 = vld [vmem:[#allocation5] sm:$0xff]  ;;  %v150_v17 = vld [vmem:[#allocation5 + $0x8] sm:$0xff] }
 0xe09   :  { %v1287_v14 = vpop.f32.mrf.mxu0  ;;  %3449 = vmatprep.mubr.msk.bf16.mxu1 %vm3924_vm0, %v3923_v0 }
 0xe0a   :  { %v1595_v14 = vld [vmem:[%s4711_s6 + $0x10] sm:$0xff] }
 0xe0b   :  { %v3434_v16 = vpop.f32.mrf.mxu0 }
 0xe0c   :  { %v1596_v16 = vld [vmem:[%s4711_s6 + $0x18] sm:$0xff] }
 0xe0d   :  { %v1379_v20 = vpop.f32.mrf.mxu0  ;;  %v1598_v19 = vpack.c.bf16 %v1596_v16, %v1595_v14 }
 0xe0e   :  { %v1380_v18 = vadd.f32 %v1379_v20, %v4250_v42  ;;  %v1593_v20 = vld [vmem:[%s4711_s6] sm:$0xff] }
 0xe0f   :  { %v3445_v21 = vpop.f32.mrf.mxu0 }
 0xe10   :  { %v1385_v22 = vsel %vm240_vm2, %v1380_v18, -inf }
 0xe11   :  { %1386 = vmax.xlane.f32.xlu1 %v1385_v22  ;;  %v1382_v25 = vpop.f32.mrf.mxu0 }
 0xe13   :  { %v3446_v28 = vpop.f32.mrf.mxu0 }
 0xe15   :  { %1499 = vadd.xlane.f32.xlu1 %v1498_v29 }
 0xe9a   :  { %v1387_v31 = vpop.xlane.xlu1 %1386 }
 0xe9b   :  { %v1388_v30 = vsub.f32 %v1380_v18, %v1387_v31  ;;  %v1594_v18 = vld [vmem:[%s4711_s6 + $0x8] sm:$0xff] }
 0xe9c   :  { %v1597_v21 = vpack.c.bf16 %v1594_v18, %v1593_v20 }
 0xe9d   :  { %v1389_v32 = vmul.f32 1.442695, %v1388_v30  ;;  %v4373_v30 = vsub.s32 1, %v4317_v11 }
 0xe9e   :  { %v1500_v46 = vpop.xlane.xlu1 %1499 }
 0xe9f   :  { %3693 = vpow2.f32 %v1389_v32  ;;  %v1505_v47 = vmul.f32 0.03125, %v1500_v46 }
 0xea1   :  { %v1507_v50 = vsub.f32 %v1496_v24, %v1505_v47 }
 0xea3   :  { %v1509_v56 = vmul.f32 %v1507_v50, %v1507_v50 }
 0xea5   :  { %v1511_v58 = vsel %vm185_vm1, %v1509_v56, 0.0 }
 0xeac   :  { %v3694_v33 = vpop.eup %3693 }
 0xead   :  { %v1391_v9 = vsel %vm240_vm2, %v3694_v33, 0.0 }
 0xeae   :  { %1392 = vadd.xlane.f32.xlu0 %v1391_v9  ;;  %v1528_v9 = vrot.slane %v4325_v27, %v4373_v30 }
 0xec4   :  { %1397 = vrot.lane.b32.xlu0 %v4209_v10, %s3936_s5 }
 0xec8   :  { %v1328_v42 = vpop.f32.mrf.mxu1 }
 0xec9   :  { %v1334_v7 = vadd.f32 %v1328_v42, %v4294_v44  ;;  %v1533_v42 = vsub.s32 2, %v4317_v11 }
 0xeca   :  { %v3439_v34 = vpop.f32.mrf.mxu1 }
 0xecc   :  { %v1331_v2 = vpop.f32.mrf.mxu1 }
 0xece   :  { %v3440_v36 = vpop.f32.mrf.mxu1 }
 0xecf   :  { %v1534_v36 = vrot.slane %v4325_v27, %v1533_v42 }
 0xf37   :  { %v1393_v37 = vpop.xlane.xlu0 %1392 }
 0xf38   :  { %3695 = vrcp.f32 %v1393_v37 }
 0xf3b   :  { %v1398_v38 = vpop.permute.xlu0 %1397 }
 0xf3c   :  { %v1403_v39 = vsel %vm304_vm4, %v1398_v38, 0 }
 0xf3d   :  { %3448 = vmatpush3.bf16.msra.mxu1 %v1403_v39 }
 0xf3e   :  { %3459 = vmatprep.subr.bf16.mxu1 %v3923_v0 }
 0xf45   :  { %v3696_v4 = vpop.eup %3695 }
 0xf46   :  { %v1395_v40 = vmul.f32 %v3696_v4, %v3694_v33 }
 0xf48   :  { %v1396_v41 = vpack.c.bf16 %v1395_v40, %v1395_v40  ;;  %v4391_v40 = vld [vmem:[%s4717_s12] sm:$0x3] }
 0xf4a   :  { %3450 = vmatmul.mubr.msk.bf16.vlgmr.msra.gmra.mxu1 %vm240_vm2, %v1396_v41  ;;  %v1547_v41 = vrot.slane %v4391_v40, %v4320_v12 }
 0xf4b   :  { %3463 = vmatprep.mubr.msk.bf16.mxu1 %vm3924_vm0, %v3923_v0  ;;  %3460 = vmatpush3.bf16.msra.mxu1 %v1543_v5 }
 0xf4c   :  { %3461 = vmatprep.subr.bf16.mxu1 %v3923_v0 }
0x100a   :  { %v1439_v10 = vpop.f32.mrf.mxu1 }
0x100b   :  { %v1445_v43 = vpack.c.bf16 %v1439_v10, %v1439_v10 }
0x100c   :  { %v3451_v44 = vpop.f32.mrf.mxu1 }
0x100d   :  { %3456 = vmatmul.mubr.msk.bf16.vlgmr.msra.gmra.mxu0 %vm240_vm2, %v1445_v43 }
0x100e   :  { %v1442_v45 = vpop.f32.mrf.mxu1  ;;  %3471 = vmatprep.mubr.msk.bf16.mxu0 %vm3924_vm0, %v3923_v0  ;;  %3468 = vmatpush3.bf16.msra.mxu0 %v1598_v19 }
0x100f   :  { %3469 = vmatprep.subr.bf16.mxu0 %v3923_v0 }
0x1010   :  { %v3452_v23 = vpop.f32.mrf.mxu1 }
0x1012   :  { %3470 = vmatpush3.bf16.msra.mxu0 %v1597_v21 }
0x1013   :  { %3481 = vmatprep.subr.bf16.mxu0 %v3923_v0 }
0x10cd   :  { %v1483_v48 = vpop.f32.mrf.mxu0 }
0x10ce   :  { %v1489_v49 = vadd.f32 %v1483_v48, %v1334_v7 }
0x10cf   :  { %v3457_v57 = vpop.f32.mrf.mxu0 }
0x10d0   :  { %v1495_v51 = vadd.f32 %v1493_v35, %v1489_v49  ;;  %v1537_v35 = vpack.c.bf16 %v150_v17, %v149_v15  ;;  %v1601_v49 = vsub.s32 3, %v4317_v11 }
0x10d1   :  { %v1486_v52 = vpop.f32.mrf.mxu0 }
0x10d2   :  { %v1497_v53 = vadd.f32 %v1495_v51, %v4075_v8  ;;  %v1538_v8 = vld [vmem:[#allocation10] sm:$0xff]  ;;  %v1602_v57 = vrot.slane %v4325_v27, %v1601_v49 }
0x10d3   :  { %v3458_v54 = vpop.f32.mrf.mxu0  ;;  %v1542_v13 = vpack.c.bf16 %v1539_v6, %v1538_v8 }
0x10d4   :  { %v1501_v55 = vsel %vm185_vm1, %v1497_v53, 0.0 }
0x10d5   :  { %1502 = vadd.xlane.f32.xlu1 %v1501_v55  ;;  %3462 = vmatpush3.bf16.msra.mxu1 %v1542_v13 }
0x10d6   :  { %3475 = vmatprep.subr.bf16.mxu1 %v3923_v0 }
0x10d8   :  { %3464 = vmatmul.mubr.msk.bf16.vlgmr.msra.gmra.mxu1 %vm185_vm1, %v1537_v35 }
0x10d9   :  { %1512 = vadd.xlane.f32.xlu1 %v1511_v58  ;;  %3477 = vmatprep.mubr.msk.bf16.mxu1 %vm3924_vm0, %v3923_v0 }
0x115e   :  { %v1503_v59 = vpop.xlane.xlu1 %1502 }
0x115f   :  { %v1506_v60 = vmul.f32 0.03125, %v1503_v59 }
0x1161   :  { %v1508_v61 = vsub.f32 %v1497_v53, %v1506_v60 }
0x1162   :  { %v1513_v22 = vpop.xlane.xlu1 %1512 }
0x1163   :  { %v1510_v62 = vmul.f32 %v1508_v61, %v1508_v61  ;;  %v1517_v24 = vmul.f32 0.03125, %v1513_v22 }
0x1165   :  { %v1514_v63 = vsel %vm185_vm1, %v1510_v62, 0.0  ;;  %v1519_v25 = vadd.f32 1e-05, %v1517_v24 }
0x1166   :  { %1515 = vadd.xlane.f32.xlu1 %v1514_v63 }
0x1167   :  { %3697 = vrsqrt.f32 %v1519_v25 }
0x1174   :  { %v3698_v32 = vpop.eup %3697 }
0x1175   :  { %v1523_v33 = vmul.f32 %v3698_v32, %v1507_v50 }
0x1177   :  { %v1529_v2 = vmul.f32 %v1528_v9, %v1523_v33 }
0x1179   :  { %v4379_v38 = vadd.f32 %v1534_v36, %v1529_v2 }
0x1198   :  { %v1585_v10 = vpop.f32.mrf.mxu1 }
0x1199   :  { %v1586_v43 = vadd.f32 %v1585_v10, %v1547_v41 }
0x119a   :  { %v3465_v44 = vpop.f32.mrf.mxu1 }
0x119b   :  { %v4395_v45 = vpack.c.bf16 %v1586_v43, %v1586_v43 }
0x119c   :  { %v1588_v23 = vpop.f32.mrf.mxu1 }
0x119d   :  { %v4397_v46 = vadd.f32 %v1588_v23, %v1547_v41  ;;  %1766 = vrot.lane.b32.xlu1 %v4395_v45, %s3925_s23  ;;  %v1659_v47 = vsel %vm240_vm2, %v4395_v45, 0  ;;  %v1647_v23 = vld [vmem:[#allocation11] sm:$0xff] }
0x119e   :  { %v3466_v48 = vpop.f32.mrf.mxu1  ;;  %3476 = vmatpush3.bf16.xpose.msra.mxu1 %v1659_v47  ;;  %v1648_v47 = vld [vmem:[#allocation11 + $0x8] sm:$0xff] }
0x119f   :  { %3487 = vmatprep.subr.bf16.mxu1 %v3923_v0  ;;  %v1651_v48 = vpack.c.bf16 %v1648_v47, %v1647_v23 }
0x11a1   :  { %v4452_v49 = vsel %vm304_vm4, %v1651_v48, 0 }
0x11ef   :  { %v1516_v28 = vpop.xlane.xlu1 %1515 }
0x11f0   :  { %v1518_v29 = vmul.f32 0.03125, %v1516_v28 }
0x11f2   :  { %v1520_v31 = vadd.f32 1e-05, %v1518_v29 }
0x11f4   :  { %3699 = vrsqrt.f32 %v1520_v31 }
0x1201   :  { %v3700_v7 = vpop.eup %3699 }
0x1202   :  { %v1524_v34 = vmul.f32 %v3700_v7, %v1508_v61  ;;  %v4421_v61 = vld [vmem:[#allocation8] sm:$0xf]  }
0x1203   :  { %v3192_v62 = vunpack.c.0.s8 %v4421_v61 }
0x1204   :  { %v1530_v37 = vmul.f32 %v1528_v9, %v1524_v34 }
0x1205   :  { %v165_v63 = vcvt.s32.f32 %v3192_v62 }
0x1206   :  { %v4381_v39 = vadd.f32 %v1534_v36, %v1530_v37 }
0x1207   :  { %vm167_vm6 = vcmp.gt.f32.partialorder %v165_v63, 0.0 }
0x1208   :  { %v1592_v4 = vpack.c.bf16 %v4381_v39, %v4379_v38  ;;  %v4425_v1 = vsel %vm167_vm6, 0.0, %v3928_v26 }
0x120a   :  { %3472 = vmatmul.mubr.msk.bf16.vlgmr.msra.gmra.mxu0 %vm185_vm1, %v1592_v4 }
0x120b   :  { %3483 = vmatprep.mubr.msk.bf16.mxu0 %vm3924_vm0, %v3923_v0 }
0x120f   :  { %v1767_v51 = vpop.permute.xlu1 %1766 }
0x1210   :  { %v1772_v55 = vsel %vm240_vm2, %v1767_v51, 0 }
0x12ca   :  { %v1640_v50 = vpop.f32.mrf.mxu0 }
0x12cb   :  { %v1641_v52 = vadd.f32 %v1640_v50, %v1602_v57 }
0x12cc   :  { %v3473_v53 = vpop.f32.mrf.mxu0 }
0x12cd   :  { %v4406_v54 = vpack.c.bf16 %v1641_v52, %v1641_v52 }
0x12ce   :  { %v1643_v56 = vpop.f32.mrf.mxu0 }
0x12cf   :  { %v4409_v58 = vadd.f32 %v1643_v56, %v1602_v57  ;;  %1764 = vrot.lane.b32.xlu0 %v4406_v54, %s3925_s23  ;;  %3478 = vmatmul.mubr.msk.bf16.vlgmr.msra.gmra.mxu1 %vm240_vm2, %v4406_v54  ;;  %v1876_v57 = vrot.slane %v1651_v48, 4 }
0x12d0   :  { %v3474_v59 = vpop.f32.mrf.mxu0  ;;  %3488 = vmatpush3.bf16.xpose.msra.mxu1 %v1772_v55  ;;  %3489 = vmatprep.mubr.msk.bf16.mxu1 %vm3924_vm0, %v3923_v0 }
0x12d1   :  { %3499 = vmatprep.subr.bf16.mxu1 %v3923_v0  ;;  %v4457_v50 = vsel %vm304_vm4, %v1876_v57, 0 }
0x1341   :  { %v1765_v60 = vpop.permute.xlu0 %1764 }
0x1342   :  { %3490 = vmatmul.mubr.msk.bf16.vlgmr.msra.gmra.mxu1 %vm240_vm2, %v1765_v60 }
0x1343   :  { %3501 = vmatprep.mubr.msk.bf16.mxu1 %vm3924_vm0, %v3923_v0  ;;  %3500 = vmatpush3.bf16.msra.mxu1 %v4457_v50 }
0x1344   :  { %3511 = vmatprep.subr.bf16.mxu1 %v3923_v0 }
0x138f   :  { %v1695_v3 = vpop.f32.mrf.mxu1 }
0x1390   :  { %v1696_v5 = vadd.f32 %v1695_v3, %v4425_v1 }
0x1391   :  { %v3479_v8 = vpop.f32.mrf.mxu1 }
0x1392   :  { %v1701_v6 = vsel %vm240_vm2, %v1696_v5, -inf }
0x1393   :  { %1702 = vmax.xlane.f32.xlu0 %v1701_v6  ;;  %v1698_v13 = vpop.f32.mrf.mxu1 }
0x1395   :  { %v3480_v15 = vpop.f32.mrf.mxu1 }
0x1402   :  { %v1808_v17 = vpop.f32.mrf.mxu1 }
0x1403   :  { %v1809_v35 = vadd.f32 %v1808_v17, %v4425_v1 }
0x1404   :  { %v3491_v14 = vpop.f32.mrf.mxu1 }
0x1405   :  { %v1814_v16 = vsel %vm240_vm2, %v1809_v35, -inf }
0x1406   :  { %1815 = vmax.xlane.f32.xlu1 %v1814_v16  ;;  %v1811_v19 = vpop.f32.mrf.mxu1 }
0x1408   :  { %v3492_v20 = vpop.f32.mrf.mxu1 }
0x1417   :  { %1826 = vrot.lane.b32.xlu1 %v4395_v45, %s3927_s27 }
0x141b   :  { %1969 = vrot.lane.b32.xlu1 %v4406_v54, %s3931_s1 }
0x141c   :  { %v1703_v18 = vpop.xlane.xlu0 %1702 }
0x141d   :  { %v1704_v21 = vsub.f32 %v1696_v5, %v1703_v18 }
0x141f   :  { %v1705_v22 = vmul.f32 1.442695, %v1704_v21 }
0x1421   :  { %3701 = vpow2.f32 %v1705_v22 }
0x142e   :  { %v3702_v24 = vpop.eup %3701 }
0x142f   :  { %v1707_v25 = vsel %vm240_vm2, %v3702_v24, 0.0 }
0x1430   :  { %1708 = vadd.xlane.f32.xlu0 %v1707_v25 }
0x148f   :  { %v1816_v28 = vpop.xlane.xlu1 %1815 }
0x1490   :  { %v1817_v29 = vsub.f32 %v1809_v35, %v1816_v28 }
0x1492   :  { %v1818_v31 = vmul.f32 1.442695, %v1817_v29 }
0x1493   :  { %v1827_v37 = vpop.permute.xlu1 %1826 }
0x1494   :  { %3703 = vpow2.f32 %v1818_v31  ;;  %v1832_v41 = vsel %vm304_vm4, %v1827_v37, 0 }
0x1497   :  { %v1970_v6 = vpop.permute.xlu1 %1969 }
0x14a1   :  { %v3704_v32 = vpop.eup %3703 }
0x14a2   :  { %v1820_v33 = vsel %vm240_vm2, %v3704_v32, 0.0 }
0x14a3   :  { %1821 = vadd.xlane.f32.xlu0 %v1820_v33 }
0x14b9   :  { %1714 = vrot.lane.b32.xlu0 %v4395_v45, %s3926_s24  ;;  %v1709_v9 = vpop.xlane.xlu0 %1708 }
0x14ba   :  { %3705 = vrcp.f32 %v1709_v9 }
0x14bd   :  { %1971 = vrot.lane.b32.xlu0 %v4395_v45, %s3931_s1 }
0x14c7   :  { %v3706_v42 = vpop.eup %3705 }
0x14c8   :  { %v1711_v34 = vmul.f32 %v3706_v42, %v3702_v24 }
0x14ca   :  { %v1712_v4 = vpack.c.bf16 %v1711_v34, %v1711_v34 }
0x152c   :  { %v1822_v7 = vpop.xlane.xlu0 %1821 }
0x152d   :  { %3707 = vrcp.f32 %v1822_v7 }
0x1530   :  { %v1715_v2 = vpop.permute.xlu0 %1714 }
0x1531   :  { %v1720_v36 = vsel %vm304_vm4, %v1715_v2, 0 }
0x1532   :  { %3482 = vmatpush3.bf16.msra.mxu0 %v1720_v36 }
0x1533   :  { %3493 = vmatprep.subr.bf16.mxu0 %v3923_v0 }
0x1534   :  { %v1972_v59 = vpop.permute.xlu0 %1971 }
0x1535   :  { %3484 = vmatmul.mubr.msk.bf16.vlgmr.msra.gmra.mxu0 %vm240_vm2, %v1712_v4  ;;  %v1977_v3 = vsel %vm240_vm2, %v1972_v59, 0 }
0x1536   :  { %3494 = vmatpush3.bf16.msra.mxu0 %v1832_v41  ;;  %3495 = vmatprep.mubr.msk.bf16.mxu0 %vm3924_vm0, %v3923_v0 }
0x1537   :  { %3505 = vmatprep.subr.bf16.mxu0 %v3923_v0 }
0x153a   :  { %v3708_v10 = vpop.eup %3707 }
0x153b   :  { %v1824_v43 = vmul.f32 %v3708_v10, %v3704_v32 }
0x153d   :  { %v1825_v44 = vpack.c.bf16 %v1824_v43, %v1824_v43  ;;  %v1649_v43 = vld [vmem:[#allocation11 + $0x10] sm:$0xff] }
0x153f   :  { %3496 = vmatmul.mubr.msk.bf16.vlgmr.msra.gmra.mxu0 %vm240_vm2, %v1825_v44  ;;  %v1650_v44 = vld [vmem:[#allocation11 + $0x18] sm:$0xff] }
0x1540   :  { %3507 = vmatprep.mubr.msk.bf16.mxu0 %vm3924_vm0, %v3923_v0  ;;  %3506 = vmatpush3.bf16.msra.mxu0 %v4452_v49  ;;  %v1652_v23 = vpack.c.bf16 %v1650_v44, %v1649_v43 }
0x1541   :  { %3517 = vmatprep.subr.bf16.mxu0 %v3923_v0 }
0x1542   :  { %v4494_v47 = vsel %vm304_vm4, %v1652_v23, 0 }
0x15f5   :  { %v1756_v51 = vpop.f32.mrf.mxu0 }
0x15f6   :  { %v1762_v52 = vpack.c.bf16 %v1756_v51, %v1756_v51 }
0x15f7   :  { %v3485_v53 = vpop.f32.mrf.mxu0 }
0x15f8   :  { %3508 = vmatmul.mubr.msk.bf16.vlgmr.msra.gmra.mxu0 %vm240_vm2, %v1762_v52 }
0x15f9   :  { %v1759_v55 = vpop.f32.mrf.mxu0  ;;  %3519 = vmatprep.mubr.msk.bf16.mxu0 %vm3924_vm0, %v3923_v0 }
0x15fb   :  { %v3486_v56 = vpop.f32.mrf.mxu0 }
0x15ff   :  { %v1868_v60 = vpop.f32.mrf.mxu0 }
0x1600   :  { %v1874_v62 = vpack.c.bf16 %v1868_v60, %v1868_v60 }
0x1601   :  { %v3497_v63 = vpop.f32.mrf.mxu0 }
0x1602   :  { %3502 = vmatmul.mubr.msk.bf16.vlgmr.msra.gmra.mxu1 %vm240_vm2, %v1874_v62 }
0x1603   :  { %3512 = vmatpush3.bf16.xpose.msra.mxu1 %v1977_v3  ;;  %v1871_v5 = vpop.f32.mrf.mxu0  ;;  %3513 = vmatprep.mubr.msk.bf16.mxu1 %vm3924_vm0, %v3923_v0  ;;  %v4505_v3 = vpack.c.bf16 %v4397_v46, %v4397_v46 }
0x1604   :  { %3523 = vmatprep.subr.bf16.mxu1 %v3923_v0  ;;  %v4511_v5 = vpack.c.bf16 %v4409_v58, %v4409_v58 }
0x1605   :  { %v3498_v8 = vpop.f32.mrf.mxu0 }
0x160a   :  { %3514 = vmatmul.mubr.msk.bf16.vlgmr.msra.gmra.mxu1 %vm240_vm2, %v1970_v6 }
0x160b   :  { %3525 = vmatprep.mubr.msk.bf16.mxu1 %vm3924_vm0, %v3923_v0  ;;  %3524 = vmatpush3.bf16.msra.mxu1 %v4494_v47 }
0x160c   :  { %3535 = vmatprep.subr.bf16.mxu1 %v3923_v0 }
0x16b8   :  { %v1963_v13 = vpop.f32.mrf.mxu0 }
0x16ba   :  { %v3509_v15 = vpop.f32.mrf.mxu0 }
0x16bc   :  { %v1966_v17 = vpop.f32.mrf.mxu0 }
0x16be   :  { %v3510_v35 = vpop.f32.mrf.mxu0 }
0x16c2   :  { %v1917_v14 = vpop.f32.mrf.mxu1 }
0x16c3   :  { %v4472_v16 = vadd.f32 %v1963_v13, %v1917_v14 }
0x16c4   :  { %v3503_v19 = vpop.f32.mrf.mxu1 }
0x16c6   :  { %v1920_v20 = vpop.f32.mrf.mxu1 }
0x16c8   :  { %v3504_v18 = vpop.f32.mrf.mxu1 }
0x16ca   :  { %v2013_v21 = vpop.f32.mrf.mxu1 }
0x16cb   :  { %v2014_v22 = vadd.f32 %v2013_v21, %v4425_v1 }
0x16cc   :  { %v3515_v24 = vpop.f32.mrf.mxu1 }
0x16cd   :  { %v2019_v25 = vsel %vm240_vm2, %v2014_v22, -inf }
0x16ce   :  { %2020 = vmax.xlane.f32.xlu0 %v2019_v25  ;;  %v2016_v28 = vpop.f32.mrf.mxu1 }
0x16d0   :  { %v3516_v29 = vpop.f32.mrf.mxu1 }
0x16d1   :  { %v2239_v29 = vrot.slane %v1652_v23, 4 }
0x16e4   :  { %2031 = vrot.lane.b32.xlu0 %v4395_v45, %s3932_s0 }
0x16e8   :  { %2127 = vrot.lane.b32.xlu0 %v4406_v54, %s3934_s26 }
0x1757   :  { %v2021_v31 = vpop.xlane.xlu0 %2020 }
0x1758   :  { %v2022_v32 = vsub.f32 %v2014_v22, %v2021_v31  ;;  %v4541_v31 = vsel %vm304_vm4, %v2239_v29, 0 }
0x175a   :  { %v2023_v33 = vmul.f32 1.442695, %v2022_v32  ;;  %v3193_v32 = vunpack.c.1.s8 %v4421_v61 }
0x175b   :  { %v2032_v9 = vpop.permute.xlu0 %2031 }
0x175c   :  { %3709 = vpow2.f32 %v2023_v33  ;;  %v2037_v42 = vsel %vm304_vm4, %v2032_v9, 0  ;;  %v166_v33 = vcvt.s32.f32 %v3193_v32 }
0x175d   :  { %3518 = vmatpush3.bf16.msra.mxu0 %v2037_v42 }
0x175e   :  { %3529 = vmatprep.subr.bf16.mxu0 %v3923_v0  ;;  %vm168_vm7 = vcmp.gt.f32.partialorder %v166_v33, 0.0 }
0x175f   :  { %v2128_v10 = vpop.permute.xlu0 %2127 }
0x1769   :  { %v3710_v7 = vpop.eup %3709 }
0x176a   :  { %v2025_v34 = vsel %vm240_vm2, %v3710_v7, 0.0 }
0x176b   :  { %2026 = vadd.xlane.f32.xlu1 %v2025_v34 }
0x177c   :  { %2129 = vrot.lane.b32.xlu1 %v4395_v45, %s3934_s26 }
0x17f4   :  { %v2027_v2 = vpop.xlane.xlu1 %2026 }
0x17f5   :  { %3711 = vrcp.f32 %v2027_v2  ;;  %v4550_v2 = vsel %vm168_vm7, 0.0, %v3928_v26 }
0x17f8   :  { %v2130_v37 = vpop.permute.xlu1 %2129 }
0x17f9   :  { %v2135_v41 = vsel %vm240_vm2, %v2130_v37, 0 }
0x1802   :  { %v3712_v54 = vpop.eup %3711 }
0x1803   :  { %v2029_v36 = vmul.f32 %v3712_v54, %v3710_v7 }
0x1805   :  { %v2030_v4 = vpack.c.bf16 %v2029_v36, %v2029_v36 }
0x1807   :  { %3520 = vmatmul.mubr.msk.bf16.vlgmr.msra.gmra.mxu0 %vm240_vm2, %v2030_v4 }
0x1808   :  { %3530 = vmatpush3.bf16.xpose.msra.mxu0 %v2135_v41  ;;  %3531 = vmatprep.mubr.msk.bf16.mxu0 %vm3924_vm0, %v3923_v0 }
0x1809   :  { %3541 = vmatprep.subr.bf16.mxu0 %v3923_v0 }
0x180f   :  { %3532 = vmatmul.mubr.msk.bf16.vlgmr.msra.gmra.mxu0 %vm240_vm2, %v2128_v10 }
0x1810   :  { %3543 = vmatprep.mubr.msk.bf16.mxu0 %vm3924_vm0, %v3923_v0  ;;  %3542 = vmatpush3.bf16.msra.mxu0 %v4541_v31 }
0x1811   :  { %3553 = vmatprep.subr.bf16.mxu0 %v3923_v0 }
0x18c7   :  { %v2073_v48 = vpop.f32.mrf.mxu0 }
0x18c8   :  { %v2079_v57 = vpack.c.bf16 %v2073_v48, %v2073_v48 }
0x18c9   :  { %v3521_v51 = vpop.f32.mrf.mxu0 }
0x18ca   :  { %3526 = vmatmul.mubr.msk.bf16.vlgmr.msra.gmra.mxu1 %vm240_vm2, %v2079_v57 }
0x18cb   :  { %v2076_v52 = vpop.f32.mrf.mxu0  ;;  %3537 = vmatprep.mubr.msk.bf16.mxu1 %vm3924_vm0, %v3923_v0 }
0x18cd   :  { %v3522_v53 = vpop.f32.mrf.mxu0 }
0x18cf   :  { %v2171_v55 = vpop.f32.mrf.mxu0 }
0x18d0   :  { %v2172_v56 = vadd.f32 %v2171_v55, %v4425_v1 }
0x18d1   :  { %v3533_v59 = vpop.f32.mrf.mxu0 }
0x18d2   :  { %v2177_v60 = vsel %vm240_vm2, %v2172_v56, -inf }
0x18d3   :  { %2178 = vmax.xlane.f32.xlu1 %v2177_v60  ;;  %v2174_v62 = vpop.f32.mrf.mxu0 }
0x18d5   :  { %v3534_v63 = vpop.f32.mrf.mxu0 }
0x18e4   :  { %2400 = vrot.lane.b32.xlu1 %v4505_v3, %s3925_s23 }
0x18e8   :  { %2398 = vrot.lane.b32.xlu1 %v4511_v5, %s3925_s23 }
0x195c   :  { %v2179_v1 = vpop.xlane.xlu1 %2178 }
0x195d   :  { %v2180_v8 = vsub.f32 %v2172_v56, %v2179_v1 }
0x195f   :  { %v2181_v6 = vmul.f32 1.442695, %v2180_v8 }
0x1961   :  { %3713 = vpow2.f32 %v2181_v6 }
0x196e   :  { %v3714_v13 = vpop.eup %3713 }
0x196f   :  { %v2183_v15 = vsel %vm240_vm2, %v3714_v13, 0.0 }
0x1970   :  { %2184 = vadd.xlane.f32.xlu0 %v2183_v15 }
0x1986   :  { %2189 = vrot.lane.b32.xlu0 %v4395_v45, %s3933_s25  ;;  %v2293_v45 = vsel %vm240_vm2, %v4505_v3, 0 }
0x198a   :  { %v2120_v46 = vpop.f32.mrf.mxu1 }
0x198b   :  { %v4519_v17 = vadd.f32 %v2120_v46, %v4472_v16  ;;  %v2401_v16 = vpop.permute.xlu1 %2400 }
0x198c   :  { %v3527_v58 = vpop.f32.mrf.mxu1  ;;  %v2406_v25 = vsel %vm240_vm2, %v2401_v16, 0 }
0x198e   :  { %v2123_v35 = vpop.f32.mrf.mxu1 }
0x198f   :  { %v2399_v28 = vpop.permute.xlu1 %2398 }
0x1990   :  { %v3528_v14 = vpop.f32.mrf.mxu1 }
0x19f9   :  { %v2185_v19 = vpop.xlane.xlu0 %2184 }
0x19fa   :  { %3715 = vrcp.f32 %v2185_v19 }
0x19fd   :  { %v2190_v20 = vpop.permute.xlu0 %2189 }
0x19fe   :  { %v2195_v18 = vsel %vm304_vm4, %v2190_v20, 0 }
0x19ff   :  { %3536 = vmatpush3.bf16.msra.mxu1 %v2195_v18 }
0x1a00   :  { %3547 = vmatprep.subr.bf16.mxu1 %v3923_v0 }
0x1a07   :  { %v3716_v21 = vpop.eup %3715 }
0x1a08   :  { %v2187_v22 = vmul.f32 %v3716_v21, %v3714_v13 }
0x1a0a   :  { %v2188_v24 = vpack.c.bf16 %v2187_v22, %v2187_v22 }
0x1a0c   :  { %3538 = vmatmul.mubr.msk.bf16.vlgmr.msra.gmra.mxu1 %vm240_vm2, %v2188_v24 }
0x1a0d   :  { %3548 = vmatpush3.bf16.xpose.msra.mxu1 %v2293_v45  ;;  %3549 = vmatprep.mubr.msk.bf16.mxu1 %vm3924_vm0, %v3923_v0 }
0x1a0e   :  { %3559 = vmatprep.subr.bf16.mxu1 %v3923_v0 }
0x1a14   :  { %3550 = vmatmul.mubr.msk.bf16.vlgmr.msra.gmra.mxu1 %vm240_vm2, %v4511_v5 }
0x1a15   :  { %3560 = vmatpush3.bf16.xpose.msra.mxu1 %v2406_v25  ;;  %3561 = vmatprep.mubr.msk.bf16.mxu1 %vm3924_vm0, %v3923_v0 }
0x1a16   :  { %3571 = vmatprep.subr.bf16.mxu1 %v3923_v0 }
0x1a1c   :  { %3562 = vmatmul.mubr.msk.bf16.vlgmr.msra.gmra.mxu1 %vm240_vm2, %v2399_v28 }
0x1a1d   :  { %3572 = vmatpush3.bf16.msra.mxu1 %v4457_v50  ;;  %3573 = vmatprep.mubr.msk.bf16.mxu1 %vm3924_vm0, %v3923_v0 }
0x1a1e   :  { %3583 = vmatprep.subr.bf16.mxu1 %v3923_v0 }
0x1acc   :  { %v2231_v9 = vpop.f32.mrf.mxu1 }
0x1acd   :  { %v2237_v42 = vpack.c.bf16 %v2231_v9, %v2231_v9 }
0x1ace   :  { %v3539_v7 = vpop.f32.mrf.mxu1 }
0x1acf   :  { %3544 = vmatmul.mubr.msk.bf16.vlgmr.msra.gmra.mxu0 %vm240_vm2, %v2237_v42 }
0x1ad0   :  { %v2234_v50 = vpop.f32.mrf.mxu1  ;;  %3555 = vmatprep.mubr.msk.bf16.mxu0 %vm3924_vm0, %v3923_v0 }
0x1ad2   :  { %v3540_v34 = vpop.f32.mrf.mxu1 }
0x1ad4   :  { %v2329_v54 = vpop.f32.mrf.mxu1 }
0x1ad5   :  { %v2330_v36 = vadd.f32 %v2329_v54, %v4550_v2 }
0x1ad6   :  { %v3551_v37 = vpop.f32.mrf.mxu1 }
0x1ad7   :  { %v2335_v61 = vsel %vm240_vm2, %v2330_v36, -inf }
0x1ad8   :  { %2336 = vmax.xlane.f32.xlu0 %v2335_v61  ;;  %v2332_v4 = vpop.f32.mrf.mxu1 }
0x1ada   :  { %v3552_v41 = vpop.f32.mrf.mxu1 }
0x1adc   :  { %v2442_v10 = vpop.f32.mrf.mxu1 }
0x1add   :  { %v2443_v43 = vadd.f32 %v2442_v10, %v4550_v2 }
0x1ade   :  { %v3563_v44 = vpop.f32.mrf.mxu1 }
0x1adf   :  { %v2448_v23 = vsel %vm240_vm2, %v2443_v43, -inf }
0x1ae0   :  { %2449 = vmax.xlane.f32.xlu1 %v2448_v23  ;;  %v2445_v48 = vpop.f32.mrf.mxu1 }
0x1ae2   :  { %v3564_v57 = vpop.f32.mrf.mxu1 }
0x1af1   :  { %2348 = vrot.lane.b32.xlu1 %v4505_v3, %s3926_s24 }
0x1af5   :  { %2597 = vrot.lane.b32.xlu1 %v4505_v3, %s3931_s1 }
0x1af9   :  { %2595 = vrot.lane.b32.xlu1 %v4511_v5, %s3931_s1 }
0x1b61   :  { %v2337_v26 = vpop.xlane.xlu0 %2336 }
0x1b62   :  { %v2338_v51 = vsub.f32 %v2330_v36, %v2337_v26 }
0x1b64   :  { %v2339_v52 = vmul.f32 1.442695, %v2338_v51 }
0x1b66   :  { %3717 = vpow2.f32 %v2339_v52 }
0x1b69   :  { %v2450_v53 = vpop.xlane.xlu1 %2449 }
0x1b6a   :  { %v2451_v55 = vsub.f32 %v2443_v43, %v2450_v53 }
0x1b6c   :  { %v2452_v56 = vmul.f32 1.442695, %v2451_v55 }
0x1b6d   :  { %v2349_v59 = vpop.permute.xlu1 %2348 }
0x1b6e   :  { %3719 = vpow2.f32 %v2452_v56  ;;  %v2354_v60 = vsel %vm304_vm4, %v2349_v59, 0 }
0x1b6f   :  { %3554 = vmatpush3.bf16.msra.mxu0 %v2354_v60 }
0x1b70   :  { %3565 = vmatprep.subr.bf16.mxu0 %v3923_v0 }
0x1b71   :  { %v2598_v33 = vpop.permute.xlu1 %2597 }
0x1b73   :  { %v3718_v62 = vpop.eup %3717 }
0x1b74   :  { %v2341_v63 = vsel %vm240_vm2, %v3718_v62, 0.0 }
0x1b75   :  { %2342 = vadd.xlane.f32.xlu0 %v2341_v63  ;;  %v2596_v54 = vpop.permute.xlu1 %2595 }
0x1b7b   :  { %v3720_v1 = vpop.eup %3719 }
0x1b7c   :  { %v2454_v8 = vsel %vm240_vm2, %v3720_v1, 0.0 }
0x1b7d   :  { %2455 = vadd.xlane.f32.xlu0 %v2454_v8 }
0x1b8f   :  { %v2280_v6 = vpop.f32.mrf.mxu0 }
0x1b90   :  { %v4567_v13 = vadd.f32 %v2280_v6, %v4519_v17 }
0x1b91   :  { %v3545_v15 = vpop.f32.mrf.mxu0 }
0x1b93   :  { %v2283_v46 = vpop.f32.mrf.mxu0  ;;  %2460 = vrot.lane.b32.xlu0 %v4505_v3, %s3927_s27 }
0x1b95   :  { %v3546_v58 = vpop.f32.mrf.mxu0 }
0x1bfe   :  { %v2343_v35 = vpop.xlane.xlu0 %2342 }
0x1bff   :  { %3721 = vrcp.f32 %v2343_v35  ;;  %v2907_v35 = vsub.s32 4, %v4317_v11 }
0x1c06   :  { %v2456_v14 = vpop.xlane.xlu0 %2455 }
0x1c07   :  { %3723 = vrcp.f32 %v2456_v14 }
0x1c0a   :  { %v2461_v18 = vpop.permute.xlu0 %2460 }
0x1c0b   :  { %v2466_v22 = vsel %vm304_vm4, %v2461_v18, 0  ;;  %v2908_v18 = vrot.slane %v4325_v27, %v2907_v35  ;;  %v2952_v35 = vld [vmem:[#allocation13] sm:$0xff] }
0x1c0c   :  { %v3722_v19 = vpop.eup %3721 }
0x1c0d   :  { %v2345_v20 = vmul.f32 %v3722_v19, %v3718_v62 }
0x1c0f   :  { %v2346_v21 = vpack.c.bf16 %v2345_v20, %v2345_v20 }
0x1c11   :  { %3556 = vmatmul.mubr.msk.bf16.vlgmr.msra.gmra.mxu0 %vm240_vm2, %v2346_v21 }
0x1c12   :  { %3566 = vmatpush3.bf16.msra.mxu0 %v2466_v22  ;;  %3567 = vmatprep.mubr.msk.bf16.mxu0 %vm3924_vm0, %v3923_v0 }
0x1c13   :  { %3577 = vmatprep.subr.bf16.mxu0 %v3923_v0 }
0x1c14   :  { %v3724_v17 = vpop.eup %3723 }
0x1c15   :  { %v2458_v24 = vmul.f32 %v3724_v17, %v3720_v1 }
0x1c17   :  { %v2459_v45 = vpack.c.bf16 %v2458_v24, %v2458_v24 }
0x1c19   :  { %3568 = vmatmul.mubr.msk.bf16.vlgmr.msra.gmra.mxu0 %vm240_vm2, %v2459_v45 }
0x1c1a   :  { %3578 = vmatpush3.bf16.msra.mxu0 %v4452_v49  ;;  %3579 = vmatprep.mubr.msk.bf16.mxu0 %vm3924_vm0, %v3923_v0  ;;  %v2603_v49 = vsel %vm240_vm2, %v2598_v33, 0 }
0x1c1b   :  { %3589 = vmatprep.subr.bf16.mxu0 %v3923_v0 }
0x1cd1   :  { %v2390_v16 = vpop.f32.mrf.mxu0 }
0x1cd2   :  { %v2396_v25 = vpack.c.bf16 %v2390_v16, %v2390_v16 }
0x1cd3   :  { %v3557_v28 = vpop.f32.mrf.mxu0 }
0x1cd4   :  { %3580 = vmatmul.mubr.msk.bf16.vlgmr.msra.gmra.mxu0 %vm240_vm2, %v2396_v25 }
0x1cd5   :  { %v2393_v29 = vpop.f32.mrf.mxu0  ;;  %3591 = vmatprep.mubr.msk.bf16.mxu0 %vm3924_vm0, %v3923_v0 }
0x1cd7   :  { %v3558_v32 = vpop.f32.mrf.mxu0 }
0x1cd9   :  { %v2502_v9 = vpop.f32.mrf.mxu0 }
0x1cda   :  { %v2508_v42 = vpack.c.bf16 %v2502_v9, %v2502_v9 }
0x1cdb   :  { %v3569_v7 = vpop.f32.mrf.mxu0 }
0x1cdc   :  { %3574 = vmatmul.mubr.msk.bf16.vlgmr.msra.gmra.mxu1 %vm240_vm2, %v2508_v42 }
0x1cdd   :  { %3584 = vmatpush3.bf16.xpose.msra.mxu1 %v2603_v49  ;;  %v2505_v50 = vpop.f32.mrf.mxu0  ;;  %3585 = vmatprep.mubr.msk.bf16.mxu1 %vm3924_vm0, %v3923_v0 }
0x1cde   :  { %3595 = vmatprep.subr.bf16.mxu1 %v3923_v0 }
0x1cdf   :  { %v3570_v34 = vpop.f32.mrf.mxu0 }
0x1ce4   :  { %3586 = vmatmul.mubr.msk.bf16.vlgmr.msra.gmra.mxu1 %vm240_vm2, %v2596_v54 }
0x1ce5   :  { %3596 = vmatpush3.bf16.msra.mxu1 %v4494_v47  ;;  %3597 = vmatprep.mubr.msk.bf16.mxu1 %vm3924_vm0, %v3923_v0 }
0x1ce6   :  { %3607 = vmatprep.subr.bf16.mxu1 %v3923_v0 }
0x1d94   :  { %v2589_v36 = vpop.f32.mrf.mxu0 }
0x1d96   :  { %v3581_v37 = vpop.f32.mrf.mxu0 }
0x1d98   :  { %v2592_v61 = vpop.f32.mrf.mxu0 }
0x1d9a   :  { %v3582_v4 = vpop.f32.mrf.mxu0 }
0x1d9c   :  { %v2546_v41 = vpop.f32.mrf.mxu1 }
0x1d9d   :  { %v4594_v10 = vadd.f32 %v2589_v36, %v2546_v41 }
0x1d9e   :  { %v3575_v43 = vpop.f32.mrf.mxu1 }
0x1da0   :  { %v2549_v44 = vpop.f32.mrf.mxu1 }
0x1da2   :  { %v3576_v23 = vpop.f32.mrf.mxu1 }
0x1da4   :  { %v2639_v48 = vpop.f32.mrf.mxu1 }
0x1da5   :  { %v2640_v57 = vadd.f32 %v2639_v48, %v4550_v2 }
0x1da6   :  { %v3587_v26 = vpop.f32.mrf.mxu1 }
0x1da7   :  { %v2645_v47 = vsel %vm240_vm2, %v2640_v57, -inf }
0x1da8   :  { %2646 = vmax.xlane.f32.xlu0 %v2645_v47  ;;  %v2642_v51 = vpop.f32.mrf.mxu1 }
0x1daa   :  { %v3588_v52 = vpop.f32.mrf.mxu1 }
0x1dbe   :  { %2657 = vrot.lane.b32.xlu0 %v4505_v3, %s3932_s0 }
0x1dc2   :  { %2750 = vrot.lane.b32.xlu0 %v4511_v5, %s3934_s26 }
0x1e31   :  { %v2647_v53 = vpop.xlane.xlu0 %2646 }
0x1e32   :  { %v2648_v55 = vsub.f32 %v2640_v57, %v2647_v53 }
0x1e34   :  { %v2649_v56 = vmul.f32 1.442695, %v2648_v55 }
0x1e35   :  { %v2658_v59 = vpop.permute.xlu0 %2657 }
0x1e36   :  { %3725 = vpow2.f32 %v2649_v56  ;;  %v2663_v60 = vsel %vm304_vm4, %v2658_v59, 0 }
0x1e37   :  { %3590 = vmatpush3.bf16.msra.mxu0 %v2663_v60 }
0x1e38   :  { %3601 = vmatprep.subr.bf16.mxu0 %v3923_v0 }
0x1e39   :  { %v2751_v58 = vpop.permute.xlu0 %2750 }
0x1e43   :  { %v3726_v62 = vpop.eup %3725 }
0x1e44   :  { %v2651_v63 = vsel %vm240_vm2, %v3726_v62, 0.0 }
0x1e45   :  { %2652 = vadd.xlane.f32.xlu1 %v2651_v63 }
0x1e56   :  { %2752 = vrot.lane.b32.xlu1 %v4505_v3, %s3934_s26 }
0x1ece   :  { %v2653_v1 = vpop.xlane.xlu1 %2652 }
0x1ecf   :  { %3727 = vrcp.f32 %v2653_v1 }
0x1ed2   :  { %v2753_v6 = vpop.permute.xlu1 %2752 }
0x1ed3   :  { %v2758_v46 = vsel %vm240_vm2, %v2753_v6, 0 }
0x1edc   :  { %v3728_v5 = vpop.eup %3727 }
0x1edd   :  { %v2655_v8 = vmul.f32 %v3728_v5, %v3726_v62 }
0x1edf   :  { %v2656_v15 = vpack.c.bf16 %v2655_v8, %v2655_v8 }
0x1ee1   :  { %3592 = vmatmul.mubr.msk.bf16.vlgmr.msra.gmra.mxu0 %vm240_vm2, %v2656_v15  ;;  %v2954_v15 = vld [vmem:[#allocation13 + $0x10] sm:$0xff] }
0x1ee2   :  { %3602 = vmatpush3.bf16.xpose.msra.mxu0 %v2758_v46  ;;  %3603 = vmatprep.mubr.msk.bf16.mxu0 %vm3924_vm0, %v3923_v0  ;;  %v2955_v46 = vld [vmem:[#allocation13 + $0x18] sm:$0xff] }
0x1ee3   :  { %3613 = vmatprep.subr.bf16.mxu0 %v3923_v0 }
0x1ee9   :  { %3604 = vmatmul.mubr.msk.bf16.vlgmr.msra.gmra.mxu0 %vm240_vm2, %v2751_v58  ;;  %v2957_v58 = vpack.c.bf16 %v2955_v46, %v2954_v15 }
0x1eea   :  { %3614 = vmatpush3.bf16.msra.mxu0 %v4541_v31  ;;  %3615 = vmatprep.mubr.msk.bf16.mxu0 %vm3924_vm0, %v3923_v0  ;;  %v4623_v31 = vadd.f32 %v2908_v18, %v4567_v13 }
0x1eeb   :  { %3627 = vmatprep.subr.bf16.mxu0 %v3923_v0 }
0x1eec   :  { %v2911_v25 = vadd.f32 %v4623_v31, %v4379_v38 }
0x1eee   :  { %v2913_v29 = vsel %vm185_vm1, %v2911_v25, 0.0 }
0x1fa1   :  { %v2699_v14 = vpop.f32.mrf.mxu0 }
0x1fa2   :  { %v2705_v19 = vpack.c.bf16 %v2699_v14, %v2699_v14 }
0x1fa3   :  { %v3593_v20 = vpop.f32.mrf.mxu0 }
0x1fa4   :  { %3598 = vmatmul.mubr.msk.bf16.vlgmr.msra.gmra.mxu1 %vm240_vm2, %v2705_v19  ;;  %v3015_v19 = vld [vmem:[%s4715_s10 + $0x30] sm:$0xff]  ;;  %v3016_v20 = vld [vmem:[%s4715_s10 + $0x38] sm:$0xff] }
0x1fa5   :  { %v2702_v21 = vpop.f32.mrf.mxu0  ;;  %3609 = vmatprep.mubr.msk.bf16.mxu1 %vm3924_vm0, %v3923_v0 }
0x1fa7   :  { %v3594_v22 = vpop.f32.mrf.mxu0 }
0x1fa9   :  { %v2794_v17 = vpop.f32.mrf.mxu0 }
0x1faa   :  { %v2795_v24 = vadd.f32 %v2794_v17, %v4550_v2 }
0x1fab   :  { %v3605_v45 = vpop.f32.mrf.mxu0 }
0x1fac   :  { %v2800_v16 = vsel %vm240_vm2, %v2795_v24, -inf }
0x1fad   :  { %2801 = vmax.xlane.f32.xlu1 %v2800_v16  ;;  %v2797_v27 = vpop.f32.mrf.mxu0 }
0x1faf   :  { %v3606_v28 = vpop.f32.mrf.mxu0 }
0x1fb1   :  { %2914 = vadd.xlane.f32.xlu1 %v2913_v29  ;;  %v3741_v29 = vld [vmem:[%s4718_s13] sm:$0xff] }
0x2036   :  { %v2802_v32 = vpop.xlane.xlu1 %2801 }
0x2037   :  { %v2803_v33 = vsub.f32 %v2795_v24, %v2802_v32 }
0x2039   :  { %v2804_v9 = vmul.f32 1.442695, %v2803_v33  ;;  %v2947_v33 = vsub.s32 6, %v4317_v11 }
0x203a   :  { %v2915_v23 = vpop.xlane.xlu1 %2914 }
0x203b   :  { %3729 = vpow2.f32 %v2804_v9  ;;  %v2919_v48 = vmul.f32 0.03125, %v2915_v23 }
0x203d   :  { %v2921_v51 = vsub.f32 %v2911_v25, %v2919_v48  ;;  %v2941_v25 = vsub.s32 5, %v4317_v11 }
0x203f   :  { %v2923_v60 = vmul.f32 %v2921_v51, %v2921_v51  ;;  %v2942_v32 = vrot.slane %v3741_v29, %v2941_v25 }
0x2041   :  { %v2925_v62 = vsel %vm185_vm1, %v2923_v60, 0.0 }
0x2048   :  { %v3730_v13 = vpop.eup %3729 }
0x2049   :  { %v2806_v42 = vsel %vm240_vm2, %v3730_v13, 0.0 }
0x204a   :  { %2807 = vadd.xlane.f32.xlu0 %v2806_v42 }
0x2060   :  { %2812 = vrot.lane.b32.xlu0 %v4505_v3, %s3933_s25 }
0x2064   :  { %v2743_v2 = vpop.f32.mrf.mxu1 }
0x2065   :  { %v2749_v38 = vadd.f32 %v2743_v2, %v4594_v10  ;;  %v2948_v2 = vrot.slane %v3741_v29, %v2947_v33 }
0x2066   :  { %v3599_v7 = vpop.f32.mrf.mxu1 }
0x2068   :  { %v2746_v49 = vpop.f32.mrf.mxu1 }
0x206a   :  { %v3600_v50 = vpop.f32.mrf.mxu1 }
0x20d3   :  { %v2808_v34 = vpop.xlane.xlu0 %2807 }
0x20d4   :  { %3731 = vrcp.f32 %v2808_v34  ;;  %v3013_v34 = vld [vmem:[%s4715_s10 + $0x20] sm:$0xff] }
0x20d7   :  { %v2813_v54 = vpop.permute.xlu0 %2812 }
0x20d8   :  { %v2818_v36 = vsel %vm304_vm4, %v2813_v54, 0  ;;  %v3014_v54 = vld [vmem:[%s4715_s10 + $0x28] sm:$0xff] }
0x20d9   :  { %3608 = vmatpush3.bf16.msra.mxu1 %v2818_v36  ;;  %v3019_v36 = vpack.c.bf16 %v3014_v54, %v3013_v34 }
0x20da   :  { %3619 = vmatprep.subr.bf16.mxu1 %v3923_v0 }
0x20e1   :  { %v3732_v37 = vpop.eup %3731 }
0x20e2   :  { %v2810_v61 = vmul.f32 %v3732_v37, %v3730_v13  ;;  %v3011_v37 = vld [vmem:[%s4715_s10 + $0x10] sm:$0xff] }
0x20e4   :  { %v2811_v4 = vpack.c.bf16 %v2810_v61, %v2810_v61  ;;  %v3012_v61 = vld [vmem:[%s4715_s10 + $0x18] sm:$0xff] }
0x20e6   :  { %3610 = vmatmul.mubr.msk.bf16.vlgmr.msra.gmra.mxu1 %vm240_vm2, %v2811_v4  ;;  %v3018_v4 = vpack.c.bf16 %v3012_v61, %v3011_v37 }
0x20e7   :  { %3623 = vmatprep.mubr.msk.bf16.mxu1 %vm3924_vm0, %v3923_v0  ;;  %3620 = vmatpush3.bf16.msra.mxu1 %v2957_v58 }
0x20e8   :  { %3621 = vmatprep.subr.bf16.mxu1 %v3923_v0 }
0x21a6   :  { %v2854_v3 = vpop.f32.mrf.mxu1 }
0x21a7   :  { %v2860_v41 = vpack.c.bf16 %v2854_v3, %v2854_v3  ;;  %v3009_v3 = vld [vmem:[%s4715_s10] sm:$0xff] }
0x21a8   :  { %v3611_v10 = vpop.f32.mrf.mxu1 }
0x21a9   :  { %3616 = vmatmul.mubr.msk.bf16.vlgmr.msra.gmra.mxu0 %vm240_vm2, %v2860_v41  ;;  %v3010_v41 = vld [vmem:[%s4715_s10 + $0x8] sm:$0xff] }
0x21aa   :  { %v2857_v43 = vpop.f32.mrf.mxu1  ;;  %3635 = vmatprep.mubr.msk.bf16.mxu0 %vm3924_vm0, %v3923_v0  ;;  %v3017_v10 = vpack.c.bf16 %v3010_v41, %v3009_v3 }
0x21ab   :  { %v2961_v43 = vrot.slane %v4391_v40, %v4373_v30 }
0x21ac   :  { %v3612_v44 = vpop.f32.mrf.mxu1 }
0x2269   :  { %v2898_v57 = vpop.f32.mrf.mxu0 }
0x226a   :  { %v2904_v26 = vadd.f32 %v2898_v57, %v2749_v38 }
0x226b   :  { %v3617_v47 = vpop.f32.mrf.mxu0 }
0x226c   :  { %v4642_v52 = vadd.f32 %v2908_v18, %v2904_v26  ;;  %v3020_v18 = vpack.c.bf16 %v3016_v20, %v3015_v19 }
0x226d   :  { %v2901_v53 = vpop.f32.mrf.mxu0 }
0x226e   :  { %v2912_v55 = vadd.f32 %v4642_v52, %v4381_v39  ;;  %v2953_v39 = vld [vmem:[#allocation13 + $0x8] sm:$0xff]  ;;  %3628 = vmatpush3.bf16.msra.mxu0 %v3020_v18 }
0x226f   :  { %v3618_v56 = vpop.f32.mrf.mxu0  ;;  %v2956_v14 = vpack.c.bf16 %v2953_v39, %v2952_v35  ;;  %3629 = vmatprep.subr.bf16.mxu0 %v3923_v0 }
0x2270   :  { %v2916_v59 = vsel %vm185_vm1, %v2912_v55, 0.0 }
0x2271   :  { %2917 = vadd.xlane.f32.xlu1 %v2916_v59  ;;  %3622 = vmatpush3.bf16.msra.mxu1 %v2956_v14 }
0x2272   :  { %3630 = vmatpush3.bf16.msra.mxu0 %v3019_v36 }
0x2273   :  { %3631 = vmatprep.subr.bf16.mxu0 %v3923_v0 }
0x2275   :  { %2926 = vadd.xlane.f32.xlu1 %v2925_v62 }
0x2276   :  { %3632 = vmatpush3.bf16.msra.mxu0 %v3018_v4 }
0x2277   :  { %3633 = vmatprep.subr.bf16.mxu0 %v3923_v0 }
0x227a   :  { %3634 = vmatpush3.bf16.msra.mxu0 %v3017_v10 }
0x22fa   :  { %v2918_v63 = vpop.xlane.xlu1 %2917 }
0x22fb   :  { %v2920_v1 = vmul.f32 0.03125, %v2918_v63 }
0x22fd   :  { %v2922_v5 = vsub.f32 %v2912_v55, %v2920_v1  ;;  %v3023_v55 = vsub.s32 7, %v4317_v11 }
0x22fe   :  { %v2927_v21 = vpop.xlane.xlu1 %2926 }
0x22ff   :  { %v2924_v8 = vmul.f32 %v2922_v5, %v2922_v5  ;;  %v2931_v22 = vmul.f32 0.03125, %v2927_v21  ;;  %v3024_v56 = vrot.slane %v3741_v29, %v3023_v55 }
0x2301   :  { %v2928_v6 = vsel %vm185_vm1, %v2924_v8, 0.0  ;;  %v2933_v17 = vadd.f32 1e-05, %v2931_v22 }
0x2302   :  { %2929 = vadd.xlane.f32.xlu1 %v2928_v6 }
0x2303   :  { %3733 = vrsqrt.f32 %v2933_v17 }
0x2310   :  { %v3734_v27 = vpop.eup %3733 }
0x2311   :  { %v2937_v28 = vmul.f32 %v3734_v27, %v2921_v51 }
0x2313   :  { %v2943_v42 = vmul.f32 %v2942_v32, %v2937_v28 }
0x2315   :  { %v2949_v7 = vadd.f32 %v2948_v2, %v2943_v42 }
0x238b   :  { %v2930_v24 = vpop.xlane.xlu1 %2929 }
0x238c   :  { %v2932_v45 = vmul.f32 0.03125, %v2930_v24 }
0x238e   :  { %v2934_v16 = vadd.f32 1e-05, %v2932_v45 }
0x2390   :  { %3735 = vrsqrt.f32 %v2934_v16  ;;  %v145_v16 = vld [vmem:[%s4718_s13 + $0x8] sm:$0x3]  ;;  %s3882_s13 = scalar_lea.vmem %s3118_s28, 256 }
0x2391   :  { %v3101_v25 = vrot.slane %v145_v16, %v4320_v12  ;;  %v3107_v29 = vrot.slane %v145_v16, %v4373_v30  ;;  %p3883_p7 = scmp.ne.s32.totalorder %s3118_s28, %s3882_s13  ;;  %p3888_p9 = scmp.lt.s32.totalorder %s3882_s13, %s3882_s13 }
0x2393   :  { %p3889_p10 = por %p3888_p9, %p3887_p8 }
0x2395   :  { %p3890_p11 = pnand %p3889_p10, %p3883_p7 }
0x239d   :  { %v3736_v9 = vpop.eup %3735 }
0x239e   :  { %v2938_v13 = vmul.f32 %v3736_v9, %v2922_v5 }
0x23a0   :  { %v2944_v38 = vmul.f32 %v2942_v32, %v2938_v13 }
0x23a2   :  { %v2950_v49 = vadd.f32 %v2948_v2, %v2944_v38 }
0x23a4   :  { %v2951_v50 = vpack.c.bf16 %v2950_v49, %v2949_v7 }
0x23a6   :  { %3624 = vmatmul.mubr.msk.bf16.vlgmr.msra.gmra.mxu1 %vm185_vm1, %v2951_v50 }
0x2466   :  { %v2999_v44 = vpop.f32.mrf.mxu1 }
0x2467   :  { %v3000_v48 = vadd.f32 %v2999_v44, %v2961_v43 }
0x2468   :  { %v3625_v23 = vpop.f32.mrf.mxu1 }
0x2469   :  { %v3006_v0 = vmax.f32 %v3000_v48, 0.0 }
0x246a   :  { %v3002_v57 = vpop.f32.mrf.mxu1 }
0x246b   :  { %v3003_v26 = vadd.f32 %v3002_v57, %v2961_v43 }
0x246c   :  { %v3626_v47 = vpop.f32.mrf.mxu1 }
0x246d   :  { %v3007_v51 = vmax.f32 %v3003_v26, 0.0 }
0x246f   :  { %v3008_v53 = vpack.c.bf16 %v3007_v51, %v3006_v0 }
0x2471   :  { %3636 = vmatmul.mubr.msk.bf16.vlgmr.msra.gmra.mxu0 %vm3025_vm8, %v3008_v53 }
0x2531   :  { %v3063_v59 = vpop.f32.mrf.mxu0 }
0x2532   :  { %v3064_v60 = vadd.f32 %v3063_v59, %v3024_v56 }
0x2533   :  { %v3637_v62 = vpop.f32.mrf.mxu0 }
0x2534   :  { %v3070_v63 = vadd.f32 %v3064_v60, %v4623_v31 }
0x2535   :  { %v3066_v40 = vpop.f32.mrf.mxu0 }
0x2536   :  { %v3067_v1 = vadd.f32 %v3066_v40, %v3024_v56  ;;  %v3072_v5 = vsel %vm185_vm1, %v3070_v63, 0.0 }
0x2537   :  { %3073 = vadd.xlane.f32.xlu1 %v3072_v5  ;;  %v3638_v8 = vpop.f32.mrf.mxu0 }
0x2538   :  { %v3071_v6 = vadd.f32 %v3067_v1, %v4642_v52 }
0x253a   :  { %v3075_v15 = vsel %vm185_vm1, %v3071_v6, 0.0 }
0x253b   :  { %3076 = vadd.xlane.f32.xlu1 %v3075_v15 }
0x25c0   :  { %v3074_v46 = vpop.xlane.xlu1 %3073 }
0x25c1   :  { %v3078_v58 = vmul.f32 0.03125, %v3074_v46 }
0x25c3   :  { %v3080_v11 = vsub.f32 %v3070_v63, %v3078_v58 }
0x25c4   :  { %v3077_v35 = vpop.xlane.xlu1 %3076 }
0x25c5   :  { %v3079_v39 = vmul.f32 0.03125, %v3077_v35  ;;  %v3082_v14 = vmul.f32 %v3080_v11, %v3080_v11 }
0x25c7   :  { %v3081_v19 = vsub.f32 %v3071_v6, %v3079_v39  ;;  %v3084_v31 = vsel %vm185_vm1, %v3082_v14, 0.0 }
0x25c8   :  { %3085 = vadd.xlane.f32.xlu0 %v3084_v31 }
0x25c9   :  { %v3083_v20 = vmul.f32 %v3081_v19, %v3081_v19 }
0x25cb   :  { %v3087_v18 = vsel %vm185_vm1, %v3083_v20, 0.0 }
0x25cc   :  { %3088 = vadd.xlane.f32.xlu1 %v3087_v18 }
0x2651   :  { %v3086_v21 = vpop.xlane.xlu0 %3085 }
0x2652   :  { %v3090_v22 = vmul.f32 0.03125, %v3086_v21 }
0x2654   :  { %v3092_v52 = vadd.f32 1e-05, %v3090_v22 }
0x2655   :  { %v3089_v17 = vpop.xlane.xlu1 %3088 }
0x2656   :  { %3737 = vrsqrt.f32 %v3092_v52  ;;  %v3091_v24 = vmul.f32 0.03125, %v3089_v17 }
0x2658   :  { %v3093_v45 = vadd.f32 1e-05, %v3091_v24 }
0x265a   :  { %3739 = vrsqrt.f32 %v3093_v45 }
0x2663   :  { %v3738_v27 = vpop.eup %3737 }
0x2664   :  { %v3096_v28 = vmul.f32 %v3738_v27, %v3080_v11 }
0x2666   :  { %v3102_v32 = vmul.f32 %v3101_v25, %v3096_v28 }
0x2667   :  { %v3740_v33 = vpop.eup %3739 }
0x2668   :  { %v3097_v9 = vmul.f32 %v3740_v33, %v3081_v19  ;;  %v3108_v13 = vadd.f32 %v3107_v29, %v3102_v32 }
0x266a   :  { %v3103_v42 = vmul.f32 %v3101_v25, %v3097_v9  ;;  %3110 = vst.msk [vmem:[#allocation14] sm:$0xff] %vm185_vm1, %v3108_v13 }
0x266c   :  { %v3109_v2 = vadd.f32 %v3107_v29, %v3103_v42 }
0x266e   :  { %3111 = vst.msk [vmem:[#allocation14 + $0x8] sm:$0xff] %vm185_vm1, %v3109_v2 }
0x266f   :  { %3893 = shalt.err (!%p3890_p11)
}
0x2670   :  { %3123 = dma.vmem_to_hbm [thread:$0]  %s3118_s28, 256, %s4719_s14, [#allocation4], %s3913_s16, %s3913_s16, %s3914_s17  }
0x2671   :  { %3910 = dma.done.wait [#allocation4], 256  }
0x2672   :  { %3911 = vsyncadd [#allocation4], 4294967040 }
0x2673   :  { %3127 = vsyncpa [#allocation3], 1 }
0x2674   :  { %3128 = vsyncpa [#allocation6], 1 }
0x2675   :  { %3129 = vsyncpa [#allocation9], 1 }
0x2676   :  { %3130 = vsyncpa [#allocation12], 1 }
0x2677   :  { %3131 = vsyncpa [#allocation4], 1 }

</bundles_post_ra>
